<compile_context>
chip_gen: v7x
topology: tpu7x:2x2x1
jax: 0.10.0
libtpu: 0.0.40
codegen_flags: <defaults>
</compile_context>

<pallas_src>
import jax
import jax.numpy as jnp
from jax.experimental import pallas as pl
from jax.experimental.pallas import tpu as pltpu


def _attn_gate_kernel(p_ref, g_ref, x_ref, o_ref):
    # g_ref/x_ref/o_ref: (C, TV) voxel tiles (batch dim squeezed), voxels on
    # the lanes.  p_ref: (F_int, F_g+F_l+3) packed parameters with columns
    # [ Wg | Wx | b_g+b_x | w_psi | b_psi (row 0) ], all BN-folded, f32.
    F_g = g_ref.shape[0]
    F_l = x_ref.shape[0]

    g = g_ref[...].astype(jnp.float32)            # (F_g, TV)
    x = x_ref[...].astype(jnp.float32)            # (F_l, TV)
    p = p_ref[...]                                # (F_int, F_g+F_l+3)

    wg = p[:, :F_g]                               # (F_int, F_g)
    wx = p[:, F_g:F_g + F_l]                      # (F_int, F_l)
    b = p[:, F_g + F_l:F_g + F_l + 1]             # (F_int, 1) = b_g + b_x
    wp = p[:, F_g + F_l + 1:F_g + F_l + 2]        # (F_int, 1)
    bp = p[0:1, F_g + F_l + 2:F_g + F_l + 3]      # (1, 1)

    # Channel contraction on the MXU.  HIGHEST -> f32 contract precision
    # (multi-pass), so results match the exact-f32 reference; the MXU has
    # huge slack here so the extra passes are free.
    hp = jax.lax.Precision.HIGHEST
    h = (jnp.dot(wg, g, preferred_element_type=jnp.float32, precision=hp)
         + jnp.dot(wx, x, preferred_element_type=jnp.float32, precision=hp)
         + b)
    h = jnp.maximum(h, 0.0)                       # ReLU, (F_int, TV)

    # psi logit: tiny (1,F_int)x(F_int,TV) contraction as a sublane (XLU)
    # reduction, keeping the VALU free for the gating multiply below.
    logit = jnp.sum(wp * h, axis=0, keepdims=True) + bp       # (1, TV)
    # Sigmoid on the EUP: sigmoid(z) = 0.5 * tanh(z/2) + 0.5.  One
    # transcendental per voxel, no VALU divide, exact to f32 rounding.
    psi = 0.5 * jnp.tanh(0.5 * logit) + 0.5

    # Gating multiply, psi broadcast over the F_l sublanes; lane-dense store.
    o_ref[...] = (x * psi).astype(o_ref.dtype)


def _fold_bn(w, b, gamma, beta, mean, var, eps):
    """Fold eval-mode BatchNorm into a 1x1x1 conv.

    w: (C_out, C_in) conv weight, b: (C_out,) conv bias.
    Returns folded (C_out, C_in) weight and (C_out,) bias.
    """
    scale = gamma / jnp.sqrt(var + eps)            # (C_out,)
    w_fold = w * scale[:, None]                    # (C_out, C_in)
    b_fold = (b - mean) * scale + beta             # (C_out,)
    return w_fold, b_fold


def _pick_tile(V, N, tile_v):
    """Largest lane-dense voxel tile (<= tile_v, multiple of 128 or all of V).

    Also keeps the (parallel, parallel) grid at least two steps wide when the
    problem allows, so both TensorCores on v7x get work.
    """
    if V <= tile_v:
        tv = V
    else:
        tv = max(128, (tile_v // 128) * 128)
    while N * pl.cdiv(V, tv) < 2 and tv > 128:
        tv = max(128, (tv // 2 // 128) * 128)
    return tv


def attention_gate(g, x, params, *, tile_v=32768, eps=1e-5):
    """g: (N, F_g, D, H, W), x: (N, F_l, D, H, W) -> (N, F_l, D, H, W).

    bf16 (or f32) g/x pass straight through (out dtype = x dtype); compute is
    f32 in-kernel.  tile_v up to ~64K fits the default scoped VMEM on v5e;
    raise vmem_limit_bytes in CompilerParams if you go larger.
    """
    N, F_g, D, H, W = g.shape
    F_l = x.shape[1]

    wg, bg = _fold_bn(params["wg"], params["bg"], params["g_gamma"],
                      params["g_beta"], params["g_mean"], params["g_var"], eps)
    wx, bx = _fold_bn(params["wx"], params["bx"], params["x_gamma"],
                      params["x_beta"], params["x_mean"], params["x_var"], eps)
    wp, bp = _fold_bn(params["wp"], params["bp"], params["p_gamma"],
                      params["p_beta"], params["p_mean"], params["p_var"], eps)
    F_int = wg.shape[0]

    # NCDHW -> (N, C, V): pure reshape, no transpose, no extra HBM traffic.
    V = D * H * W
    g3 = g.reshape(N, F_g, V)
    x3 = x.reshape(N, F_l, V)

    # Pack the five tiny parameter tensors into ONE small f32 array:
    # columns [ Wg | Wx | b_g+b_x | w_psi | b_psi(row 0) ].
    P = F_g + F_l + 3
    packed = jnp.zeros((F_int, P), jnp.float32)
    packed = packed.at[:, :F_g].set(wg.astype(jnp.float32))
    packed = packed.at[:, F_g:F_g + F_l].set(wx.astype(jnp.float32))
    packed = packed.at[:, F_g + F_l].set((bg + bx).astype(jnp.float32))
    packed = packed.at[:, F_g + F_l + 1].set(
        wp.reshape(F_int).astype(jnp.float32))
    packed = packed.at[0, F_g + F_l + 2].set(
        bp.reshape(()).astype(jnp.float32))

    tv = _pick_tile(V, N, tile_v)
    num_v = pl.cdiv(V, tv)   # partial last tile: OOB writes are clamped

    def vox_spec(c):
        # Batch dim squeezed out of the kernel refs; voxel axis on the lanes.
        return pl.BlockSpec((pl.Squeezed(), c, tv), lambda n, i: (n, 0, i))

    x_bytes = jnp.dtype(x.dtype).itemsize
    g_bytes = jnp.dtype(g.dtype).itemsize
    cost = pl.CostEstimate(
        # 2 dots + bias + relu + psi reduce + sigmoid + gating multiply
        flops=2 * N * V * F_int * (F_g + F_l + 2) + 4 * N * V * F_l,
        transcendentals=N * V,
        bytes_accessed=(N * F_g * V * g_bytes          # read g
                        + N * F_l * V * x_bytes        # read x
                        + N * F_l * V * x_bytes        # write out
                        + F_int * P * 4),              # params
    )

    out3 = pl.pallas_call(
        _attn_gate_kernel,
        out_shape=jax.ShapeDtypeStruct((N, F_l, V), x.dtype),
        grid_spec=pltpu.PrefetchScalarGridSpec(
            num_scalar_prefetch=0,
            grid=(N, num_v),
            in_specs=[
                pl.BlockSpec((F_int, P), lambda n, i: (0, 0)),  # packed params
                vox_spec(F_g),                                  # g tile
                vox_spec(F_l),                                  # x tile
            ],
            out_specs=vox_spec(F_l),
        ),
        compiler_params=pltpu.CompilerParams(
            dimension_semantics=("parallel", "parallel")),
        cost_estimate=cost,
    )(packed, g3, x3)

    return out3.reshape(N, F_l, D, H, W)


def _reference(g, x, params, eps=1e-5):
    """Pure-JAX reference of the folded-BN AttentionGate forward (exact f32)."""
    N, F_g = g.shape[:2]
    F_l = x.shape[1]
    V = g.shape[2] * g.shape[3] * g.shape[4]
    wg, bg = _fold_bn(params["wg"], params["bg"], params["g_gamma"],
                      params["g_beta"], params["g_mean"], params["g_var"], eps)
    wx, bx = _fold_bn(params["wx"], params["bx"], params["x_gamma"],
                      params["x_beta"], params["x_mean"], params["x_var"], eps)
    wp, bp = _fold_bn(params["wp"], params["bp"], params["p_gamma"],
                      params["p_beta"], params["p_mean"], params["p_var"], eps)
    g3 = g.reshape(N, F_g, V).astype(jnp.float32)
    x3 = x.reshape(N, F_l, V).astype(jnp.float32)

    def contract(w, t):   # (O, C) x (N, C, V) -> (N, O, V), exact f32
        return jnp.sum(w[None, :, :, None] * t[:, None, :, :], axis=2)

    h = jnp.maximum(contract(wg, g3) + bg[None, :, None]
                    + contract(wx, x3) + bx[None, :, None], 0.0)
    logit = contract(wp, h) + bp[None, :, None]
    psi = jax.nn.sigmoid(logit)                    # (N, 1, V)
    out = (x3 * psi).astype(x.dtype)
    return out.reshape(x.shape)


def _init_params(key, F_g, F_l, F_int):
    ks = jax.random.split(key, 12)
    return {
        # conv weights (C_out, C_in) — kernel_size=1 so spatial dims dropped
        "wg": jax.random.normal(ks[0], (F_int, F_g), jnp.float32) * 0.2,
        "bg": jax.random.normal(ks[1], (F_int,), jnp.float32) * 0.1,
        "wx": jax.random.normal(ks[2], (F_int, F_l), jnp.float32) * 0.2,
        "bx": jax.random.normal(ks[3], (F_int,), jnp.float32) * 0.1,
        "wp": jax.random.normal(ks[4], (1, F_int), jnp.float32) * 0.2,
        "bp": jax.random.normal(ks[5], (1,), jnp.float32) * 0.1,
        # BatchNorm (eval-mode) parameters / running stats
        "g_gamma": 1.0 + 0.1 * jax.random.normal(ks[6], (F_int,), jnp.float32),
        "g_beta": 0.05 * jax.random.normal(ks[7], (F_int,), jnp.float32),
        "g_mean": 0.02 * jnp.arange(F_int, dtype=jnp.float32),
        "g_var": jnp.ones((F_int,), jnp.float32) * 0.9,
        "x_gamma": 1.0 + 0.1 * jax.random.normal(ks[8], (F_int,), jnp.float32),
        "x_beta": 0.05 * jax.random.normal(ks[9], (F_int,), jnp.float32),
        "x_mean": -0.01 * jnp.arange(F_int, dtype=jnp.float32),
        "x_var": jnp.ones((F_int,), jnp.float32) * 1.1,
        "p_gamma": 1.0 + 0.1 * jax.random.normal(ks[10], (1,), jnp.float32),
        "p_beta": 0.05 * jax.random.normal(ks[11], (1,), jnp.float32),
        "p_mean": jnp.zeros((1,), jnp.float32) + 0.03,
        "p_var": jnp.ones((1,), jnp.float32) * 0.95,
    }


if __name__ == "__main__":
    # batch=2, F_g=F_l=4, F_int=8, spatial 16x16x32 -> V=8192 voxels;
    # tv = V (whole voxel axis per tile), grid = (2, 1).
    N, F_g, F_l, F_int = 2, 4, 4, 8
    D, H, W = 16, 16, 32

    key = jax.random.PRNGKey(0)
    kg, kx, kp = jax.random.split(key, 3)
    g = jax.random.normal(kg, (N, F_g, D, H, W), jnp.float32)
    x = jax.random.normal(kx, (N, F_l, D, H, W), jnp.float32)
    params = _init_params(kp, F_g, F_l, F_int)

    out = attention_gate(g, x, params)
    out = jax.block_until_ready(out)

    ref = _reference(g, x, params)
    assert out.shape == (N, F_l, D, H, W)
    # MXU f32 contract-precision dots + EUP tanh sigmoid: ~f32 accurate; 1e-4
    # gives comfortable margin over the exact-f32 reference.
    assert jnp.allclose(out, ref, atol=1e-4, rtol=1e-4), "mismatch vs reference"

    print("KERNEL_OK")
</pallas_src>

<mosaic_0001>
module attributes {stable_mosaic.version = 11 : i64} {
  func.func @_attn_gate_kernel(%arg0: i32, %arg1: i32, %arg2: memref<8x11xf32, #tpu.memory_space<vmem>>, %arg3: memref<1x4x8192xf32, #tpu.memory_space<vmem>>, %arg4: memref<1x4x8192xf32, #tpu.memory_space<vmem>>, %arg5: memref<1x4x8192xf32, #tpu.memory_space<vmem>>) attributes {dimension_semantics = [#tpu.dimension_semantics<parallel>, #tpu.dimension_semantics<parallel>], iteration_bounds = array<i64: 2, 1>, scalar_prefetch = 0 : i64, scratch_operands = 0 : i64, tpu.core_type = #tpu.core_type<tc>, window_params = [{pipeline_mode = #tpu.pipeline_mode<synchronous>, transform_indices = @transform_0, window_bounds = array<i64: 8, 11>}, {transform_indices = @transform_1, window_bounds = array<i64: 1, 4, 8192>}, {transform_indices = @transform_2, window_bounds = array<i64: 1, 4, 8192>}, {transform_indices = @transform_3, window_bounds = array<i64: 1, 4, 8192>}]} {
    %c0 = arith.constant 0 : index
    %c0_0 = arith.constant 0 : index
    %c0_1 = arith.constant 0 : index
    %0 = vector.load %arg3[%c0, %c0_0, %c0_1] : memref<1x4x8192xf32, #tpu.memory_space<vmem>>, vector<1x4x8192xf32>
    %1 = vector.shape_cast %0 : vector<1x4x8192xf32> to vector<4x8192xf32>
    %c0_2 = arith.constant 0 : index
    %c0_3 = arith.constant 0 : index
    %c0_4 = arith.constant 0 : index
    %2 = vector.load %arg4[%c0_2, %c0_3, %c0_4] : memref<1x4x8192xf32, #tpu.memory_space<vmem>>, vector<1x4x8192xf32>
    %3 = vector.shape_cast %2 : vector<1x4x8192xf32> to vector<4x8192xf32>
    %c0_5 = arith.constant 0 : index
    %c0_6 = arith.constant 0 : index
    %4 = vector.load %arg2[%c0_5, %c0_6] : memref<8x11xf32, #tpu.memory_space<vmem>>, vector<8x11xf32>
    %5 = vector.extract_strided_slice %4 {offsets = [0, 0], sizes = [8, 4], strides = [1, 1]} : vector<8x11xf32> to vector<8x4xf32>
    %6 = vector.extract_strided_slice %4 {offsets = [0, 4], sizes = [8, 4], strides = [1, 1]} : vector<8x11xf32> to vector<8x4xf32>
    %7 = vector.extract_strided_slice %4 {offsets = [0, 8], sizes = [8, 1], strides = [1, 1]} : vector<8x11xf32> to vector<8x1xf32>
    %8 = vector.extract_strided_slice %4 {offsets = [0, 9], sizes = [8, 1], strides = [1, 1]} : vector<8x11xf32> to vector<8x1xf32>
    %9 = vector.extract_strided_slice %4 {offsets = [0, 10], sizes = [1, 1], strides = [1, 1]} : vector<8x11xf32> to vector<1x1xf32>
    %cst = arith.constant dense<0.000000e+00> : vector<8x8192xf32>
    %10 = tpu.matmul %5, %1, %cst {dimension_numbers = #tpu.dot_dimension_numbers<[1], [0], [0], [1], [0, 0, 1, 1], [], []>, precision = #tpu.contract_precision<fp32>} : vector<8x4xf32>, vector<4x8192xf32>, vector<8x8192xf32> -> vector<8x8192xf32>
    %cst_7 = arith.constant dense<0.000000e+00> : vector<8x8192xf32>
    %11 = tpu.matmul %6, %3, %cst_7 {dimension_numbers = #tpu.dot_dimension_numbers<[1], [0], [0], [1], [0, 0, 1, 1], [], []>, precision = #tpu.contract_precision<fp32>} : vector<8x4xf32>, vector<4x8192xf32>, vector<8x8192xf32> -> vector<8x8192xf32>
    %12 = arith.addf %10, %11 : vector<8x8192xf32>
    %13 = vector.broadcast %7 : vector<8x1xf32> to vector<8x8192xf32>
    %14 = arith.addf %12, %13 : vector<8x8192xf32>
    %cst_8 = arith.constant 0.000000e+00 : f32
    %15 = vector.broadcast %cst_8 : f32 to vector<8x8192xf32>
    %16 = arith.maximumf %14, %15 : vector<8x8192xf32>
    %17 = vector.broadcast %8 : vector<8x1xf32> to vector<8x8192xf32>
    %18 = arith.mulf %17, %16 : vector<8x8192xf32>
    %cst_9 = arith.constant dense<0.000000e+00> : vector<8192xf32>
    %19 = vector.multi_reduction <add>, %18, %cst_9 [0] : vector<8x8192xf32> to vector<8192xf32>
    %20 = vector.shape_cast %19 : vector<8192xf32> to vector<1x8192xf32>
    %21 = vector.broadcast %9 : vector<1x1xf32> to vector<1x8192xf32>
    %22 = arith.addf %20, %21 : vector<1x8192xf32>
    %cst_10 = arith.constant 5.000000e-01 : f32
    %23 = vector.broadcast %cst_10 : f32 to vector<1x8192xf32>
    %24 = arith.mulf %23, %22 : vector<1x8192xf32>
    %25 = math.tanh %24 : vector<1x8192xf32>
    %cst_11 = arith.constant 5.000000e-01 : f32
    %26 = vector.broadcast %cst_11 : f32 to vector<1x8192xf32>
    %27 = arith.mulf %26, %25 : vector<1x8192xf32>
    %cst_12 = arith.constant 5.000000e-01 : f32
    %28 = vector.broadcast %cst_12 : f32 to vector<1x8192xf32>
    %29 = arith.addf %27, %28 : vector<1x8192xf32>
    %30 = vector.broadcast %29 : vector<1x8192xf32> to vector<4x8192xf32>
    %31 = arith.mulf %3, %30 : vector<4x8192xf32>
    %c0_13 = arith.constant 0 : index
    %c0_14 = arith.constant 0 : index
    %c0_15 = arith.constant 0 : index
    %32 = vector.load %arg5[%c0_13, %c0_14, %c0_15] : memref<1x4x8192xf32, #tpu.memory_space<vmem>>, vector<1x4x8192xf32>
    %33 = vector.shape_cast %32 : vector<1x4x8192xf32> to vector<4x8192xf32>
    %34 = vector.shape_cast %31 : vector<4x8192xf32> to vector<1x4x8192xf32>
    tpu.vector_store %arg5[%c0_13, %c0_14, %c0_15], %34 {strides = array<i32>} : memref<1x4x8192xf32, #tpu.memory_space<vmem>>, vector<1x4x8192xf32>,
    return
  }
  func.func @transform_0(%arg0: i32, %arg1: i32) -> (i32, i32) {
    %c0_i32 = arith.constant 0 : i32
    %c0_i32_0 = arith.constant 0 : i32
    %c0_i32_1 = arith.constant 0 : i32
    return %c0_i32, %c0_i32_0 : i32, i32
  }
  func.func @transform_1(%arg0: i32, %arg1: i32) -> (i32, i32, i32) {
    %c0_i32 = arith.constant 0 : i32
    %c0_i32_0 = arith.constant 0 : i32
    return %arg0, %c0_i32, %arg1 : i32, i32, i32
  }
  func.func @transform_2(%arg0: i32, %arg1: i32) -> (i32, i32, i32) {
    %c0_i32 = arith.constant 0 : i32
    %c0_i32_0 = arith.constant 0 : i32
    return %arg0, %c0_i32, %arg1 : i32, i32, i32
  }
  func.func @transform_3(%arg0: i32, %arg1: i32) -> (i32, i32, i32) {
    %c0_i32 = arith.constant 0 : i32
    %c0_i32_0 = arith.constant 0 : i32
    return %arg0, %c0_i32, %arg1 : i32, i32, i32
  }
}

</mosaic_0001>

<bundles_post_ra>
// kernel: tpu_custom_call.1
= control target key start
LH: loop header
LB: loop body
LE: loop exit
PB: predicated region body
PF: predicated region fallthrough
CT: control target
= control target key end

     0   :  { %8 = vsyncpa [#allocation3], 0  ;;  %s36162_s0 = inlined_call_operand.hbm [shape: f32[8,11], index: 0, kind: input, shape index: {}]   ;;  %s36163_s1 = inlined_call_operand.hbm [shape: f32[2,4,8192], index: 1, kind: input, shape index: {}]   ;;  %s36164_s2 = inlined_call_operand.hbm [shape: f32[2,4,8192], index: 2, kind: input, shape index: {}]   ;;  %s36165_s3 = inlined_call_operand.hbm [shape: f32[2,4,8192], index: 3, kind: output, shape index: {}]  }
   0x1   :  { %9 = vsyncpa [#allocation6], 0 }
   0x2   :  { %11 = vsyncpa [#allocation6 + $0x1], 0 }
   0x3   :  { %12 = vsyncpa [#allocation4], 0 }
   0x4   :  { %14 = vsyncpa [#allocation4 + $0x1], 0  ;;  %s33215_s12 = smov 0   ;;  %s33217_s13 = smov 0  }
   0x5   :  { %s33219_s14 = smov 0   ;;  %s33221_s15 = smov 0  }
   0x6   :  { %s33223_s16 = smov 0   ;;  %s33225_s17 = smov 0  }
   0x7 LB: > { %s32_s18 = sadd.s32 1, %s33180_s16  ;;  %s62_s19 = sadd.s32 1, %s33172_s14  ;;  %s33184_s17 = sphi %s33225_s17, %s20_s17   ;;  %s33180_s16 = sphi %s33223_s16, %s36191_s16   ;;  %s33176_s15 = sphi %s33221_s15, %s36190_s15   ;;  %s33172_s14 = sphi %s33219_s14, %s36189_s14   ;;  %s33168_s13 = sphi %s33217_s13, %s36188_s13   ;;  %s33164_s12 = sphi %s33215_s12, %s36187_s12  }
   0x8   : > { %p34_p0 = scmp.ge.s32.totalorder %s32_s18, 2  ;;  %p69_p1 = scmp.ne.s32.totalorder %s33172_s14, %s33168_s13 }
   0x9   : > { %p70_p2 = scmp.eq.s32.totalorder %s33184_s17, 0  ;;  %p32724_p5 = scmp.lt.s32.totalorder %s33184_s17, 2 }
   0xa   : > { %s36193_s18 = smov (%p34_p0, %s32_s18), 0  ;;  %s166_s21 = sand.u32 1, %s33184_s17  }
   0xb   : > { %p71_p4 = por %p70_p2, %p69_p1  ;;  %s57_s20 = ssub.s32 %s33180_s16, %s36193_s18 }
   0xc   : > { %p60_p6 = scmp.eq.s32.totalorder %s57_s20, 0  ;;  %s168_s22 = sand.u32 1, %s33172_s14  }
   0xd   : > { %s31991_s23 = sshll.u32 %s33180_s16, 12  ;;  %s33265_s25 = sshll.u32 %s168_s22, 8 }
   0xe   : > { %s33263_s24 = scalar_select %p60_p6, %s33172_s14, %s62_s19  }
   0xf   : > { %s33272_s28 = scalar_lea.hbm %s36163_s1, %s31991_s23  ;;  %p33274_p7 = pnand %p32724_p5, %p71_p4 }
  0x10   : > { %s170_s30 = scalar_lea.vmem [#allocation5], %s33265_s25  ;;  %s33281_s5 = scalar_lea.sflag [#allocation6], %s166_s21 }
  0x11   : > { %s180_s4 = sshll.u32 %s170_s30, 4  ;;  %s33010_s6 = scalar_lea.hbm %s33272_s28, 4096  ;;  %s33279_s4 = int_to_ptr.vmem [resolvable:$true] %s180_s4 }
  0x12   : > { %p33011_p8 = scmp.ne.s32.totalorder %s33272_s28, %s33010_s6  ;;  %p33012_p9 = pneg %p33274_p7 }
  0x13   : > { %s33015_s9 = scalar_lea.hbm %s36163_s1, 8192  ;;  %p33016_p12 = scmp.lt.u32.totalorder %s33272_s28, %s36163_s1 }
  0x14   : > { %p33013_p10 = pnand %p33012_p9, %p33011_p8  ;;  %p33017_p13 = scmp.lt.u32.totalorder %s33015_s9, %s33010_s6 }
  0x15   : > { %p33019_p2 = scmp.lt.u32.totalorder %s33010_s6, %s33272_s28 }
  0x16   : > { %p33014_p11 = pneg %p33013_p10  ;;  %p33018_p0 = por %p33017_p13, %p33016_p12 }
  0x18   : > { %p33020_p4 = por %p33019_p2, %p33018_p0 }
  0x1a   : > { %p33021_p5 = pnand %p33020_p4, %p33014_p11 }
  0x1c   : > { %33024 = shalt.err (!%p33021_p5)
}
  0x1d   : > { %s33025_s19 = scalar_lea.vmem %s33279_s4, 4096  ;;  %s33186_s20 = smov [#allocation5]  }
  0x1e   : > { %p33026_p6 = scmp.ne.s32.totalorder %s33279_s4, %s33025_s19  ;;  %s33030_s21 = sshll.u32 %s33186_s20, 4  ;;  %s33031_s21 = int_to_ptr.vmem [resolvable:$false] %s33030_s21 }
  0x1f   : > { %s33032_s22 = scalar_lea.vmem %s33031_s21, 8192  ;;  %p33033_p3 = scmp.lt.s32.totalorder %s33279_s4, %s33031_s21 }
  0x20   : > { %p33028_p8 = pnand %p33026_p6, %p33012_p9  ;;  %p33034_p12 = scmp.lt.s32.totalorder %s33032_s22, %s33025_s19 }
  0x22   : > { %p33029_p10 = pneg %p33028_p8  ;;  %p33035_p13 = por %p33034_p12, %p33033_p3 }
  0x24   : > { %p33036_p0 = pnand %p33035_p13, %p33029_p10 }
  0x26   : > { %33039 = shalt.err (!%p33036_p0)
}
  0x27   : > { %32715 = dma.hbm_to_vmem [thread:$0]  (!%p33274_p7), %s33272_s28, 4096, %s33279_s4, %s33281_s5  }
  0x28   : > { %s33310_s26 = sadd.s32 4294967295, %s33184_s17   ;;  %s31971_s27 = sadd.s32 4294967294, %s33184_s17  }
  0x29   : > { %p75_p3 = scmp.ne.s32.totalorder %s33168_s13, %s33164_s12  ;;  %p36166_p11 = scmp.eq.s32.totalorder %s33310_s26, 0 }
  0x2a   : > { %p129_p2 = scmp.eq.s32.totalorder %s33310_s26, 1  ;;  %p135_p4 = scmp.eq.s32.totalorder %s31971_s27, 1 }
  0x2b   : > { %p31972_p5 = scmp.ge.s32.totalorder %s33184_s17, 1  ;;  %p33320_p6 = por %p36166_p11, %p75_p3 }
  0x2c   : > { %p33327_p8 = por %p129_p2, %p69_p1  ;;  %p33331_p10 = por %p135_p4, %p75_p3 }
  0x2d   : > { %s36172_s30 = scalar_select %p33320_p6, 1, 0 }
  0x2e   : > { %s36173_s28 = scalar_select %p33327_p8, 1, 0 }
  0x2f   : > { %s36174_s4 = scalar_select %p33331_p10, 1, 0 }
  0x30   : > { %p142_p12 = scmp.lt.s32.totalorder %s33184_s17, 3  ;;  %s33341_s8 = scalar_lea.hbm %s36164_s2, %s31991_s23 }
  0x31   : > { %s33187_s10 = smov [#allocation2]   ;;  %s191_s19 = scalar_lea.vmem [#allocation7], %s33265_s25 }
  0x32   : > { %p33343_p13 = pnand %p31972_p5, %p142_p12  ;;  %s33347_s11 = sshll.u32 %s33187_s10, 4  ;;  %s156_s11 = int_to_ptr.vmem [resolvable:$true] %s33347_s11 }
  0x33   : > { %s201_s20 = sshll.u32 %s191_s19, 4  ;;  %s33040_s21 = scalar_lea.hbm %s33341_s8, 4096  ;;  %s202_s20 = int_to_ptr.vmem [resolvable:$true] %s201_s20 }
  0x34   : > { %s36175_s9 = scalar_select %p33343_p13, 1, 0 }
  0x35   : > { %p33041_p0 = scmp.ne.s32.totalorder %s33341_s8, %s33040_s21  ;;  %s33045_s27 = scalar_lea.hbm %s36164_s2, 8192 }
  0x36   : > { %p33046_p4 = scmp.lt.u32.totalorder %s33341_s8, %s36164_s2  ;;  %p33047_p5 = scmp.lt.u32.totalorder %s33045_s27, %s33040_s21 }
  0x37   : > { %p33043_p3 = pnand %p33041_p0, %p33012_p9  ;;  %p33049_p11 = scmp.lt.u32.totalorder %s33040_s21, %s33341_s8 }
  0x38   : > { %p33048_p12 = por %p33047_p5, %p33046_p4 }
  0x39   : > { %p33044_p2 = pneg %p33043_p3 }
  0x3a   : > { %p33050_p10 = por %p33049_p11, %p33048_p12 }
  0x3c   : > { %p33051_p1 = pnand %p33050_p10, %p33044_p2 }
  0x3e   : > { %33054 = shalt.err (!%p33051_p1)
}
  0x3f   : > { %s33055_s25 = scalar_lea.vmem %s202_s20, 4096  ;;  %s33188_s10 = smov [#allocation7]  }
  0x40   : > { %p33056_p8 = scmp.ne.s32.totalorder %s202_s20, %s33055_s25  ;;  %s33060_s19 = sshll.u32 %s33188_s10, 4  ;;  %s33061_s19 = int_to_ptr.vmem [resolvable:$false] %s33060_s19 }
  0x41   : > { %s33062_s23 = scalar_lea.vmem %s33061_s19, 8192  ;;  %p33063_p6 = scmp.lt.s32.totalorder %s202_s20, %s33061_s19 }
  0x42   : > { %p33058_p0 = pnand %p33056_p8, %p33012_p9  ;;  %p33064_p13 = scmp.lt.s32.totalorder %s33062_s23, %s33055_s25 }
  0x44   : > { %p33059_p3 = pneg %p33058_p0  ;;  %p33065_p4 = por %p33064_p13, %p33063_p6 }
  0x46   : > { %p33066_p5 = pnand %p33065_p4, %p33059_p3 }
  0x48   : > { %33069 = shalt.err (!%p33066_p5)
}
  0x49   : > { %32718 = dma.hbm_to_vmem [thread:$0]  (!%p33274_p7), %s33341_s8, 4096, %s202_s20, %s33281_s5  }
  0x4a   : > { %p36176_p9 = scmp.eq.s32.totalorder %s33310_s26, 0  ;;  %p36177_p11 = scmp.ne.s32.totalorder %s36175_s9, 0 }
  0x4b   : > { %s33070_s6 = scalar_lea.hbm %s36162_s0, 128 }
  0x4c   : > { %p36178_p8 = pneg %p36177_p11  ;;  %p33071_p6 = scmp.ne.s32.totalorder %s36162_s0, %s33070_s6 }
  0x4d   : > { %p33077_p2 = scmp.lt.u32.totalorder %s33070_s6, %s36162_s0 }
  0x4e   : > { %p33378_p10 = pnand %p36178_p8, %p36176_p9 }
  0x50   : > { %p33072_p13 = pneg %p33378_p10 }
  0x52   : > { %p33073_p7 = pnand %p33072_p13, %p33071_p6 }
  0x54   : > { %p33074_p1 = pneg %p33073_p7 }
  0x56   : > { %p33079_p12 = pnand %p33077_p2, %p33074_p1 }
  0x58   : > { %33082 = shalt.err (!%p33079_p12)
}
  0x59   : > { %s33083_s20 = scalar_lea.vmem %s156_s11, 128  ;;  %p33091_p5 = scmp.lt.s32.totalorder %s156_s11, %s156_s11 }
  0x5a   : > { %p33084_p0 = scmp.ne.s32.totalorder %s156_s11, %s33083_s20  ;;  %p33092_p9 = scmp.lt.s32.totalorder %s33083_s20, %s33083_s20 }
  0x5c   : > { %p33086_p3 = pnand %p33084_p0, %p33072_p13  ;;  %p33093_p8 = por %p33092_p9, %p33091_p5 }
  0x5e   : > { %p33087_p4 = pneg %p33086_p3 }
  0x60   : > { %p33094_p11 = pnand %p33093_p8, %p33087_p4 }
  0x62   : > { %33097 = shalt.err (!%p33094_p11)
}
  0x63   : > { %32711 = dma.hbm_to_vmem [thread:$0]  (!%p33378_p10), %s36162_s0, 128, %s156_s11, [#allocation3]  }
  0x64   : > { %p36180_p6 = scmp.ne.s32.totalorder %s36175_s9, 0 }
  0x65   : > { %p36181_p7 = scmp.eq.s32.totalorder (!%p36180_p6), %s33310_s26, 0 }
  0x66   : > { %210 = sbr.rel (%p36180_p6) target bundleno = 1919 (0x77f), region = 32 }
  0x6d   : > { %33151 = dma.done.wait (%p36181_p7), [#allocation3], 128   ;;  %p36182_p13 = pmov %p36181_p7 }
  0x6e   : > { %s216_s19 = sand.u32 1, %s33310_s26   ;;  %s218_s23 = sand.u32 1, %s33168_s13  }
  0x6f   : > { %33153 = vsyncadd (%p36182_p13), [#allocation3], 4294967168  ;;  %s33408_s21 = sshll.u32 %s218_s23, 8  ;;  %s217_s11 = scalar_lea.sflag [#allocation6], %s216_s19 }
  0x70   : > { %s33411_s22 = scalar_lea.vmem [#allocation5], %s33408_s21  ;;  %p36183_p11 = scmp.ne.s32.totalorder %s36172_s30, 0 }
  0x72   : > { %33155 = dma.done.wait (%p36183_p11), %s217_s11, 8192  }
  0x73   : > { %33157 = vsyncadd (%p36183_p11), %s217_s11, 4294959104  ;;  %v33189_v0 = vmov 0.0   ;;  %vm395_vm0 = vcmask 1043456   ;;  %v324_v1 = vld [vmem:[#allocation2] sm:$0xff]  ;;  %s33420_s26 = scalar_lea.vmem [#allocation7], %s33408_s21  ;;  %s33190_s9 = smov 124  }
  0x74   : > { %590 = vmatprep.mubr.f32.mxu0 %v33189_v0  ;;  %1055 = vmatprep.mubr.f32.mxu1 %v33189_v0  ;;  %v292_v2 = vld [vmem:[%s33420_s26] sm:$0xff]  ;;  %v293_v3 = vld [vmem:[%s33420_s26 + $0x8] sm:$0xff]  ;;  %vm392_vm1 = vcmask 31744   ;;  %v294_v37 = vld [vmem:[%s33420_s26 + $0x10] sm:$0xff]  ;;  %s35023_s30 = scalar_lea.vmem [#allocation8], %s33408_s21  ;;  %s31993_s27 = sshll.u32 %s33176_s15, 12 }
  0x75   : > { %326 = vrot.lane.b32.xlu0 %v324_v1, %s33190_s9  ;;  %v360_v4 = vcombine.high %v292_v2, %v292_v2  ;;  %v361_v5 = vcombine.high %v293_v3, %v293_v3  ;;  %v396_v6 = vsel %vm395_vm0, %v292_v2, 0  ;;  %v400_v7 = vsel %vm395_vm0, %v293_v3, 0  ;;  %v295_v38 = vld [vmem:[%s33420_s26 + $0x18] sm:$0xff]  ;;  %v296_v2 = vld [vmem:[%s33420_s26 + $0x20] sm:$0xff]  ;;  %v297_v3 = vld [vmem:[%s33420_s26 + $0x28] sm:$0xff]  ;;  %s31851_s6 = sshll.u32 %s35023_s30, 4  ;;  %s36110_s5 = scalar_lea.hbm %s36165_s3, %s31993_s27  ;;  %s36112_s6 = int_to_ptr.vmem [resolvable:$true] %s31851_s6 }
  0x76   : > { %v33428_v10 = vand.u32 4294901760, %v396_v6  ;;  %v33430_v11 = vand.u32 4294901760, %v400_v7  ;;  %v362_v39 = vcombine.high %v294_v37, %v294_v37  ;;  %v363_v40 = vcombine.high %v295_v38, %v295_v38  ;;  %s31835_s15 = scalar_lea.sflag [#allocation4], %s218_s23  ;;  %s33098_s8 = scalar_lea.vmem %s36112_s6, 4096 }
  0x77   : > { %v398_v8 = vsel %vm395_vm0, %v360_v4, 0  ;;  %v402_v9 = vsel %vm395_vm0, %v361_v5, 0  ;;  %v404_v44 = vsel %vm395_vm0, %v294_v37, 0  ;;  %v408_v45 = vsel %vm395_vm0, %v295_v38, 0  ;;  %p33099_p10 = scmp.ne.s32.totalorder %s36112_s6, %s33098_s8  ;;  %p36184_p1 = scmp.ne.s32.totalorder %s36173_s28, 0 }
  0x78   : > { %v33432_v12 = vand.u32 4294901760, %v398_v8  ;;  %v33434_v13 = vand.u32 4294901760, %v402_v9  ;;  %v609_v22 = vsub.f32 %v396_v6, %v33428_v10  ;;  %v1074_v23 = vsub.f32 %v400_v7, %v33430_v11  ;;  %s33194_s20 = smov [#allocation8]  }
  0x79   : > { %v406_v41 = vsel %vm395_vm0, %v362_v39, 0  ;;  %v410_v42 = vsel %vm395_vm0, %v363_v40, 0  ;;  %v33485_v47 = vand.u32 4294901760, %v404_v44  ;;  %v33487_v48 = vand.u32 4294901760, %v408_v45  ;;  %p33100_p2 = pnand %p33099_p10, %p36184_p1  ;;  %s33102_s25 = sshll.u32 %s33194_s20, 4  ;;  %s33103_s25 = int_to_ptr.vmem [resolvable:$false] %s33102_s25 }
  0x7a   : > { %525 = vmatprep.subr.mxu0 %v33432_v12  ;;  %990 = vmatprep.subr.mxu1 %v33434_v13  ;;  %v603_v14 = vsub.f32 %v398_v8, %v33432_v12  ;;  %v1068_v15 = vsub.f32 %v402_v9, %v33434_v13  ;;  %v610_v26 = vand.u32 4294901760, %v609_v22  ;;  %v1075_v27 = vand.u32 4294901760, %v1074_v23  ;;  %s33104_s10 = scalar_lea.vmem %s33103_s25, 8192  ;;  %p33105_p0 = scmp.lt.s32.totalorder %s36112_s6, %s33103_s25 }
  0x7b   : > { %527 = vmatpush1.msra.mxu0 %v33428_v10  ;;  %992 = vmatpush1.msra.mxu1 %v33430_v11  ;;  %v33477_v43 = vand.u32 4294901760, %v406_v41  ;;  %v33481_v46 = vand.u32 4294901760, %v410_v42  ;;  %v33496_v51 = vsub.f32 %v404_v44, %v33485_v47  ;;  %v33499_v52 = vsub.f32 %v408_v45, %v33487_v48  ;;  %p33101_p12 = pneg %p33100_p2  ;;  %p33106_p3 = scmp.lt.s32.totalorder %s33104_s10, %s33098_s8 }
  0x7c   : > { %v604_v16 = vand.u32 4294901760, %v603_v14  ;;  %v1069_v17 = vand.u32 4294901760, %v1068_v15  ;;  %v611_v30 = vsub.f32 %v609_v22, %v610_v26  ;;  %v1076_v31 = vsub.f32 %v1074_v23, %v1075_v27 }
  0x7d   : > { %v1533_v49 = vsub.f32 %v406_v41, %v33477_v43  ;;  %v1998_v50 = vsub.f32 %v410_v42, %v33481_v46  ;;  %v1540_v55 = vand.u32 4294901760, %v33496_v51  ;;  %v2005_v56 = vand.u32 4294901760, %v33499_v52  ;;  %p33107_p4 = por %p33106_p3, %p33105_p0 }
  0x7e   : > { %v605_v18 = vsub.f32 %v603_v14, %v604_v16  ;;  %v1070_v19 = vsub.f32 %v1068_v15, %v1069_v17  ;;  %v612_v34 = vand.u32 4294901760, %v611_v30  ;;  %v1077_v35 = vand.u32 4294901760, %v1076_v31 }
  0x7f   : > { %v1534_v53 = vand.u32 4294901760, %v1533_v49  ;;  %v1999_v54 = vand.u32 4294901760, %v1998_v50  ;;  %v1541_v59 = vsub.f32 %v33496_v51, %v1540_v55  ;;  %v2006_v60 = vsub.f32 %v33499_v52, %v2005_v56  ;;  %p33108_p5 = pnand %p33107_p4, %p33101_p12 }
  0x80   : > { %v606_v20 = vand.u32 4294901760, %v605_v18  ;;  %v1071_v21 = vand.u32 4294901760, %v1070_v19  ;;  %v364_v4 = vcombine.high %v296_v2, %v296_v2  ;;  %v365_v5 = vcombine.high %v297_v3, %v297_v3 }
  0x81   : > { %v1535_v57 = vsub.f32 %v1533_v49, %v1534_v53  ;;  %v2000_v58 = vsub.f32 %v1998_v50, %v1999_v54  ;;  %v1542_v63 = vand.u32 4294901760, %v1541_v59  ;;  %v2007_v1 = vand.u32 4294901760, %v2006_v60 }
  0x82   : > { %607 = vmatprep.subr.mxu0 %v606_v20  ;;  %1072 = vmatprep.subr.mxu1 %v1071_v21  ;;  %v414_v6 = vsel %vm395_vm0, %v364_v4, 0  ;;  %v418_v7 = vsel %vm395_vm0, %v365_v5, 0  ;;  %v412_v9 = vsel %vm395_vm0, %v296_v2, 0 }
  0x83   : > { %v1536_v61 = vand.u32 4294901760, %v1535_v57  ;;  %v2001_v62 = vand.u32 4294901760, %v2000_v58  ;;  %v33541_v8 = vand.u32 4294901760, %v414_v6 }
  0xe7   : > { %v327_v24 = vpop.permute.xlu0 %326 }
  0xe8   : > { %v393_v25 = vsel %vm392_vm1, %v327_v24, 0 }
  0xe9   : > { %v33445_v28 = vand.u32 4294901760, %v393_v25 }
  0xeb   : > { %v33448_v29 = vsub.f32 %v393_v25, %v33445_v28 }
  0xed   : > { %v33451_v32 = vand.u32 4294901760, %v33448_v29 }
  0xef   : > { %v594_v33 = vsub.f32 %v33448_v29, %v33451_v32 }
  0xf1   : > { %v33455_v36 = vand.u32 4294901760, %v594_v33  ;;  %v298_v33 = vld [vmem:[%s33420_s26 + $0x30] sm:$0xff] }
  0xf2   : > { %v420_v41 = vsel %vm395_vm0, %v298_v33, 0 }
  0xf3   : > { %596 = vmatmul.mubr.f32.vlgmr.msra.gmra.mrb[0].mxu0 %v33455_v36  ;;  %1061 = vmatmul.mubr.f32.vlgmr.msra.gmra.mrb[0].mxu1 %v33455_v36  ;;  %v33613_v44 = vand.u32 4294901760, %v420_v41 }
  0xf4   : > { %613 = vmatpush1.msra.mxu0 %v612_v34  ;;  %1078 = vmatpush1.msra.mxu1 %v1077_v35  ;;  %v299_v34 = vld [vmem:[%s33420_s26 + $0x38] sm:$0xff]  ;;  %v366_v35 = vcombine.high %v298_v33, %v298_v33 }
  0xf5   : > { %676 = vmatprep.mubr.f32.mxu0 %v33189_v0  ;;  %686 = vmatprep.subr.mxu0 %v603_v14  ;;  %v2463_v14 = vsub.f32 %v414_v6, %v33541_v8  ;;  %v367_v37 = vcombine.high %v299_v34, %v299_v34  ;;  %v424_v42 = vsel %vm395_vm0, %v299_v34, 0 }
  0xf6   : > { %1141 = vmatprep.mubr.f32.mxu1 %v33189_v0  ;;  %1151 = vmatprep.subr.mxu1 %v1068_v15  ;;  %v422_v38 = vsel %vm395_vm0, %v366_v35, 0  ;;  %v33615_v45 = vand.u32 4294901760, %v424_v42 }
  0xf7   : > { %v2464_v18 = vand.u32 4294901760, %v2463_v14  ;;  %v426_v39 = vsel %vm395_vm0, %v367_v37, 0  ;;  %v33605_v40 = vand.u32 4294901760, %v422_v38 }
  0xfb   : > { %678 = vmatmul.mubr.f32.vlgmr.msra.gmra.mrb[0].mxu0 %v33445_v28  ;;  %1143 = vmatmul.mubr.f32.vlgmr.msra.gmra.mrb[0].mxu1 %v33445_v28 }
  0xfc   : > { %689 = vmatpush1.msra.mxu0 %v609_v22  ;;  %1154 = vmatpush1.msra.mxu1 %v1074_v23  ;;  %v2465_v22 = vsub.f32 %v2463_v14, %v2464_v18 }
  0xfd   : > { %752 = vmatprep.mubr.f32.mxu0 %v33189_v0  ;;  %762 = vmatprep.subr.mxu0 %v33432_v12 }
  0xfe   : > { %1217 = vmatprep.mubr.f32.mxu1 %v33189_v0  ;;  %1227 = vmatprep.subr.mxu1 %v33434_v13 }
 0x103   : > { %755 = vmatmul.mubr.f32.vlgmr.msra.gmra.mrb[0].mxu0 %v33448_v29  ;;  %1220 = vmatmul.mubr.f32.vlgmr.msra.gmra.mrb[0].mxu1 %v33448_v29 }
 0x104   : > { %764 = vmatpush1.msra.mxu0 %v33428_v10  ;;  %1229 = vmatpush1.msra.mxu1 %v33430_v11 }
 0x105   : > { %827 = vmatprep.mubr.f32.mxu0 %v33189_v0  ;;  %840 = vmatprep.subr.mxu0 %v604_v16 }
 0x106   : > { %1292 = vmatprep.mubr.f32.mxu1 %v33189_v0  ;;  %1305 = vmatprep.subr.mxu1 %v1069_v17 }
 0x10b   : > { %831 = vmatmul.mubr.f32.vlgmr.msra.gmra.mrb[0].mxu0 %v33451_v32  ;;  %1296 = vmatmul.mubr.f32.vlgmr.msra.gmra.mrb[0].mxu1 %v33451_v32 }
 0x10c   : > { %844 = vmatpush1.msra.mxu0 %v610_v26  ;;  %1309 = vmatpush1.msra.mxu1 %v1075_v27  ;;  %v2466_v26 = vand.u32 4294901760, %v2465_v22 }
 0x10d   : > { %907 = vmatprep.mubr.f32.mxu0 %v33189_v0  ;;  %916 = vmatprep.subr.mxu0 %v33432_v12  ;;  %v33549_v12 = vand.u32 4294901760, %v412_v9 }
 0x10e   : > { %1372 = vmatprep.mubr.f32.mxu1 %v33189_v0  ;;  %1381 = vmatprep.subr.mxu1 %v33434_v13 }
 0x10f   : > { %v33560_v16 = vsub.f32 %v412_v9, %v33549_v12 }
 0x111   : > { %v2470_v20 = vand.u32 4294901760, %v33560_v16 }
 0x113   : > { %909 = vmatmul.mubr.f32.vlgmr.msra.gmra.mrb[0].mxu0 %v33445_v28  ;;  %1374 = vmatmul.mubr.f32.vlgmr.msra.gmra.mrb[0].mxu1 %v33445_v28  ;;  %v2471_v24 = vsub.f32 %v33560_v16, %v2470_v20 }
 0x114   : > { %918 = vmatpush1.msra.mxu0 %v33428_v10  ;;  %1383 = vmatpush1.msra.mxu1 %v33430_v11  ;;  %v416_v10 = vsel %vm395_vm0, %v297_v3, 0  ;;  %v33545_v11 = vand.u32 4294901760, %v418_v7 }
 0x115   : > { %981 = vmatprep.mubr.f32.mxu0 %v33189_v0  ;;  %1446 = vmatprep.mubr.f32.mxu1 %v33189_v0  ;;  %v33551_v13 = vand.u32 4294901760, %v416_v10  ;;  %v2472_v30 = vand.u32 4294901760, %v2471_v24 }
 0x116   : > { %1455 = vmatprep.subr.mxu0 %v33477_v43  ;;  %1920 = vmatprep.subr.mxu1 %v33481_v46  ;;  %v2928_v15 = vsub.f32 %v418_v7, %v33545_v11 }
 0x117   : > { %v33563_v17 = vsub.f32 %v416_v10, %v33551_v13 }
 0x118   : > { %v2929_v19 = vand.u32 4294901760, %v2928_v15 }
 0x119   : > { %v2935_v21 = vand.u32 4294901760, %v33563_v17 }
 0x11a   : > { %v2930_v23 = vsub.f32 %v2928_v15, %v2929_v19 }
 0x11b   : > { %983 = vmatmul.mubr.f32.vlgmr.msra.gmra.mrb[0].mxu0 %v33445_v28  ;;  %1448 = vmatmul.mubr.f32.vlgmr.msra.gmra.mrb[0].mxu1 %v33445_v28  ;;  %v2936_v25 = vsub.f32 %v33563_v17, %v2935_v21 }
 0x11c   : > { %1457 = vmatpush1.msra.mxu0 %v33485_v47  ;;  %1922 = vmatpush1.msra.mxu1 %v33487_v48  ;;  %v2931_v27 = vand.u32 4294901760, %v2930_v23 }
 0x11d   : > { %1520 = vmatprep.mubr.f32.mxu0 %v33189_v0  ;;  %1537 = vmatprep.subr.mxu0 %v1536_v61  ;;  %v2937_v31 = vand.u32 4294901760, %v2936_v25 }
 0x11e   : > { %1985 = vmatprep.mubr.f32.mxu1 %v33189_v0  ;;  %2002 = vmatprep.subr.mxu1 %v2001_v62  ;;  %v300_v62 = vld [vmem:[%s33420_s26 + $0x40] sm:$0xff] }
 0x11f   : > { %1526 = vmatmul.mubr.f32.vlgmr.msra.gmra.mrb[2].mxu0 %v33455_v36  ;;  %1991 = vmatmul.mubr.f32.vlgmr.msra.gmra.mrb[2].mxu1 %v33455_v36  ;;  %v428_v6 = vsel %vm395_vm0, %v300_v62, 0 }
 0x120   : > { %1543 = vmatpush1.msra.mxu0 %v1542_v63  ;;  %2008 = vmatpush1.msra.mxu1 %v2007_v1  ;;  %v301_v63 = vld [vmem:[%s33420_s26 + $0x48] sm:$0xff]  ;;  %v368_v1 = vcombine.high %v300_v62, %v300_v62  ;;  %v33677_v9 = vand.u32 4294901760, %v428_v6 }
 0x121   : > { %1606 = vmatprep.mubr.f32.mxu0 %v33189_v0  ;;  %1616 = vmatprep.subr.mxu0 %v1533_v49  ;;  %v33627_v49 = vsub.f32 %v424_v42, %v33615_v45  ;;  %v369_v2 = vcombine.high %v301_v63, %v301_v63  ;;  %v432_v7 = vsel %vm395_vm0, %v301_v63, 0 }
 0x122   : > { %2071 = vmatprep.mubr.f32.mxu1 %v33189_v0  ;;  %2081 = vmatprep.subr.mxu1 %v1998_v50  ;;  %v430_v3 = vsel %vm395_vm0, %v368_v1, 0  ;;  %v33679_v10 = vand.u32 4294901760, %v432_v7 }
 0x123   : > { %v434_v4 = vsel %vm395_vm0, %v369_v2, 0  ;;  %v33669_v5 = vand.u32 4294901760, %v430_v3 }
 0x127   : > { %1608 = vmatmul.mubr.f32.vlgmr.msra.gmra.mrb[2].mxu0 %v33445_v28  ;;  %2073 = vmatmul.mubr.f32.vlgmr.msra.gmra.mrb[2].mxu1 %v33445_v28 }
 0x128   : > { %1619 = vmatpush1.msra.mxu0 %v33496_v51  ;;  %2084 = vmatpush1.msra.mxu1 %v33499_v52 }
 0x129   : > { %1682 = vmatprep.mubr.f32.mxu0 %v33189_v0  ;;  %1692 = vmatprep.subr.mxu0 %v33477_v43 }
 0x12a   : > { %2147 = vmatprep.mubr.f32.mxu1 %v33189_v0  ;;  %2157 = vmatprep.subr.mxu1 %v33481_v46 }
 0x12f   : > { %1685 = vmatmul.mubr.f32.vlgmr.msra.gmra.mrb[2].mxu0 %v33448_v29  ;;  %2150 = vmatmul.mubr.f32.vlgmr.msra.gmra.mrb[2].mxu1 %v33448_v29 }
 0x130   : > { %1694 = vmatpush1.msra.mxu0 %v33485_v47  ;;  %2159 = vmatpush1.msra.mxu1 %v33487_v48 }
 0x131   : > { %1757 = vmatprep.mubr.f32.mxu0 %v33189_v0  ;;  %1770 = vmatprep.subr.mxu0 %v1534_v53  ;;  %v3865_v53 = vand.u32 4294901760, %v33627_v49 }
 0x132   : > { %2222 = vmatprep.mubr.f32.mxu1 %v33189_v0  ;;  %2235 = vmatprep.subr.mxu1 %v1999_v54 }
 0x133   : > { %v3866_v57 = vsub.f32 %v33627_v49, %v3865_v53 }
 0x135   : > { %v3867_v61 = vand.u32 4294901760, %v3866_v57 }
 0x137   : > { %1761 = vmatmul.mubr.f32.vlgmr.msra.gmra.mrb[2].mxu0 %v33451_v32  ;;  %2226 = vmatmul.mubr.f32.vlgmr.msra.gmra.mrb[2].mxu1 %v33451_v32 }
 0x138   : > { %1774 = vmatpush1.msra.mxu0 %v1540_v55  ;;  %2239 = vmatpush1.msra.mxu1 %v2005_v56 }
 0x139   : > { %1837 = vmatprep.mubr.f32.mxu0 %v33189_v0  ;;  %1846 = vmatprep.subr.mxu0 %v33477_v43  ;;  %v33609_v43 = vand.u32 4294901760, %v426_v39 }
 0x13a   : > { %2302 = vmatprep.mubr.f32.mxu1 %v33189_v0  ;;  %2311 = vmatprep.subr.mxu1 %v33481_v46  ;;  %v3393_v46 = vsub.f32 %v422_v38, %v33605_v40 }
 0x13c   : > { %v3394_v50 = vand.u32 4294901760, %v3393_v46 }
 0x13e   : > { %v3395_v54 = vsub.f32 %v3393_v46, %v3394_v50 }
 0x13f   : > { %1839 = vmatmul.mubr.f32.vlgmr.msra.gmra.mrb[2].mxu0 %v33445_v28  ;;  %2304 = vmatmul.mubr.f32.vlgmr.msra.gmra.mrb[2].mxu1 %v33445_v28 }
 0x140   : > { %1848 = vmatpush1.msra.mxu0 %v33485_v47  ;;  %2313 = vmatpush1.msra.mxu1 %v33487_v48  ;;  %v3858_v47 = vsub.f32 %v426_v39, %v33609_v43  ;;  %v33624_v48 = vsub.f32 %v420_v41, %v33613_v44  ;;  %v3396_v58 = vand.u32 4294901760, %v3395_v54 }
 0x141   : > { %1911 = vmatprep.mubr.f32.mxu0 %v33189_v0  ;;  %2376 = vmatprep.mubr.f32.mxu1 %v33189_v0 }
 0x142   : > { %2385 = vmatprep.subr.mxu0 %v33541_v8  ;;  %2850 = vmatprep.subr.mxu1 %v33545_v11  ;;  %v3859_v51 = vand.u32 4294901760, %v3858_v47  ;;  %v3400_v52 = vand.u32 4294901760, %v33624_v48 }
 0x144   : > { %v3860_v55 = vsub.f32 %v3858_v47, %v3859_v51  ;;  %v3401_v56 = vsub.f32 %v33624_v48, %v3400_v52 }
 0x146   : > { %v3861_v59 = vand.u32 4294901760, %v3860_v55  ;;  %v3402_v60 = vand.u32 4294901760, %v3401_v56 }
 0x147   : > { %1913 = vmatmul.mubr.f32.vlgmr.msra.gmra.mrb[2].mxu0 %v33445_v28  ;;  %2378 = vmatmul.mubr.f32.vlgmr.msra.gmra.mrb[2].mxu1 %v33445_v28 }
 0x148   : > { %2387 = vmatpush1.msra.mxu0 %v33549_v12  ;;  %2852 = vmatpush1.msra.mxu1 %v33551_v13 }
 0x149   : > { %2450 = vmatprep.mubr.f32.mxu0 %v33189_v0  ;;  %2467 = vmatprep.subr.mxu0 %v2466_v26 }
 0x14a   : > { %2915 = vmatprep.mubr.f32.mxu1 %v33189_v0  ;;  %2932 = vmatprep.subr.mxu1 %v2931_v27  ;;  %v302_v27 = vld [vmem:[%s33420_s26 + $0x50] sm:$0xff] }
 0x14b   : > { %2456 = vmatmul.mubr.f32.vlgmr.msra.gmra.mrb[4].mxu0 %v33455_v36  ;;  %2921 = vmatmul.mubr.f32.vlgmr.msra.gmra.mrb[4].mxu1 %v33455_v36  ;;  %v436_v38 = vsel %vm395_vm0, %v302_v27, 0 }
 0x14c   : > { %2473 = vmatpush1.msra.mxu0 %v2472_v30  ;;  %2938 = vmatpush1.msra.mxu1 %v2937_v31  ;;  %v303_v30 = vld [vmem:[%s33420_s26 + $0x58] sm:$0xff]  ;;  %v370_v31 = vcombine.high %v302_v27, %v302_v27  ;;  %v33741_v41 = vand.u32 4294901760, %v436_v38 }
 0x14d   : > { %2536 = vmatprep.mubr.f32.mxu0 %v33189_v0  ;;  %2546 = vmatprep.subr.mxu0 %v2463_v14  ;;  %v33691_v14 = vsub.f32 %v432_v7, %v33679_v10  ;;  %v371_v33 = vcombine.high %v303_v30, %v303_v30  ;;  %v440_v39 = vsel %vm395_vm0, %v303_v30, 0 }
 0x14e   : > { %3001 = vmatprep.mubr.f32.mxu1 %v33189_v0  ;;  %3011 = vmatprep.subr.mxu1 %v2928_v15  ;;  %v438_v34 = vsel %vm395_vm0, %v370_v31, 0  ;;  %v33743_v42 = vand.u32 4294901760, %v440_v39 }
 0x14f   : > { %v442_v35 = vsel %vm395_vm0, %v371_v33, 0  ;;  %v33733_v37 = vand.u32 4294901760, %v438_v34 }
 0x153   : > { %2538 = vmatmul.mubr.f32.vlgmr.msra.gmra.mrb[4].mxu0 %v33445_v28  ;;  %3003 = vmatmul.mubr.f32.vlgmr.msra.gmra.mrb[4].mxu1 %v33445_v28 }
 0x154   : > { %2549 = vmatpush1.msra.mxu0 %v33560_v16  ;;  %3014 = vmatpush1.msra.mxu1 %v33563_v17 }
 0x155   : > { %2612 = vmatprep.mubr.f32.mxu0 %v33189_v0  ;;  %2622 = vmatprep.subr.mxu0 %v33541_v8 }
 0x156   : > { %3077 = vmatprep.mubr.f32.mxu1 %v33189_v0  ;;  %3087 = vmatprep.subr.mxu1 %v33545_v11 }
 0x15b   : > { %2615 = vmatmul.mubr.f32.vlgmr.msra.gmra.mrb[4].mxu0 %v33448_v29  ;;  %3080 = vmatmul.mubr.f32.vlgmr.msra.gmra.mrb[4].mxu1 %v33448_v29 }
 0x15c   : > { %2624 = vmatpush1.msra.mxu0 %v33549_v12  ;;  %3089 = vmatpush1.msra.mxu1 %v33551_v13 }
 0x15d   : > { %2687 = vmatprep.mubr.f32.mxu0 %v33189_v0  ;;  %2700 = vmatprep.subr.mxu0 %v2464_v18  ;;  %v4795_v18 = vand.u32 4294901760, %v33691_v14 }
 0x15e   : > { %3152 = vmatprep.mubr.f32.mxu1 %v33189_v0  ;;  %3165 = vmatprep.subr.mxu1 %v2929_v19 }
 0x15f   : > { %v4796_v22 = vsub.f32 %v33691_v14, %v4795_v18 }
 0x161   : > { %v4797_v26 = vand.u32 4294901760, %v4796_v22 }
 0x163   : > { %2691 = vmatmul.mubr.f32.vlgmr.msra.gmra.mrb[4].mxu0 %v33451_v32  ;;  %3156 = vmatmul.mubr.f32.vlgmr.msra.gmra.mrb[4].mxu1 %v33451_v32 }
 0x164   : > { %2704 = vmatpush1.msra.mxu0 %v2470_v20  ;;  %3169 = vmatpush1.msra.mxu1 %v2935_v21 }
 0x165   : > { %2767 = vmatprep.mubr.f32.mxu0 %v33189_v0  ;;  %2776 = vmatprep.subr.mxu0 %v33541_v8  ;;  %v33673_v8 = vand.u32 4294901760, %v434_v4 }
 0x166   : > { %3232 = vmatprep.mubr.f32.mxu1 %v33189_v0  ;;  %3241 = vmatprep.subr.mxu1 %v33545_v11  ;;  %v4323_v11 = vsub.f32 %v430_v3, %v33669_v5 }
 0x168   : > { %v4324_v15 = vand.u32 4294901760, %v4323_v11 }
 0x16a   : > { %v4325_v19 = vsub.f32 %v4323_v11, %v4324_v15 }
 0x16b   : > { %2769 = vmatmul.mubr.f32.vlgmr.msra.gmra.mrb[4].mxu0 %v33445_v28  ;;  %3234 = vmatmul.mubr.f32.vlgmr.msra.gmra.mrb[4].mxu1 %v33445_v28 }
 0x16c   : > { %2778 = vmatpush1.msra.mxu0 %v33549_v12  ;;  %3243 = vmatpush1.msra.mxu1 %v33551_v13  ;;  %v4788_v12 = vsub.f32 %v434_v4, %v33673_v8  ;;  %v33688_v13 = vsub.f32 %v428_v6, %v33677_v9  ;;  %v4326_v23 = vand.u32 4294901760, %v4325_v19 }
 0x16d   : > { %2841 = vmatprep.mubr.f32.mxu0 %v33189_v0  ;;  %3306 = vmatprep.mubr.f32.mxu1 %v33189_v0 }
 0x16e   : > { %3315 = vmatprep.subr.mxu0 %v33605_v40  ;;  %3780 = vmatprep.subr.mxu1 %v33609_v43  ;;  %v4789_v16 = vand.u32 4294901760, %v4788_v12  ;;  %v4330_v17 = vand.u32 4294901760, %v33688_v13 }
 0x170   : > { %v4790_v20 = vsub.f32 %v4788_v12, %v4789_v16  ;;  %v4331_v21 = vsub.f32 %v33688_v13, %v4330_v17 }
 0x172   : > { %v4791_v24 = vand.u32 4294901760, %v4790_v20  ;;  %v4332_v25 = vand.u32 4294901760, %v4331_v21 }
 0x173   : > { %2843 = vmatmul.mubr.f32.vlgmr.msra.gmra.mrb[4].mxu0 %v33445_v28  ;;  %3308 = vmatmul.mubr.f32.vlgmr.msra.gmra.mrb[4].mxu1 %v33445_v28 }
 0x174   : > { %3317 = vmatpush1.msra.mxu0 %v33613_v44  ;;  %3782 = vmatpush1.msra.mxu1 %v33615_v45 }
 0x175   : > { %3380 = vmatprep.mubr.f32.mxu0 %v33189_v0  ;;  %3397 = vmatprep.subr.mxu0 %v3396_v58 }
 0x176   : > { %3845 = vmatprep.mubr.f32.mxu1 %v33189_v0  ;;  %3862 = vmatprep.subr.mxu1 %v3861_v59  ;;  %v304_v59 = vld [vmem:[%s33420_s26 + $0x60] sm:$0xff] }
 0x177   : > { %3386 = vmatmul.mubr.f32.vlgmr.msra.gmra.mrb[6].mxu0 %v33455_v36  ;;  %3851 = vmatmul.mubr.f32.vlgmr.msra.gmra.mrb[6].mxu1 %v33455_v36  ;;  %v444_v3 = vsel %vm395_vm0, %v304_v59, 0 }
 0x178   : > { %3403 = vmatpush1.msra.mxu0 %v3402_v60  ;;  %3868 = vmatpush1.msra.mxu1 %v3867_v61  ;;  %v305_v60 = vld [vmem:[%s33420_s26 + $0x68] sm:$0xff]  ;;  %v372_v61 = vcombine.high %v304_v59, %v304_v59  ;;  %v33805_v6 = vand.u32 4294901760, %v444_v3 }
 0x179   : > { %3466 = vmatprep.mubr.f32.mxu0 %v33189_v0  ;;  %3476 = vmatprep.subr.mxu0 %v3393_v46  ;;  %v33755_v46 = vsub.f32 %v440_v39, %v33743_v42  ;;  %v373_v62 = vcombine.high %v305_v60, %v305_v60  ;;  %v448_v4 = vsel %vm395_vm0, %v305_v60, 0 }
 0x17a   : > { %3931 = vmatprep.mubr.f32.mxu1 %v33189_v0  ;;  %3941 = vmatprep.subr.mxu1 %v3858_v47  ;;  %v446_v63 = vsel %vm395_vm0, %v372_v61, 0  ;;  %v33807_v7 = vand.u32 4294901760, %v448_v4 }
 0x17b   : > { %v450_v1 = vsel %vm395_vm0, %v373_v62, 0  ;;  %v33797_v2 = vand.u32 4294901760, %v446_v63 }
 0x17f   : > { %3468 = vmatmul.mubr.f32.vlgmr.msra.gmra.mrb[6].mxu0 %v33445_v28  ;;  %3933 = vmatmul.mubr.f32.vlgmr.msra.gmra.mrb[6].mxu1 %v33445_v28 }
 0x180   : > { %3479 = vmatpush1.msra.mxu0 %v33624_v48  ;;  %3944 = vmatpush1.msra.mxu1 %v33627_v49 }
 0x181   : > { %3542 = vmatprep.mubr.f32.mxu0 %v33189_v0  ;;  %3552 = vmatprep.subr.mxu0 %v33605_v40 }
 0x182   : > { %4007 = vmatprep.mubr.f32.mxu1 %v33189_v0  ;;  %4017 = vmatprep.subr.mxu1 %v33609_v43 }
 0x187   : > { %3545 = vmatmul.mubr.f32.vlgmr.msra.gmra.mrb[6].mxu0 %v33448_v29  ;;  %4010 = vmatmul.mubr.f32.vlgmr.msra.gmra.mrb[6].mxu1 %v33448_v29 }
 0x188   : > { %3554 = vmatpush1.msra.mxu0 %v33613_v44  ;;  %4019 = vmatpush1.msra.mxu1 %v33615_v45 }
 0x189   : > { %3617 = vmatprep.mubr.f32.mxu0 %v33189_v0  ;;  %3630 = vmatprep.subr.mxu0 %v3394_v50  ;;  %v5725_v50 = vand.u32 4294901760, %v33755_v46 }
 0x18a   : > { %4082 = vmatprep.mubr.f32.mxu1 %v33189_v0  ;;  %4095 = vmatprep.subr.mxu1 %v3859_v51 }
 0x18b   : > { %v5726_v54 = vsub.f32 %v33755_v46, %v5725_v50 }
 0x18d   : > { %v5727_v58 = vand.u32 4294901760, %v5726_v54 }
 0x18f   : > { %3621 = vmatmul.mubr.f32.vlgmr.msra.gmra.mrb[6].mxu0 %v33451_v32  ;;  %4086 = vmatmul.mubr.f32.vlgmr.msra.gmra.mrb[6].mxu1 %v33451_v32 }
 0x190   : > { %3634 = vmatpush1.msra.mxu0 %v3400_v52  ;;  %4099 = vmatpush1.msra.mxu1 %v3865_v53 }
 0x191   : > { %3697 = vmatprep.mubr.f32.mxu0 %v33189_v0  ;;  %3706 = vmatprep.subr.mxu0 %v33605_v40  ;;  %v33737_v40 = vand.u32 4294901760, %v442_v35 }
 0x192   : > { %4162 = vmatprep.mubr.f32.mxu1 %v33189_v0  ;;  %4171 = vmatprep.subr.mxu1 %v33609_v43  ;;  %v5253_v43 = vsub.f32 %v438_v34, %v33733_v37 }
 0x194   : > { %v5254_v47 = vand.u32 4294901760, %v5253_v43 }
 0x196   : > { %v5255_v51 = vsub.f32 %v5253_v43, %v5254_v47 }
 0x197   : > { %3699 = vmatmul.mubr.f32.vlgmr.msra.gmra.mrb[6].mxu0 %v33445_v28  ;;  %4164 = vmatmul.mubr.f32.vlgmr.msra.gmra.mrb[6].mxu1 %v33445_v28 }
 0x198   : > { %3708 = vmatpush1.msra.mxu0 %v33613_v44  ;;  %4173 = vmatpush1.msra.mxu1 %v33615_v45  ;;  %v5718_v44 = vsub.f32 %v442_v35, %v33737_v40  ;;  %v33752_v45 = vsub.f32 %v436_v38, %v33741_v41  ;;  %v5256_v55 = vand.u32 4294901760, %v5255_v51 }
 0x199   : > { %3771 = vmatprep.mubr.f32.mxu0 %v33189_v0  ;;  %4236 = vmatprep.mubr.f32.mxu1 %v33189_v0 }
 0x19a   : > { %4245 = vmatprep.subr.mxu0 %v33669_v5  ;;  %4710 = vmatprep.subr.mxu1 %v33673_v8  ;;  %v5719_v48 = vand.u32 4294901760, %v5718_v44  ;;  %v5260_v49 = vand.u32 4294901760, %v33752_v45 }
 0x19c   : > { %v5720_v52 = vsub.f32 %v5718_v44, %v5719_v48  ;;  %v5261_v53 = vsub.f32 %v33752_v45, %v5260_v49 }
 0x19e   : > { %v5721_v56 = vand.u32 4294901760, %v5720_v52  ;;  %v5262_v57 = vand.u32 4294901760, %v5261_v53 }
 0x19f   : > { %3773 = vmatmul.mubr.f32.vlgmr.msra.gmra.mrb[6].mxu0 %v33445_v28  ;;  %4238 = vmatmul.mubr.f32.vlgmr.msra.gmra.mrb[6].mxu1 %v33445_v28 }
 0x1a0   : > { %4247 = vmatpush1.msra.mxu0 %v33677_v9  ;;  %4712 = vmatpush1.msra.mxu1 %v33679_v10 }
 0x1a1   : > { %4310 = vmatprep.mubr.f32.mxu0 %v33189_v0  ;;  %4327 = vmatprep.subr.mxu0 %v4326_v23 }
 0x1a2   : > { %4775 = vmatprep.mubr.f32.mxu1 %v33189_v0  ;;  %4792 = vmatprep.subr.mxu1 %v4791_v24  ;;  %v306_v24 = vld [vmem:[%s33420_s26 + $0x70] sm:$0xff] }
 0x1a3   : > { %4316 = vmatmul.mubr.f32.vlgmr.msra.gmra.mrb[8].mxu0 %v33455_v36  ;;  %4781 = vmatmul.mubr.f32.vlgmr.msra.gmra.mrb[8].mxu1 %v33455_v36  ;;  %v452_v34 = vsel %vm395_vm0, %v306_v24, 0 }
 0x1a4   : > { %4333 = vmatpush1.msra.mxu0 %v4332_v25  ;;  %4798 = vmatpush1.msra.mxu1 %v4797_v26  ;;  %v307_v25 = vld [vmem:[%s33420_s26 + $0x78] sm:$0xff]  ;;  %v374_v26 = vcombine.high %v306_v24, %v306_v24  ;;  %v33869_v38 = vand.u32 4294901760, %v452_v34 }
 0x1a5   : > { %4396 = vmatprep.mubr.f32.mxu0 %v33189_v0  ;;  %4406 = vmatprep.subr.mxu0 %v4323_v11  ;;  %v33819_v11 = vsub.f32 %v448_v4, %v33807_v7  ;;  %v375_v27 = vcombine.high %v307_v25, %v307_v25  ;;  %v456_v35 = vsel %vm395_vm0, %v307_v25, 0 }
 0x1a6   : > { %4861 = vmatprep.mubr.f32.mxu1 %v33189_v0  ;;  %4871 = vmatprep.subr.mxu1 %v4788_v12  ;;  %v454_v30 = vsel %vm395_vm0, %v374_v26, 0  ;;  %v33871_v39 = vand.u32 4294901760, %v456_v35 }
 0x1a7   : > { %v458_v31 = vsel %vm395_vm0, %v375_v27, 0  ;;  %v33861_v33 = vand.u32 4294901760, %v454_v30 }
 0x1ab   : > { %4398 = vmatmul.mubr.f32.vlgmr.msra.gmra.mrb[8].mxu0 %v33445_v28  ;;  %4863 = vmatmul.mubr.f32.vlgmr.msra.gmra.mrb[8].mxu1 %v33445_v28 }
 0x1ac   : > { %4409 = vmatpush1.msra.mxu0 %v33688_v13  ;;  %4874 = vmatpush1.msra.mxu1 %v33691_v14 }
 0x1ad   : > { %4472 = vmatprep.mubr.f32.mxu0 %v33189_v0  ;;  %4482 = vmatprep.subr.mxu0 %v33669_v5 }
 0x1ae   : > { %4937 = vmatprep.mubr.f32.mxu1 %v33189_v0  ;;  %4947 = vmatprep.subr.mxu1 %v33673_v8 }
 0x1b3   : > { %4475 = vmatmul.mubr.f32.vlgmr.msra.gmra.mrb[8].mxu0 %v33448_v29  ;;  %4940 = vmatmul.mubr.f32.vlgmr.msra.gmra.mrb[8].mxu1 %v33448_v29 }
 0x1b4   : > { %4484 = vmatpush1.msra.mxu0 %v33677_v9  ;;  %4949 = vmatpush1.msra.mxu1 %v33679_v10 }
 0x1b5   : > { %4547 = vmatprep.mubr.f32.mxu0 %v33189_v0  ;;  %4560 = vmatprep.subr.mxu0 %v4324_v15  ;;  %v6655_v15 = vand.u32 4294901760, %v33819_v11 }
 0x1b6   : > { %5012 = vmatprep.mubr.f32.mxu1 %v33189_v0  ;;  %5025 = vmatprep.subr.mxu1 %v4789_v16 }
 0x1b7   : > { %v6656_v19 = vsub.f32 %v33819_v11, %v6655_v15 }
 0x1b9   : > { %v6657_v23 = vand.u32 4294901760, %v6656_v19 }
 0x1bb   : > { %4551 = vmatmul.mubr.f32.vlgmr.msra.gmra.mrb[8].mxu0 %v33451_v32  ;;  %5016 = vmatmul.mubr.f32.vlgmr.msra.gmra.mrb[8].mxu1 %v33451_v32 }
 0x1bc   : > { %4564 = vmatpush1.msra.mxu0 %v4330_v17  ;;  %5029 = vmatpush1.msra.mxu1 %v4795_v18 }
 0x1bd   : > { %4627 = vmatprep.mubr.f32.mxu0 %v33189_v0  ;;  %4636 = vmatprep.subr.mxu0 %v33669_v5  ;;  %v33801_v5 = vand.u32 4294901760, %v450_v1 }
 0x1be   : > { %5092 = vmatprep.mubr.f32.mxu1 %v33189_v0  ;;  %5101 = vmatprep.subr.mxu1 %v33673_v8  ;;  %v6183_v8 = vsub.f32 %v446_v63, %v33797_v2 }
 0x1c0   : > { %v6184_v12 = vand.u32 4294901760, %v6183_v8 }
 0x1c2   : > { %v6185_v16 = vsub.f32 %v6183_v8, %v6184_v12 }
 0x1c3   : > { %4629 = vmatmul.mubr.f32.vlgmr.msra.gmra.mrb[8].mxu0 %v33445_v28  ;;  %5094 = vmatmul.mubr.f32.vlgmr.msra.gmra.mrb[8].mxu1 %v33445_v28 }
 0x1c4   : > { %4638 = vmatpush1.msra.mxu0 %v33677_v9  ;;  %5103 = vmatpush1.msra.mxu1 %v33679_v10  ;;  %v6648_v9 = vsub.f32 %v450_v1, %v33801_v5  ;;  %v33816_v10 = vsub.f32 %v444_v3, %v33805_v6  ;;  %v6186_v20 = vand.u32 4294901760, %v6185_v16 }
 0x1c5   : > { %4701 = vmatprep.mubr.f32.mxu0 %v33189_v0  ;;  %5166 = vmatprep.mubr.f32.mxu1 %v33189_v0 }
 0x1c6   : > { %5175 = vmatprep.subr.mxu0 %v33733_v37  ;;  %5640 = vmatprep.subr.mxu1 %v33737_v40  ;;  %v6649_v13 = vand.u32 4294901760, %v6648_v9  ;;  %v6190_v14 = vand.u32 4294901760, %v33816_v10 }
 0x1c8   : > { %v6650_v17 = vsub.f32 %v6648_v9, %v6649_v13  ;;  %v6191_v18 = vsub.f32 %v33816_v10, %v6190_v14 }
 0x1ca   : > { %v6651_v21 = vand.u32 4294901760, %v6650_v17  ;;  %v6192_v22 = vand.u32 4294901760, %v6191_v18 }
 0x1cb   : > { %4703 = vmatmul.mubr.f32.vlgmr.msra.gmra.mrb[8].mxu0 %v33445_v28  ;;  %5168 = vmatmul.mubr.f32.vlgmr.msra.gmra.mrb[8].mxu1 %v33445_v28 }
 0x1cc   : > { %5177 = vmatpush1.msra.mxu0 %v33741_v41  ;;  %5642 = vmatpush1.msra.mxu1 %v33743_v42 }
 0x1cd   : > { %5240 = vmatprep.mubr.f32.mxu0 %v33189_v0  ;;  %5257 = vmatprep.subr.mxu0 %v5256_v55 }
 0x1ce   : > { %5705 = vmatprep.mubr.f32.mxu1 %v33189_v0  ;;  %5722 = vmatprep.subr.mxu1 %v5721_v56  ;;  %v308_v56 = vld [vmem:[%s33420_s26 + $0x80] sm:$0xff] }
 0x1cf   : > { %5246 = vmatmul.mubr.f32.vlgmr.msra.gmra.mrb[10].mxu0 %v33455_v36  ;;  %5711 = vmatmul.mubr.f32.vlgmr.msra.gmra.mrb[10].mxu1 %v33455_v36  ;;  %v460_v63 = vsel %vm395_vm0, %v308_v56, 0 }
 0x1d0   : > { %5263 = vmatpush1.msra.mxu0 %v5262_v57  ;;  %5728 = vmatpush1.msra.mxu1 %v5727_v58  ;;  %v309_v57 = vld [vmem:[%s33420_s26 + $0x88] sm:$0xff]  ;;  %v376_v58 = vcombine.high %v308_v56, %v308_v56  ;;  %v33933_v3 = vand.u32 4294901760, %v460_v63 }
 0x1d1   : > { %5326 = vmatprep.mubr.f32.mxu0 %v33189_v0  ;;  %5336 = vmatprep.subr.mxu0 %v5253_v43  ;;  %v33883_v43 = vsub.f32 %v456_v35, %v33871_v39  ;;  %v377_v59 = vcombine.high %v309_v57, %v309_v57  ;;  %v464_v1 = vsel %vm395_vm0, %v309_v57, 0 }
 0x1d2   : > { %5791 = vmatprep.mubr.f32.mxu1 %v33189_v0  ;;  %5801 = vmatprep.subr.mxu1 %v5718_v44  ;;  %v462_v60 = vsel %vm395_vm0, %v376_v58, 0  ;;  %v33935_v4 = vand.u32 4294901760, %v464_v1 }
 0x1d3   : > { %v466_v61 = vsel %vm395_vm0, %v377_v59, 0  ;;  %v33925_v62 = vand.u32 4294901760, %v462_v60 }
 0x1d7   : > { %5328 = vmatmul.mubr.f32.vlgmr.msra.gmra.mrb[10].mxu0 %v33445_v28  ;;  %5793 = vmatmul.mubr.f32.vlgmr.msra.gmra.mrb[10].mxu1 %v33445_v28 }
 0x1d8   : > { %5339 = vmatpush1.msra.mxu0 %v33752_v45  ;;  %5804 = vmatpush1.msra.mxu1 %v33755_v46 }
 0x1d9   : > { %5402 = vmatprep.mubr.f32.mxu0 %v33189_v0  ;;  %5412 = vmatprep.subr.mxu0 %v33733_v37 }
 0x1da   : > { %5867 = vmatprep.mubr.f32.mxu1 %v33189_v0  ;;  %5877 = vmatprep.subr.mxu1 %v33737_v40 }
 0x1df   : > { %5405 = vmatmul.mubr.f32.vlgmr.msra.gmra.mrb[10].mxu0 %v33448_v29  ;;  %5870 = vmatmul.mubr.f32.vlgmr.msra.gmra.mrb[10].mxu1 %v33448_v29 }
 0x1e0   : > { %5414 = vmatpush1.msra.mxu0 %v33741_v41  ;;  %5879 = vmatpush1.msra.mxu1 %v33743_v42 }
 0x1e1   : > { %5477 = vmatprep.mubr.f32.mxu0 %v33189_v0  ;;  %5490 = vmatprep.subr.mxu0 %v5254_v47  ;;  %v7585_v47 = vand.u32 4294901760, %v33883_v43 }
 0x1e2   : > { %5942 = vmatprep.mubr.f32.mxu1 %v33189_v0  ;;  %5955 = vmatprep.subr.mxu1 %v5719_v48 }
 0x1e3   : > { %v7586_v51 = vsub.f32 %v33883_v43, %v7585_v47 }
 0x1e5   : > { %v7587_v55 = vand.u32 4294901760, %v7586_v51 }
 0x1e7   : > { %5481 = vmatmul.mubr.f32.vlgmr.msra.gmra.mrb[10].mxu0 %v33451_v32  ;;  %5946 = vmatmul.mubr.f32.vlgmr.msra.gmra.mrb[10].mxu1 %v33451_v32 }
 0x1e8   : > { %5494 = vmatpush1.msra.mxu0 %v5260_v49  ;;  %5959 = vmatpush1.msra.mxu1 %v5725_v50 }
 0x1e9   : > { %5557 = vmatprep.mubr.f32.mxu0 %v33189_v0  ;;  %5566 = vmatprep.subr.mxu0 %v33733_v37  ;;  %v33865_v37 = vand.u32 4294901760, %v458_v31 }
 0x1ea   : > { %6022 = vmatprep.mubr.f32.mxu1 %v33189_v0  ;;  %6031 = vmatprep.subr.mxu1 %v33737_v40  ;;  %v7113_v40 = vsub.f32 %v454_v30, %v33861_v33 }
 0x1ec   : > { %v7114_v44 = vand.u32 4294901760, %v7113_v40 }
 0x1ee   : > { %v7115_v48 = vsub.f32 %v7113_v40, %v7114_v44 }
 0x1ef   : > { %5559 = vmatmul.mubr.f32.vlgmr.msra.gmra.mrb[10].mxu0 %v33445_v28  ;;  %6024 = vmatmul.mubr.f32.vlgmr.msra.gmra.mrb[10].mxu1 %v33445_v28 }
 0x1f0   : > { %5568 = vmatpush1.msra.mxu0 %v33741_v41  ;;  %6033 = vmatpush1.msra.mxu1 %v33743_v42  ;;  %v7578_v41 = vsub.f32 %v458_v31, %v33865_v37  ;;  %v33880_v42 = vsub.f32 %v452_v34, %v33869_v38  ;;  %v7116_v52 = vand.u32 4294901760, %v7115_v48 }
 0x1f1   : > { %5631 = vmatprep.mubr.f32.mxu0 %v33189_v0  ;;  %6096 = vmatprep.mubr.f32.mxu1 %v33189_v0 }
 0x1f2   : > { %6105 = vmatprep.subr.mxu0 %v33797_v2  ;;  %6570 = vmatprep.subr.mxu1 %v33801_v5  ;;  %v7579_v45 = vand.u32 4294901760, %v7578_v41  ;;  %v7120_v46 = vand.u32 4294901760, %v33880_v42 }
 0x1f4   : > { %v7580_v49 = vsub.f32 %v7578_v41, %v7579_v45  ;;  %v7121_v50 = vsub.f32 %v33880_v42, %v7120_v46 }
 0x1f6   : > { %v7581_v53 = vand.u32 4294901760, %v7580_v49  ;;  %v7122_v54 = vand.u32 4294901760, %v7121_v50 }
 0x1f7   : > { %5633 = vmatmul.mubr.f32.vlgmr.msra.gmra.mrb[10].mxu0 %v33445_v28  ;;  %6098 = vmatmul.mubr.f32.vlgmr.msra.gmra.mrb[10].mxu1 %v33445_v28 }
 0x1f8   : > { %6107 = vmatpush1.msra.mxu0 %v33805_v6  ;;  %6572 = vmatpush1.msra.mxu1 %v33807_v7 }
 0x1f9   : > { %6170 = vmatprep.mubr.f32.mxu0 %v33189_v0  ;;  %6187 = vmatprep.subr.mxu0 %v6186_v20 }
 0x1fa   : > { %6635 = vmatprep.mubr.f32.mxu1 %v33189_v0  ;;  %6652 = vmatprep.subr.mxu1 %v6651_v21  ;;  %v310_v21 = vld [vmem:[%s33420_s26 + $0x90] sm:$0xff] }
 0x1fb   : > { %6176 = vmatmul.mubr.f32.vlgmr.msra.gmra.mrb[12].mxu0 %v33455_v36  ;;  %6641 = vmatmul.mubr.f32.vlgmr.msra.gmra.mrb[12].mxu1 %v33455_v36  ;;  %v468_v30 = vsel %vm395_vm0, %v310_v21, 0 }
 0x1fc   : > { %6193 = vmatpush1.msra.mxu0 %v6192_v22  ;;  %6658 = vmatpush1.msra.mxu1 %v6657_v23  ;;  %v311_v22 = vld [vmem:[%s33420_s26 + $0x98] sm:$0xff]  ;;  %v378_v23 = vcombine.high %v310_v21, %v310_v21  ;;  %v33997_v34 = vand.u32 4294901760, %v468_v30 }
 0x1fd   : > { %6256 = vmatprep.mubr.f32.mxu0 %v33189_v0  ;;  %6266 = vmatprep.subr.mxu0 %v6183_v8  ;;  %v33947_v8 = vsub.f32 %v464_v1, %v33935_v4  ;;  %v379_v24 = vcombine.high %v311_v22, %v311_v22  ;;  %v472_v31 = vsel %vm395_vm0, %v311_v22, 0 }
 0x1fe   : > { %6721 = vmatprep.mubr.f32.mxu1 %v33189_v0  ;;  %6731 = vmatprep.subr.mxu1 %v6648_v9  ;;  %v470_v25 = vsel %vm395_vm0, %v378_v23, 0  ;;  %v33999_v35 = vand.u32 4294901760, %v472_v31 }
 0x1ff   : > { %v474_v26 = vsel %vm395_vm0, %v379_v24, 0  ;;  %v33989_v27 = vand.u32 4294901760, %v470_v25 }
 0x203   : > { %6258 = vmatmul.mubr.f32.vlgmr.msra.gmra.mrb[12].mxu0 %v33445_v28  ;;  %6723 = vmatmul.mubr.f32.vlgmr.msra.gmra.mrb[12].mxu1 %v33445_v28 }
 0x204   : > { %6269 = vmatpush1.msra.mxu0 %v33816_v10  ;;  %6734 = vmatpush1.msra.mxu1 %v33819_v11 }
 0x205   : > { %6332 = vmatprep.mubr.f32.mxu0 %v33189_v0  ;;  %6342 = vmatprep.subr.mxu0 %v33797_v2 }
 0x206   : > { %6797 = vmatprep.mubr.f32.mxu1 %v33189_v0  ;;  %6807 = vmatprep.subr.mxu1 %v33801_v5 }
 0x20b   : > { %6335 = vmatmul.mubr.f32.vlgmr.msra.gmra.mrb[12].mxu0 %v33448_v29  ;;  %6800 = vmatmul.mubr.f32.vlgmr.msra.gmra.mrb[12].mxu1 %v33448_v29 }
 0x20c   : > { %6344 = vmatpush1.msra.mxu0 %v33805_v6  ;;  %6809 = vmatpush1.msra.mxu1 %v33807_v7 }
 0x20d   : > { %6407 = vmatprep.mubr.f32.mxu0 %v33189_v0  ;;  %6420 = vmatprep.subr.mxu0 %v6184_v12  ;;  %v8515_v12 = vand.u32 4294901760, %v33947_v8 }
 0x20e   : > { %6872 = vmatprep.mubr.f32.mxu1 %v33189_v0  ;;  %6885 = vmatprep.subr.mxu1 %v6649_v13 }
 0x20f   : > { %v8516_v16 = vsub.f32 %v33947_v8, %v8515_v12 }
 0x211   : > { %v8517_v20 = vand.u32 4294901760, %v8516_v16 }
 0x213   : > { %6411 = vmatmul.mubr.f32.vlgmr.msra.gmra.mrb[12].mxu0 %v33451_v32  ;;  %6876 = vmatmul.mubr.f32.vlgmr.msra.gmra.mrb[12].mxu1 %v33451_v32 }
 0x214   : > { %6424 = vmatpush1.msra.mxu0 %v6190_v14  ;;  %6889 = vmatpush1.msra.mxu1 %v6655_v15 }
 0x215   : > { %6487 = vmatprep.mubr.f32.mxu0 %v33189_v0  ;;  %6496 = vmatprep.subr.mxu0 %v33797_v2  ;;  %v33929_v2 = vand.u32 4294901760, %v466_v61 }
 0x216   : > { %6952 = vmatprep.mubr.f32.mxu1 %v33189_v0  ;;  %6961 = vmatprep.subr.mxu1 %v33801_v5  ;;  %v8043_v5 = vsub.f32 %v462_v60, %v33925_v62 }
 0x218   : > { %v8044_v9 = vand.u32 4294901760, %v8043_v5 }
 0x21a   : > { %v8045_v13 = vsub.f32 %v8043_v5, %v8044_v9 }
 0x21b   : > { %6489 = vmatmul.mubr.f32.vlgmr.msra.gmra.mrb[12].mxu0 %v33445_v28  ;;  %6954 = vmatmul.mubr.f32.vlgmr.msra.gmra.mrb[12].mxu1 %v33445_v28 }
 0x21c   : > { %6498 = vmatpush1.msra.mxu0 %v33805_v6  ;;  %6963 = vmatpush1.msra.mxu1 %v33807_v7  ;;  %v8508_v6 = vsub.f32 %v466_v61, %v33929_v2  ;;  %v33944_v7 = vsub.f32 %v460_v63, %v33933_v3  ;;  %v8046_v17 = vand.u32 4294901760, %v8045_v13 }
 0x21d   : > { %6561 = vmatprep.mubr.f32.mxu0 %v33189_v0  ;;  %7026 = vmatprep.mubr.f32.mxu1 %v33189_v0 }
 0x21e   : > { %7035 = vmatprep.subr.mxu0 %v33861_v33  ;;  %7500 = vmatprep.subr.mxu1 %v33865_v37  ;;  %v8509_v10 = vand.u32 4294901760, %v8508_v6  ;;  %v8050_v11 = vand.u32 4294901760, %v33944_v7 }
 0x220   : > { %v8510_v14 = vsub.f32 %v8508_v6, %v8509_v10  ;;  %v8051_v15 = vsub.f32 %v33944_v7, %v8050_v11 }
 0x222   : > { %v8511_v18 = vand.u32 4294901760, %v8510_v14  ;;  %v8052_v19 = vand.u32 4294901760, %v8051_v15 }
 0x223   : > { %6563 = vmatmul.mubr.f32.vlgmr.msra.gmra.mrb[12].mxu0 %v33445_v28  ;;  %7028 = vmatmul.mubr.f32.vlgmr.msra.gmra.mrb[12].mxu1 %v33445_v28 }
 0x224   : > { %7037 = vmatpush1.msra.mxu0 %v33869_v38  ;;  %7502 = vmatpush1.msra.mxu1 %v33871_v39 }
 0x225   : > { %7100 = vmatprep.mubr.f32.mxu0 %v33189_v0  ;;  %7117 = vmatprep.subr.mxu0 %v7116_v52 }
 0x226   : > { %7565 = vmatprep.mubr.f32.mxu1 %v33189_v0  ;;  %7582 = vmatprep.subr.mxu1 %v7581_v53  ;;  %v312_v53 = vld [vmem:[%s33420_s26 + $0xa0] sm:$0xff] }
 0x227   : > { %7106 = vmatmul.mubr.f32.vlgmr.msra.gmra.mrb[14].mxu0 %v33455_v36  ;;  %7571 = vmatmul.mubr.f32.vlgmr.msra.gmra.mrb[14].mxu1 %v33455_v36  ;;  %v476_v60 = vsel %vm395_vm0, %v312_v53, 0 }
 0x228   : > { %7123 = vmatpush1.msra.mxu0 %v7122_v54  ;;  %7588 = vmatpush1.msra.mxu1 %v7587_v55  ;;  %v313_v54 = vld [vmem:[%s33420_s26 + $0xa8] sm:$0xff]  ;;  %v380_v55 = vcombine.high %v312_v53, %v312_v53  ;;  %v34061_v63 = vand.u32 4294901760, %v476_v60 }
 0x229   : > { %7186 = vmatprep.mubr.f32.mxu0 %v33189_v0  ;;  %7196 = vmatprep.subr.mxu0 %v7113_v40  ;;  %v34011_v40 = vsub.f32 %v472_v31, %v33999_v35  ;;  %v381_v56 = vcombine.high %v313_v54, %v313_v54  ;;  %v480_v61 = vsel %vm395_vm0, %v313_v54, 0 }
 0x22a   : > { %7651 = vmatprep.mubr.f32.mxu1 %v33189_v0  ;;  %7661 = vmatprep.subr.mxu1 %v7578_v41  ;;  %v478_v57 = vsel %vm395_vm0, %v380_v55, 0  ;;  %v34063_v1 = vand.u32 4294901760, %v480_v61 }
 0x22b   : > { %v482_v58 = vsel %vm395_vm0, %v381_v56, 0  ;;  %v34053_v59 = vand.u32 4294901760, %v478_v57 }
 0x22f   : > { %7188 = vmatmul.mubr.f32.vlgmr.msra.gmra.mrb[14].mxu0 %v33445_v28  ;;  %7653 = vmatmul.mubr.f32.vlgmr.msra.gmra.mrb[14].mxu1 %v33445_v28 }
 0x230   : > { %7199 = vmatpush1.msra.mxu0 %v33880_v42  ;;  %7664 = vmatpush1.msra.mxu1 %v33883_v43 }
 0x231   : > { %7262 = vmatprep.mubr.f32.mxu0 %v33189_v0  ;;  %7272 = vmatprep.subr.mxu0 %v33861_v33 }
 0x232   : > { %7727 = vmatprep.mubr.f32.mxu1 %v33189_v0  ;;  %7737 = vmatprep.subr.mxu1 %v33865_v37 }
 0x237   : > { %7265 = vmatmul.mubr.f32.vlgmr.msra.gmra.mrb[14].mxu0 %v33448_v29  ;;  %7730 = vmatmul.mubr.f32.vlgmr.msra.gmra.mrb[14].mxu1 %v33448_v29 }
 0x238   : > { %7274 = vmatpush1.msra.mxu0 %v33869_v38  ;;  %7739 = vmatpush1.msra.mxu1 %v33871_v39 }
 0x239   : > { %7337 = vmatprep.mubr.f32.mxu0 %v33189_v0  ;;  %7350 = vmatprep.subr.mxu0 %v7114_v44  ;;  %v9445_v44 = vand.u32 4294901760, %v34011_v40 }
 0x23a   : > { %7802 = vmatprep.mubr.f32.mxu1 %v33189_v0  ;;  %7815 = vmatprep.subr.mxu1 %v7579_v45 }
 0x23b   : > { %v9446_v48 = vsub.f32 %v34011_v40, %v9445_v44 }
 0x23d   : > { %v9447_v52 = vand.u32 4294901760, %v9446_v48 }
 0x23f   : > { %7341 = vmatmul.mubr.f32.vlgmr.msra.gmra.mrb[14].mxu0 %v33451_v32  ;;  %7806 = vmatmul.mubr.f32.vlgmr.msra.gmra.mrb[14].mxu1 %v33451_v32 }
 0x240   : > { %7354 = vmatpush1.msra.mxu0 %v7120_v46  ;;  %7819 = vmatpush1.msra.mxu1 %v7585_v47 }
 0x241   : > { %7417 = vmatprep.mubr.f32.mxu0 %v33189_v0  ;;  %7426 = vmatprep.subr.mxu0 %v33861_v33  ;;  %v33993_v33 = vand.u32 4294901760, %v474_v26 }
 0x242   : > { %7882 = vmatprep.mubr.f32.mxu1 %v33189_v0  ;;  %7891 = vmatprep.subr.mxu1 %v33865_v37  ;;  %v8973_v37 = vsub.f32 %v470_v25, %v33989_v27 }
 0x244   : > { %v8974_v41 = vand.u32 4294901760, %v8973_v37 }
 0x246   : > { %v8975_v45 = vsub.f32 %v8973_v37, %v8974_v41 }
 0x247   : > { %7419 = vmatmul.mubr.f32.vlgmr.msra.gmra.mrb[14].mxu0 %v33445_v28  ;;  %7884 = vmatmul.mubr.f32.vlgmr.msra.gmra.mrb[14].mxu1 %v33445_v28 }
 0x248   : > { %7428 = vmatpush1.msra.mxu0 %v33869_v38  ;;  %7893 = vmatpush1.msra.mxu1 %v33871_v39  ;;  %v9438_v38 = vsub.f32 %v474_v26, %v33993_v33  ;;  %v34008_v39 = vsub.f32 %v468_v30, %v33997_v34  ;;  %v8976_v49 = vand.u32 4294901760, %v8975_v45 }
 0x249   : > { %7491 = vmatprep.mubr.f32.mxu0 %v33189_v0  ;;  %7956 = vmatprep.mubr.f32.mxu1 %v33189_v0 }
 0x24a   : > { %7965 = vmatprep.subr.mxu0 %v33925_v62  ;;  %8430 = vmatprep.subr.mxu1 %v33929_v2  ;;  %v9439_v42 = vand.u32 4294901760, %v9438_v38  ;;  %v8980_v43 = vand.u32 4294901760, %v34008_v39 }
 0x24c   : > { %v9440_v46 = vsub.f32 %v9438_v38, %v9439_v42  ;;  %v8981_v47 = vsub.f32 %v34008_v39, %v8980_v43 }
 0x24e   : > { %v9441_v50 = vand.u32 4294901760, %v9440_v46  ;;  %v8982_v51 = vand.u32 4294901760, %v8981_v47 }
 0x24f   : > { %7493 = vmatmul.mubr.f32.vlgmr.msra.gmra.mrb[14].mxu0 %v33445_v28  ;;  %7958 = vmatmul.mubr.f32.vlgmr.msra.gmra.mrb[14].mxu1 %v33445_v28 }
 0x250   : > { %7967 = vmatpush1.msra.mxu0 %v33933_v3  ;;  %8432 = vmatpush1.msra.mxu1 %v33935_v4 }
 0x251   : > { %8030 = vmatprep.mubr.f32.mxu0 %v33189_v0  ;;  %8047 = vmatprep.subr.mxu0 %v8046_v17 }
 0x252   : > { %8495 = vmatprep.mubr.f32.mxu1 %v33189_v0  ;;  %8512 = vmatprep.subr.mxu1 %v8511_v18  ;;  %v314_v18 = vld [vmem:[%s33420_s26 + $0xb0] sm:$0xff] }
 0x253   : > { %8036 = vmatmul.mubr.f32.vlgmr.msra.gmra.mrb[16].mxu0 %v33455_v36  ;;  %8501 = vmatmul.mubr.f32.vlgmr.msra.gmra.mrb[16].mxu1 %v33455_v36  ;;  %v484_v25 = vsel %vm395_vm0, %v314_v18, 0 }
 0x254   : > { %8053 = vmatpush1.msra.mxu0 %v8052_v19  ;;  %8518 = vmatpush1.msra.mxu1 %v8517_v20  ;;  %v315_v19 = vld [vmem:[%s33420_s26 + $0xb8] sm:$0xff]  ;;  %v382_v20 = vcombine.high %v314_v18, %v314_v18  ;;  %v34125_v30 = vand.u32 4294901760, %v484_v25 }
 0x255   : > { %8116 = vmatprep.mubr.f32.mxu0 %v33189_v0  ;;  %8126 = vmatprep.subr.mxu0 %v8043_v5  ;;  %v34075_v5 = vsub.f32 %v480_v61, %v34063_v1  ;;  %v383_v21 = vcombine.high %v315_v19, %v315_v19  ;;  %v488_v26 = vsel %vm395_vm0, %v315_v19, 0 }
 0x256   : > { %8581 = vmatprep.mubr.f32.mxu1 %v33189_v0  ;;  %8591 = vmatprep.subr.mxu1 %v8508_v6  ;;  %v486_v22 = vsel %vm395_vm0, %v382_v20, 0  ;;  %v34127_v31 = vand.u32 4294901760, %v488_v26 }
 0x257   : > { %v490_v23 = vsel %vm395_vm0, %v383_v21, 0  ;;  %v34117_v24 = vand.u32 4294901760, %v486_v22 }
 0x25b   : > { %8118 = vmatmul.mubr.f32.vlgmr.msra.gmra.mrb[16].mxu0 %v33445_v28  ;;  %8583 = vmatmul.mubr.f32.vlgmr.msra.gmra.mrb[16].mxu1 %v33445_v28 }
 0x25c   : > { %8129 = vmatpush1.msra.mxu0 %v33944_v7  ;;  %8594 = vmatpush1.msra.mxu1 %v33947_v8 }
 0x25d   : > { %8192 = vmatprep.mubr.f32.mxu0 %v33189_v0  ;;  %8202 = vmatprep.subr.mxu0 %v33925_v62 }
 0x25e   : > { %8657 = vmatprep.mubr.f32.mxu1 %v33189_v0  ;;  %8667 = vmatprep.subr.mxu1 %v33929_v2 }
 0x263   : > { %8195 = vmatmul.mubr.f32.vlgmr.msra.gmra.mrb[16].mxu0 %v33448_v29  ;;  %8660 = vmatmul.mubr.f32.vlgmr.msra.gmra.mrb[16].mxu1 %v33448_v29 }
 0x264   : > { %8204 = vmatpush1.msra.mxu0 %v33933_v3  ;;  %8669 = vmatpush1.msra.mxu1 %v33935_v4 }
 0x265   : > { %8267 = vmatprep.mubr.f32.mxu0 %v33189_v0  ;;  %8280 = vmatprep.subr.mxu0 %v8044_v9  ;;  %v10375_v9 = vand.u32 4294901760, %v34075_v5 }
 0x266   : > { %8732 = vmatprep.mubr.f32.mxu1 %v33189_v0  ;;  %8745 = vmatprep.subr.mxu1 %v8509_v10 }
 0x267   : > { %v10376_v13 = vsub.f32 %v34075_v5, %v10375_v9 }
 0x269   : > { %v10377_v17 = vand.u32 4294901760, %v10376_v13 }
 0x26b   : > { %8271 = vmatmul.mubr.f32.vlgmr.msra.gmra.mrb[16].mxu0 %v33451_v32  ;;  %8736 = vmatmul.mubr.f32.vlgmr.msra.gmra.mrb[16].mxu1 %v33451_v32 }
 0x26c   : > { %8284 = vmatpush1.msra.mxu0 %v8050_v11  ;;  %8749 = vmatpush1.msra.mxu1 %v8515_v12 }
 0x26d   : > { %8347 = vmatprep.mubr.f32.mxu0 %v33189_v0  ;;  %8356 = vmatprep.subr.mxu0 %v33925_v62  ;;  %v34057_v62 = vand.u32 4294901760, %v482_v58 }
 0x26e   : > { %8812 = vmatprep.mubr.f32.mxu1 %v33189_v0  ;;  %8821 = vmatprep.subr.mxu1 %v33929_v2  ;;  %v9903_v2 = vsub.f32 %v478_v57, %v34053_v59 }
 0x270   : > { %v9904_v6 = vand.u32 4294901760, %v9903_v2 }
 0x272   : > { %v9905_v10 = vsub.f32 %v9903_v2, %v9904_v6 }
 0x273   : > { %8349 = vmatmul.mubr.f32.vlgmr.msra.gmra.mrb[16].mxu0 %v33445_v28  ;;  %8814 = vmatmul.mubr.f32.vlgmr.msra.gmra.mrb[16].mxu1 %v33445_v28 }
 0x274   : > { %8358 = vmatpush1.msra.mxu0 %v33933_v3  ;;  %8823 = vmatpush1.msra.mxu1 %v33935_v4  ;;  %v10368_v3 = vsub.f32 %v482_v58, %v34057_v62  ;;  %v34072_v4 = vsub.f32 %v476_v60, %v34061_v63  ;;  %v9906_v14 = vand.u32 4294901760, %v9905_v10 }
 0x275   : > { %8421 = vmatprep.mubr.f32.mxu0 %v33189_v0  ;;  %8886 = vmatprep.mubr.f32.mxu1 %v33189_v0 }
 0x276   : > { %8895 = vmatprep.subr.mxu0 %v33989_v27  ;;  %9360 = vmatprep.subr.mxu1 %v33993_v33  ;;  %v10369_v7 = vand.u32 4294901760, %v10368_v3  ;;  %v9910_v8 = vand.u32 4294901760, %v34072_v4 }
 0x278   : > { %v10370_v11 = vsub.f32 %v10368_v3, %v10369_v7  ;;  %v9911_v12 = vsub.f32 %v34072_v4, %v9910_v8 }
 0x27a   : > { %v10371_v15 = vand.u32 4294901760, %v10370_v11  ;;  %v9912_v16 = vand.u32 4294901760, %v9911_v12 }
 0x27b   : > { %8423 = vmatmul.mubr.f32.vlgmr.msra.gmra.mrb[16].mxu0 %v33445_v28  ;;  %8888 = vmatmul.mubr.f32.vlgmr.msra.gmra.mrb[16].mxu1 %v33445_v28 }
 0x27c   : > { %8897 = vmatpush1.msra.mxu0 %v33997_v34  ;;  %9362 = vmatpush1.msra.mxu1 %v33999_v35 }
 0x27d   : > { %8960 = vmatprep.mubr.f32.mxu0 %v33189_v0  ;;  %8977 = vmatprep.subr.mxu0 %v8976_v49 }
 0x27e   : > { %9425 = vmatprep.mubr.f32.mxu1 %v33189_v0  ;;  %9442 = vmatprep.subr.mxu1 %v9441_v50  ;;  %v316_v50 = vld [vmem:[%s33420_s26 + $0xc0] sm:$0xff] }
 0x27f   : > { %8966 = vmatmul.mubr.f32.vlgmr.msra.gmra.mrb[18].mxu0 %v33455_v36  ;;  %9431 = vmatmul.mubr.f32.vlgmr.msra.gmra.mrb[18].mxu1 %v33455_v36  ;;  %v492_v57 = vsel %vm395_vm0, %v316_v50, 0 }
 0x280   : > { %8983 = vmatpush1.msra.mxu0 %v8982_v51  ;;  %9448 = vmatpush1.msra.mxu1 %v9447_v52  ;;  %v317_v51 = vld [vmem:[%s33420_s26 + $0xc8] sm:$0xff]  ;;  %v384_v52 = vcombine.high %v316_v50, %v316_v50  ;;  %v34189_v60 = vand.u32 4294901760, %v492_v57 }
 0x281   : > { %9046 = vmatprep.mubr.f32.mxu0 %v33189_v0  ;;  %9056 = vmatprep.subr.mxu0 %v8973_v37  ;;  %v34139_v37 = vsub.f32 %v488_v26, %v34127_v31  ;;  %v385_v53 = vcombine.high %v317_v51, %v317_v51  ;;  %v496_v58 = vsel %vm395_vm0, %v317_v51, 0 }
 0x282   : > { %9511 = vmatprep.mubr.f32.mxu1 %v33189_v0  ;;  %9521 = vmatprep.subr.mxu1 %v9438_v38  ;;  %v494_v54 = vsel %vm395_vm0, %v384_v52, 0  ;;  %v34191_v61 = vand.u32 4294901760, %v496_v58 }
 0x283   : > { %v498_v55 = vsel %vm395_vm0, %v385_v53, 0  ;;  %v34181_v56 = vand.u32 4294901760, %v494_v54 }
 0x287   : > { %9048 = vmatmul.mubr.f32.vlgmr.msra.gmra.mrb[18].mxu0 %v33445_v28  ;;  %9513 = vmatmul.mubr.f32.vlgmr.msra.gmra.mrb[18].mxu1 %v33445_v28 }
 0x288   : > { %9059 = vmatpush1.msra.mxu0 %v34008_v39  ;;  %9524 = vmatpush1.msra.mxu1 %v34011_v40 }
 0x289   : > { %9122 = vmatprep.mubr.f32.mxu0 %v33189_v0  ;;  %9132 = vmatprep.subr.mxu0 %v33989_v27 }
 0x28a   : > { %9587 = vmatprep.mubr.f32.mxu1 %v33189_v0  ;;  %9597 = vmatprep.subr.mxu1 %v33993_v33 }
 0x28f   : > { %9125 = vmatmul.mubr.f32.vlgmr.msra.gmra.mrb[18].mxu0 %v33448_v29  ;;  %9590 = vmatmul.mubr.f32.vlgmr.msra.gmra.mrb[18].mxu1 %v33448_v29 }
 0x290   : > { %9134 = vmatpush1.msra.mxu0 %v33997_v34  ;;  %9599 = vmatpush1.msra.mxu1 %v33999_v35 }
 0x291   : > { %9197 = vmatprep.mubr.f32.mxu0 %v33189_v0  ;;  %9210 = vmatprep.subr.mxu0 %v8974_v41  ;;  %v11305_v41 = vand.u32 4294901760, %v34139_v37 }
 0x292   : > { %9662 = vmatprep.mubr.f32.mxu1 %v33189_v0  ;;  %9675 = vmatprep.subr.mxu1 %v9439_v42 }
 0x293   : > { %v11306_v45 = vsub.f32 %v34139_v37, %v11305_v41 }
 0x295   : > { %v11307_v49 = vand.u32 4294901760, %v11306_v45 }
 0x297   : > { %9201 = vmatmul.mubr.f32.vlgmr.msra.gmra.mrb[18].mxu0 %v33451_v32  ;;  %9666 = vmatmul.mubr.f32.vlgmr.msra.gmra.mrb[18].mxu1 %v33451_v32 }
 0x298   : > { %9214 = vmatpush1.msra.mxu0 %v8980_v43  ;;  %9679 = vmatpush1.msra.mxu1 %v9445_v44 }
 0x299   : > { %9277 = vmatprep.mubr.f32.mxu0 %v33189_v0  ;;  %9286 = vmatprep.subr.mxu0 %v33989_v27  ;;  %v34121_v27 = vand.u32 4294901760, %v490_v23 }
 0x29a   : > { %9742 = vmatprep.mubr.f32.mxu1 %v33189_v0  ;;  %9751 = vmatprep.subr.mxu1 %v33993_v33  ;;  %v10833_v33 = vsub.f32 %v486_v22, %v34117_v24 }
 0x29c   : > { %v10834_v38 = vand.u32 4294901760, %v10833_v33 }
 0x29e   : > { %v10835_v42 = vsub.f32 %v10833_v33, %v10834_v38 }
 0x29f   : > { %9279 = vmatmul.mubr.f32.vlgmr.msra.gmra.mrb[18].mxu0 %v33445_v28  ;;  %9744 = vmatmul.mubr.f32.vlgmr.msra.gmra.mrb[18].mxu1 %v33445_v28 }
 0x2a0   : > { %9288 = vmatpush1.msra.mxu0 %v33997_v34  ;;  %9753 = vmatpush1.msra.mxu1 %v33999_v35  ;;  %v11298_v34 = vsub.f32 %v490_v23, %v34121_v27  ;;  %v34136_v35 = vsub.f32 %v484_v25, %v34125_v30  ;;  %v10836_v46 = vand.u32 4294901760, %v10835_v42 }
 0x2a1   : > { %9351 = vmatprep.mubr.f32.mxu0 %v33189_v0  ;;  %9816 = vmatprep.mubr.f32.mxu1 %v33189_v0 }
 0x2a2   : > { %9825 = vmatprep.subr.mxu0 %v34053_v59  ;;  %10290 = vmatprep.subr.mxu1 %v34057_v62  ;;  %v11299_v39 = vand.u32 4294901760, %v11298_v34  ;;  %v10840_v40 = vand.u32 4294901760, %v34136_v35 }
 0x2a4   : > { %v11300_v43 = vsub.f32 %v11298_v34, %v11299_v39  ;;  %v10841_v44 = vsub.f32 %v34136_v35, %v10840_v40 }
 0x2a6   : > { %v11301_v47 = vand.u32 4294901760, %v11300_v43  ;;  %v10842_v48 = vand.u32 4294901760, %v10841_v44 }
 0x2a7   : > { %9353 = vmatmul.mubr.f32.vlgmr.msra.gmra.mrb[18].mxu0 %v33445_v28  ;;  %9818 = vmatmul.mubr.f32.vlgmr.msra.gmra.mrb[18].mxu1 %v33445_v28 }
 0x2a8   : > { %9827 = vmatpush1.msra.mxu0 %v34061_v63  ;;  %10292 = vmatpush1.msra.mxu1 %v34063_v1 }
 0x2a9   : > { %9890 = vmatprep.mubr.f32.mxu0 %v33189_v0  ;;  %9907 = vmatprep.subr.mxu0 %v9906_v14 }
 0x2aa   : > { %10355 = vmatprep.mubr.f32.mxu1 %v33189_v0  ;;  %10372 = vmatprep.subr.mxu1 %v10371_v15  ;;  %v318_v15 = vld [vmem:[%s33420_s26 + $0xd0] sm:$0xff] }
 0x2ab   : > { %9896 = vmatmul.mubr.f32.vlgmr.msra.gmra.mrb[20].mxu0 %v33455_v36  ;;  %10361 = vmatmul.mubr.f32.vlgmr.msra.gmra.mrb[20].mxu1 %v33455_v36  ;;  %v500_v22 = vsel %vm395_vm0, %v318_v15, 0 }
 0x2ac   : > { %9913 = vmatpush1.msra.mxu0 %v9912_v16  ;;  %10378 = vmatpush1.msra.mxu1 %v10377_v17  ;;  %v319_v16 = vld [vmem:[%s33420_s26 + $0xd8] sm:$0xff]  ;;  %v386_v17 = vcombine.high %v318_v15, %v318_v15  ;;  %v34253_v25 = vand.u32 4294901760, %v500_v22 }
 0x2ad   : > { %9976 = vmatprep.mubr.f32.mxu0 %v33189_v0  ;;  %9986 = vmatprep.subr.mxu0 %v9903_v2  ;;  %v34203_v2 = vsub.f32 %v496_v58, %v34191_v61  ;;  %v387_v18 = vcombine.high %v319_v16, %v319_v16  ;;  %v504_v23 = vsel %vm395_vm0, %v319_v16, 0 }
 0x2ae   : > { %10441 = vmatprep.mubr.f32.mxu1 %v33189_v0  ;;  %10451 = vmatprep.subr.mxu1 %v10368_v3  ;;  %v502_v19 = vsel %vm395_vm0, %v386_v17, 0  ;;  %v34255_v26 = vand.u32 4294901760, %v504_v23 }
 0x2af   : > { %v506_v20 = vsel %vm395_vm0, %v387_v18, 0  ;;  %v34245_v21 = vand.u32 4294901760, %v502_v19 }
 0x2b3   : > { %9978 = vmatmul.mubr.f32.vlgmr.msra.gmra.mrb[20].mxu0 %v33445_v28  ;;  %10443 = vmatmul.mubr.f32.vlgmr.msra.gmra.mrb[20].mxu1 %v33445_v28 }
 0x2b4   : > { %9989 = vmatpush1.msra.mxu0 %v34072_v4  ;;  %10454 = vmatpush1.msra.mxu1 %v34075_v5 }
 0x2b5   : > { %10052 = vmatprep.mubr.f32.mxu0 %v33189_v0  ;;  %10062 = vmatprep.subr.mxu0 %v34053_v59 }
 0x2b6   : > { %10517 = vmatprep.mubr.f32.mxu1 %v33189_v0  ;;  %10527 = vmatprep.subr.mxu1 %v34057_v62 }
 0x2bb   : > { %10055 = vmatmul.mubr.f32.vlgmr.msra.gmra.mrb[20].mxu0 %v33448_v29  ;;  %10520 = vmatmul.mubr.f32.vlgmr.msra.gmra.mrb[20].mxu1 %v33448_v29 }
 0x2bc   : > { %10064 = vmatpush1.msra.mxu0 %v34061_v63  ;;  %10529 = vmatpush1.msra.mxu1 %v34063_v1 }
 0x2bd   : > { %10127 = vmatprep.mubr.f32.mxu0 %v33189_v0  ;;  %10140 = vmatprep.subr.mxu0 %v9904_v6  ;;  %v12235_v6 = vand.u32 4294901760, %v34203_v2 }
 0x2be   : > { %10592 = vmatprep.mubr.f32.mxu1 %v33189_v0  ;;  %10605 = vmatprep.subr.mxu1 %v10369_v7 }
 0x2bf   : > { %v12236_v10 = vsub.f32 %v34203_v2, %v12235_v6 }
 0x2c1   : > { %v12237_v14 = vand.u32 4294901760, %v12236_v10 }
 0x2c3   : > { %10131 = vmatmul.mubr.f32.vlgmr.msra.gmra.mrb[20].mxu0 %v33451_v32  ;;  %10596 = vmatmul.mubr.f32.vlgmr.msra.gmra.mrb[20].mxu1 %v33451_v32 }
 0x2c4   : > { %10144 = vmatpush1.msra.mxu0 %v9910_v8  ;;  %10609 = vmatpush1.msra.mxu1 %v10375_v9 }
 0x2c5   : > { %10207 = vmatprep.mubr.f32.mxu0 %v33189_v0  ;;  %10216 = vmatprep.subr.mxu0 %v34053_v59  ;;  %v34185_v59 = vand.u32 4294901760, %v498_v55 }
 0x2c6   : > { %10672 = vmatprep.mubr.f32.mxu1 %v33189_v0  ;;  %10681 = vmatprep.subr.mxu1 %v34057_v62  ;;  %v11763_v62 = vsub.f32 %v494_v54, %v34181_v56 }
 0x2c8   : > { %v11764_v3 = vand.u32 4294901760, %v11763_v62 }
 0x2ca   : > { %v11765_v7 = vsub.f32 %v11763_v62, %v11764_v3 }
 0x2cb   : > { %10209 = vmatmul.mubr.f32.vlgmr.msra.gmra.mrb[20].mxu0 %v33445_v28  ;;  %10674 = vmatmul.mubr.f32.vlgmr.msra.gmra.mrb[20].mxu1 %v33445_v28 }
 0x2cc   : > { %10218 = vmatpush1.msra.mxu0 %v34061_v63  ;;  %10683 = vmatpush1.msra.mxu1 %v34063_v1  ;;  %v12228_v63 = vsub.f32 %v498_v55, %v34185_v59  ;;  %v34200_v1 = vsub.f32 %v492_v57, %v34189_v60  ;;  %v11766_v11 = vand.u32 4294901760, %v11765_v7 }
 0x2cd   : > { %10281 = vmatprep.mubr.f32.mxu0 %v33189_v0  ;;  %10746 = vmatprep.mubr.f32.mxu1 %v33189_v0 }
 0x2ce   : > { %10755 = vmatprep.subr.mxu0 %v34117_v24  ;;  %11220 = vmatprep.subr.mxu1 %v34121_v27  ;;  %v12229_v4 = vand.u32 4294901760, %v12228_v63  ;;  %v11770_v5 = vand.u32 4294901760, %v34200_v1 }
 0x2d0   : > { %v12230_v8 = vsub.f32 %v12228_v63, %v12229_v4  ;;  %v11771_v9 = vsub.f32 %v34200_v1, %v11770_v5 }
 0x2d2   : > { %v12231_v12 = vand.u32 4294901760, %v12230_v8  ;;  %v11772_v13 = vand.u32 4294901760, %v11771_v9 }
 0x2d3   : > { %10283 = vmatmul.mubr.f32.vlgmr.msra.gmra.mrb[20].mxu0 %v33445_v28  ;;  %10748 = vmatmul.mubr.f32.vlgmr.msra.gmra.mrb[20].mxu1 %v33445_v28 }
 0x2d4   : > { %10757 = vmatpush1.msra.mxu0 %v34125_v30  ;;  %11222 = vmatpush1.msra.mxu1 %v34127_v31 }
 0x2d5   : > { %10820 = vmatprep.mubr.f32.mxu0 %v33189_v0  ;;  %10837 = vmatprep.subr.mxu0 %v10836_v46 }
 0x2d6   : > { %11285 = vmatprep.mubr.f32.mxu1 %v33189_v0  ;;  %11302 = vmatprep.subr.mxu1 %v11301_v47  ;;  %v320_v47 = vld [vmem:[%s33420_s26 + $0xe0] sm:$0xff] }
 0x2d7   : > { %10826 = vmatmul.mubr.f32.vlgmr.msra.gmra.mrb[22].mxu0 %v33455_v36  ;;  %11291 = vmatmul.mubr.f32.vlgmr.msra.gmra.mrb[22].mxu1 %v33455_v36  ;;  %v508_v54 = vsel %vm395_vm0, %v320_v47, 0 }
 0x2d8   : > { %10843 = vmatpush1.msra.mxu0 %v10842_v48  ;;  %11308 = vmatpush1.msra.mxu1 %v11307_v49  ;;  %v321_v48 = vld [vmem:[%s33420_s26 + $0xe8] sm:$0xff]  ;;  %v388_v49 = vcombine.high %v320_v47, %v320_v47  ;;  %v34317_v57 = vand.u32 4294901760, %v508_v54 }
 0x2d9   : > { %10906 = vmatprep.mubr.f32.mxu0 %v33189_v0  ;;  %10916 = vmatprep.subr.mxu0 %v10833_v33  ;;  %v34267_v33 = vsub.f32 %v504_v23, %v34255_v26  ;;  %v389_v50 = vcombine.high %v321_v48, %v321_v48  ;;  %v512_v55 = vsel %vm395_vm0, %v321_v48, 0 }
 0x2da   : > { %11371 = vmatprep.mubr.f32.mxu1 %v33189_v0  ;;  %11381 = vmatprep.subr.mxu1 %v11298_v34  ;;  %v510_v51 = vsel %vm395_vm0, %v388_v49, 0  ;;  %v34319_v58 = vand.u32 4294901760, %v512_v55  ;;  %v34437_v49 = vld [vmem:[#allocation2] sm:$0xff] }
 0x2db   : > { %v514_v52 = vsel %vm395_vm0, %v389_v50, 0  ;;  %v34309_v53 = vand.u32 4294901760, %v510_v51 }
 0x2df   : > { %10908 = vmatmul.mubr.f32.vlgmr.msra.gmra.mrb[22].mxu0 %v33445_v28  ;;  %11373 = vmatmul.mubr.f32.vlgmr.msra.gmra.mrb[22].mxu1 %v33445_v28 }
 0x2e0   : > { %10919 = vmatpush1.msra.mxu0 %v34136_v35  ;;  %11384 = vmatpush1.msra.mxu1 %v34139_v37 }
 0x2e1   : > { %10982 = vmatprep.mubr.f32.mxu0 %v33189_v0  ;;  %10992 = vmatprep.subr.mxu0 %v34117_v24 }
 0x2e2   : > { %11447 = vmatprep.mubr.f32.mxu1 %v33189_v0  ;;  %11457 = vmatprep.subr.mxu1 %v34121_v27 }
 0x2e7   : > { %10985 = vmatmul.mubr.f32.vlgmr.msra.gmra.mrb[22].mxu0 %v33448_v29  ;;  %11450 = vmatmul.mubr.f32.vlgmr.msra.gmra.mrb[22].mxu1 %v33448_v29 }
 0x2e8   : > { %10994 = vmatpush1.msra.mxu0 %v34125_v30  ;;  %11459 = vmatpush1.msra.mxu1 %v34127_v31 }
 0x2e9   : > { %11057 = vmatprep.mubr.f32.mxu0 %v33189_v0  ;;  %11070 = vmatprep.subr.mxu0 %v10834_v38  ;;  %v13165_v38 = vand.u32 4294901760, %v34267_v33 }
 0x2ea   : > { %11522 = vmatprep.mubr.f32.mxu1 %v33189_v0  ;;  %11535 = vmatprep.subr.mxu1 %v11299_v39 }
 0x2eb   : > { %v13166_v42 = vsub.f32 %v34267_v33, %v13165_v38 }
 0x2ed   : > { %v13167_v46 = vand.u32 4294901760, %v13166_v42 }
 0x2ef   : > { %11061 = vmatmul.mubr.f32.vlgmr.msra.gmra.mrb[22].mxu0 %v33451_v32  ;;  %11526 = vmatmul.mubr.f32.vlgmr.msra.gmra.mrb[22].mxu1 %v33451_v32 }
 0x2f0   : > { %11074 = vmatpush1.msra.mxu0 %v10840_v40  ;;  %11539 = vmatpush1.msra.mxu1 %v11305_v41 }
 0x2f1   : > { %11137 = vmatprep.mubr.f32.mxu0 %v33189_v0  ;;  %11146 = vmatprep.subr.mxu0 %v34117_v24  ;;  %v34249_v24 = vand.u32 4294901760, %v506_v20 }
 0x2f2   : > { %11602 = vmatprep.mubr.f32.mxu1 %v33189_v0  ;;  %11611 = vmatprep.subr.mxu1 %v34121_v27  ;;  %v12693_v27 = vsub.f32 %v502_v19, %v34245_v21 }
 0x2f4   : > { %v12694_v34 = vand.u32 4294901760, %v12693_v27 }
 0x2f6   : > { %v12695_v39 = vsub.f32 %v12693_v27, %v12694_v34 }
 0x2f7   : > { %11139 = vmatmul.mubr.f32.vlgmr.msra.gmra.mrb[22].mxu0 %v33445_v28  ;;  %11604 = vmatmul.mubr.f32.vlgmr.msra.gmra.mrb[22].mxu1 %v33445_v28 }
 0x2f8   : > { %11148 = vmatpush1.msra.mxu0 %v34125_v30  ;;  %11613 = vmatpush1.msra.mxu1 %v34127_v31  ;;  %v13158_v30 = vsub.f32 %v506_v20, %v34249_v24  ;;  %v34264_v31 = vsub.f32 %v500_v22, %v34253_v25  ;;  %v12696_v43 = vand.u32 4294901760, %v12695_v39 }
 0x2f9   : > { %11211 = vmatprep.mubr.f32.mxu0 %v33189_v0  ;;  %11676 = vmatprep.mubr.f32.mxu1 %v33189_v0 }
 0x2fa   : > { %11685 = vmatprep.subr.mxu0 %v34181_v56  ;;  %12150 = vmatprep.subr.mxu1 %v34185_v59  ;;  %v13159_v35 = vand.u32 4294901760, %v13158_v30  ;;  %v12700_v37 = vand.u32 4294901760, %v34264_v31 }
 0x2fc   : > { %v13160_v40 = vsub.f32 %v13158_v30, %v13159_v35  ;;  %v12701_v41 = vsub.f32 %v34264_v31, %v12700_v37 }
 0x2fe   : > { %v13161_v44 = vand.u32 4294901760, %v13160_v40  ;;  %v12702_v45 = vand.u32 4294901760, %v12701_v41 }
 0x2ff   : > { %11213 = vmatmul.mubr.f32.vlgmr.msra.gmra.mrb[22].mxu0 %v33445_v28  ;;  %11678 = vmatmul.mubr.f32.vlgmr.msra.gmra.mrb[22].mxu1 %v33445_v28 }
 0x300   : > { %11687 = vmatpush1.msra.mxu0 %v34189_v60  ;;  %12152 = vmatpush1.msra.mxu1 %v34191_v61 }
 0x301   : > { %11750 = vmatprep.mubr.f32.mxu0 %v33189_v0  ;;  %11767 = vmatprep.subr.mxu0 %v11766_v11 }
 0x302   : > { %12215 = vmatprep.mubr.f32.mxu1 %v33189_v0  ;;  %12232 = vmatprep.subr.mxu1 %v12231_v12  ;;  %v322_v12 = vld [vmem:[%s33420_s26 + $0xf0] sm:$0xff] }
 0x303   : > { %11756 = vmatmul.mubr.f32.vlgmr.msra.gmra.mrb[24].mxu0 %v33455_v36  ;;  %12221 = vmatmul.mubr.f32.vlgmr.msra.gmra.mrb[24].mxu1 %v33455_v36  ;;  %v516_v19 = vsel %vm395_vm0, %v322_v12, 0 }
 0x304   : > { %11773 = vmatpush1.msra.mxu0 %v11772_v13  ;;  %12238 = vmatpush1.msra.mxu1 %v12237_v14  ;;  %v323_v13 = vld [vmem:[%s33420_s26 + $0xf8] sm:$0xff]  ;;  %v390_v14 = vcombine.high %v322_v12, %v322_v12  ;;  %v34381_v22 = vand.u32 4294901760, %v516_v19 }
 0x305   : > { %11836 = vmatprep.mubr.f32.mxu0 %v33189_v0  ;;  %11846 = vmatprep.subr.mxu0 %v11763_v62  ;;  %v34331_v62 = vsub.f32 %v512_v55, %v34319_v58  ;;  %v391_v15 = vcombine.high %v323_v13, %v323_v13  ;;  %v520_v20 = vsel %vm395_vm0, %v323_v13, 0 }
 0x306   : > { %12301 = vmatprep.mubr.f32.mxu1 %v33189_v0  ;;  %12311 = vmatprep.subr.mxu1 %v12228_v63  ;;  %v518_v16 = vsel %vm395_vm0, %v390_v14, 0  ;;  %v34383_v23 = vand.u32 4294901760, %v520_v20 }
 0x307   : > { %v522_v17 = vsel %vm395_vm0, %v391_v15, 0  ;;  %v34373_v18 = vand.u32 4294901760, %v518_v16  ;;  %v263_v15 = vld [vmem:[%s33411_s22 + $0x18] sm:$0xff] }
 0x30b   : > { %11838 = vmatmul.mubr.f32.vlgmr.msra.gmra.mrb[24].mxu0 %v33445_v28  ;;  %12303 = vmatmul.mubr.f32.vlgmr.msra.gmra.mrb[24].mxu1 %v33445_v28 }
 0x30c   : > { %11849 = vmatpush1.msra.mxu0 %v34200_v1  ;;  %12314 = vmatpush1.msra.mxu1 %v34203_v2 }
 0x30d   : > { %11912 = vmatprep.mubr.f32.mxu0 %v33189_v0  ;;  %11922 = vmatprep.subr.mxu0 %v34181_v56 }
 0x30e   : > { %12377 = vmatprep.mubr.f32.mxu1 %v33189_v0  ;;  %12387 = vmatprep.subr.mxu1 %v34185_v59 }
 0x313   : > { %11915 = vmatmul.mubr.f32.vlgmr.msra.gmra.mrb[24].mxu0 %v33448_v29  ;;  %12380 = vmatmul.mubr.f32.vlgmr.msra.gmra.mrb[24].mxu1 %v33448_v29 }
 0x314   : > { %11924 = vmatpush1.msra.mxu0 %v34189_v60  ;;  %12389 = vmatpush1.msra.mxu1 %v34191_v61 }
 0x315   : > { %11987 = vmatprep.mubr.f32.mxu0 %v33189_v0  ;;  %12000 = vmatprep.subr.mxu0 %v11764_v3  ;;  %v14095_v3 = vand.u32 4294901760, %v34331_v62 }
 0x316   : > { %12452 = vmatprep.mubr.f32.mxu1 %v33189_v0  ;;  %12465 = vmatprep.subr.mxu1 %v12229_v4 }
 0x317   : > { %v14096_v7 = vsub.f32 %v34331_v62, %v14095_v3 }
 0x319   : > { %v14097_v11 = vand.u32 4294901760, %v14096_v7 }
 0x31b   : > { %11991 = vmatmul.mubr.f32.vlgmr.msra.gmra.mrb[24].mxu0 %v33451_v32  ;;  %12456 = vmatmul.mubr.f32.vlgmr.msra.gmra.mrb[24].mxu1 %v33451_v32 }
 0x31c   : > { %12004 = vmatpush1.msra.mxu0 %v11770_v5  ;;  %12469 = vmatpush1.msra.mxu1 %v12235_v6 }
 0x31d   : > { %12067 = vmatprep.mubr.f32.mxu0 %v33189_v0  ;;  %12076 = vmatprep.subr.mxu0 %v34181_v56  ;;  %v34313_v56 = vand.u32 4294901760, %v514_v52 }
 0x31e   : > { %12532 = vmatprep.mubr.f32.mxu1 %v33189_v0  ;;  %12541 = vmatprep.subr.mxu1 %v34185_v59  ;;  %v13623_v59 = vsub.f32 %v510_v51, %v34309_v53 }
 0x320   : > { %v13624_v63 = vand.u32 4294901760, %v13623_v59 }
 0x322   : > { %v13625_v4 = vsub.f32 %v13623_v59, %v13624_v63 }
 0x323   : > { %12069 = vmatmul.mubr.f32.vlgmr.msra.gmra.mrb[24].mxu0 %v33445_v28  ;;  %12534 = vmatmul.mubr.f32.vlgmr.msra.gmra.mrb[24].mxu1 %v33445_v28 }
 0x324   : > { %12078 = vmatpush1.msra.mxu0 %v34189_v60  ;;  %12543 = vmatpush1.msra.mxu1 %v34191_v61  ;;  %v14088_v60 = vsub.f32 %v514_v52, %v34313_v56  ;;  %v34328_v61 = vsub.f32 %v508_v54, %v34317_v57  ;;  %v13626_v8 = vand.u32 4294901760, %v13625_v4 }
 0x325   : > { %12141 = vmatprep.mubr.f32.mxu0 %v33189_v0  ;;  %12606 = vmatprep.mubr.f32.mxu1 %v33189_v0 }
 0x326   : > { %12615 = vmatprep.subr.mxu0 %v34245_v21  ;;  %13080 = vmatprep.subr.mxu1 %v34249_v24  ;;  %v14089_v1 = vand.u32 4294901760, %v14088_v60  ;;  %v13630_v2 = vand.u32 4294901760, %v34328_v61 }
 0x328   : > { %v14090_v5 = vsub.f32 %v14088_v60, %v14089_v1  ;;  %v13631_v6 = vsub.f32 %v34328_v61, %v13630_v2 }
 0x32a   : > { %v14091_v9 = vand.u32 4294901760, %v14090_v5  ;;  %v13632_v10 = vand.u32 4294901760, %v13631_v6 }
 0x32b   : > { %12143 = vmatmul.mubr.f32.vlgmr.msra.gmra.mrb[24].mxu0 %v33445_v28  ;;  %12608 = vmatmul.mubr.f32.vlgmr.msra.gmra.mrb[24].mxu1 %v33445_v28 }
 0x32c   : > { %12617 = vmatpush1.msra.mxu0 %v34253_v25  ;;  %13082 = vmatpush1.msra.mxu1 %v34255_v26 }
 0x32d   : > { %12680 = vmatprep.mubr.f32.mxu0 %v33189_v0  ;;  %12697 = vmatprep.subr.mxu0 %v12696_v43 }
 0x32e   : > { %13145 = vmatprep.mubr.f32.mxu1 %v33189_v0  ;;  %13162 = vmatprep.subr.mxu1 %v13161_v44  ;;  %v261_v44 = vld [vmem:[%s33411_s22 + $0x8] sm:$0xff] }
 0x32f   : > { %12686 = vmatmul.mubr.f32.vlgmr.msra.gmra.mrb[26].mxu0 %v33455_v36  ;;  %13151 = vmatmul.mubr.f32.vlgmr.msra.gmra.mrb[26].mxu1 %v33455_v36  ;;  %v15474_v52 = vsel %vm395_vm0, %v261_v44, 0 }
 0x330   : > { %12703 = vmatpush1.msra.mxu0 %v12702_v45  ;;  %13168 = vmatpush1.msra.mxu1 %v13167_v46  ;;  %v15437_v46 = vcombine.high %v261_v44, %v261_v44 }
 0x331   : > { %12766 = vmatprep.mubr.f32.mxu0 %v33189_v0  ;;  %12776 = vmatprep.subr.mxu0 %v12693_v27  ;;  %v34395_v27 = vsub.f32 %v520_v20, %v34383_v23 }
 0x332   : > { %13231 = vmatprep.mubr.f32.mxu1 %v33189_v0  ;;  %13241 = vmatprep.subr.mxu1 %v13158_v30  ;;  %v15476_v48 = vsel %vm395_vm0, %v15437_v46, 0  ;;  %v264_v46 = vld [vmem:[%s33411_s22 + $0x20] sm:$0xff] }
 0x337   : > { %12768 = vmatmul.mubr.f32.vlgmr.msra.gmra.mrb[26].mxu0 %v33445_v28  ;;  %13233 = vmatmul.mubr.f32.vlgmr.msra.gmra.mrb[26].mxu1 %v33445_v28 }
 0x338   : > { %12779 = vmatpush1.msra.mxu0 %v34264_v31  ;;  %13244 = vmatpush1.msra.mxu1 %v34267_v33 }
 0x339   : > { %12842 = vmatprep.mubr.f32.mxu0 %v33189_v0  ;;  %12852 = vmatprep.subr.mxu0 %v34245_v21 }
 0x33a   : > { %13307 = vmatprep.mubr.f32.mxu1 %v33189_v0  ;;  %13317 = vmatprep.subr.mxu1 %v34249_v24 }
 0x33f   : > { %12845 = vmatmul.mubr.f32.vlgmr.msra.gmra.mrb[26].mxu0 %v33448_v29  ;;  %13310 = vmatmul.mubr.f32.vlgmr.msra.gmra.mrb[26].mxu1 %v33448_v29 }
 0x340   : > { %12854 = vmatpush1.msra.mxu0 %v34253_v25  ;;  %13319 = vmatpush1.msra.mxu1 %v34255_v26 }
 0x341   : > { %12917 = vmatprep.mubr.f32.mxu0 %v33189_v0  ;;  %12930 = vmatprep.subr.mxu0 %v12694_v34  ;;  %v15025_v34 = vand.u32 4294901760, %v34395_v27 }
 0x342   : > { %13382 = vmatprep.mubr.f32.mxu1 %v33189_v0  ;;  %13395 = vmatprep.subr.mxu1 %v13159_v35 }
 0x343   : > { %v15026_v39 = vsub.f32 %v34395_v27, %v15025_v34 }
 0x345   : > { %v15027_v43 = vand.u32 4294901760, %v15026_v39 }
 0x347   : > { %12921 = vmatmul.mubr.f32.vlgmr.msra.gmra.mrb[26].mxu0 %v33451_v32  ;;  %13386 = vmatmul.mubr.f32.vlgmr.msra.gmra.mrb[26].mxu1 %v33451_v32 }
 0x348   : > { %12934 = vmatpush1.msra.mxu0 %v12700_v37  ;;  %13399 = vmatpush1.msra.mxu1 %v13165_v38 }
 0x349   : > { %12997 = vmatprep.mubr.f32.mxu0 %v33189_v0  ;;  %13006 = vmatprep.subr.mxu0 %v34245_v21  ;;  %v34377_v21 = vand.u32 4294901760, %v522_v17 }
 0x34a   : > { %13462 = vmatprep.mubr.f32.mxu1 %v33189_v0  ;;  %13471 = vmatprep.subr.mxu1 %v34249_v24  ;;  %v14553_v24 = vsub.f32 %v518_v16, %v34373_v18  ;;  %v33193_v16 = vmov 10  }
 0x34c   : > { %v14554_v30 = vand.u32 4294901760, %v14553_v24 }
 0x34e   : > { %v14555_v35 = vsub.f32 %v14553_v24, %v14554_v30 }
 0x34f   : > { %12999 = vmatmul.mubr.f32.vlgmr.msra.gmra.mrb[26].mxu0 %v33445_v28  ;;  %13464 = vmatmul.mubr.f32.vlgmr.msra.gmra.mrb[26].mxu1 %v33445_v28 }
 0x350   : > { %13008 = vmatpush1.msra.mxu0 %v34253_v25  ;;  %13473 = vmatpush1.msra.mxu1 %v34255_v26  ;;  %v15018_v25 = vsub.f32 %v522_v17, %v34377_v21  ;;  %v34392_v26 = vsub.f32 %v516_v19, %v34381_v22  ;;  %v14556_v40 = vand.u32 4294901760, %v14555_v35 }
 0x351   : > { %13071 = vmatprep.mubr.f32.mxu0 %v33189_v0  ;;  %13536 = vmatprep.mubr.f32.mxu1 %v33189_v0 }
 0x352   : > { %13545 = vmatprep.subr.mxu0 %v34309_v53  ;;  %14010 = vmatprep.subr.mxu1 %v34313_v56  ;;  %v15019_v31 = vand.u32 4294901760, %v15018_v25  ;;  %v14560_v33 = vand.u32 4294901760, %v34392_v26 }
 0x354   : > { %v15020_v37 = vsub.f32 %v15018_v25, %v15019_v31  ;;  %v14561_v38 = vsub.f32 %v34392_v26, %v14560_v33 }
 0x356   : > { %v15021_v41 = vand.u32 4294901760, %v15020_v37  ;;  %v14562_v42 = vand.u32 4294901760, %v14561_v38 }
 0x357   : > { %13073 = vmatmul.mubr.f32.vlgmr.msra.gmra.mrb[26].mxu0 %v33445_v28  ;;  %13538 = vmatmul.mubr.f32.vlgmr.msra.gmra.mrb[26].mxu1 %v33445_v28 }
 0x358   : > { %13547 = vmatpush1.msra.mxu0 %v34317_v57  ;;  %14012 = vmatpush1.msra.mxu1 %v34319_v58 }
 0x359   : > { %13610 = vmatprep.mubr.f32.mxu0 %v33189_v0  ;;  %13627 = vmatprep.subr.mxu0 %v13626_v8 }
 0x35a   : > { %14075 = vmatprep.mubr.f32.mxu1 %v33189_v0  ;;  %14092 = vmatprep.subr.mxu1 %v14091_v9  ;;  %v33191_v9 = vmov 8  }
 0x35b   : > { %13616 = vmatmul.mubr.f32.vlgmr.msra.gmra.mrb[28].mxu0 %v33455_v36  ;;  %14081 = vmatmul.mubr.f32.vlgmr.msra.gmra.mrb[28].mxu1 %v33455_v36 }
 0x35c   : > { %13633 = vmatpush1.msra.mxu0 %v13632_v10  ;;  %14098 = vmatpush1.msra.mxu1 %v14097_v11  ;;  %v33192_v10 = vmov 9  }
 0x35d   : > { %13696 = vmatprep.mubr.f32.mxu0 %v33189_v0  ;;  %13706 = vmatprep.subr.mxu0 %v13623_v59 }
 0x35e   : > { %14161 = vmatprep.mubr.f32.mxu1 %v33189_v0  ;;  %14171 = vmatprep.subr.mxu1 %v14088_v60 }
 0x35f   : > { %32781 = vset.pattern.permute.xlu0 %v33191_v9  ;;  %32782 = vset.pattern.permute.xlu1 %v33192_v10 }
 0x360   : > { %30479 = vperm.xlu0 %32781, %v34437_v49   ;;  %30611 = vperm.xlu1 %32782, %v34437_v49  }
 0x363   : > { %13698 = vmatmul.mubr.f32.vlgmr.msra.gmra.mrb[28].mxu0 %v33445_v28  ;;  %14163 = vmatmul.mubr.f32.vlgmr.msra.gmra.mrb[28].mxu1 %v33445_v28 }
 0x364   : > { %13709 = vmatpush1.msra.mxu0 %v34328_v61  ;;  %14174 = vmatpush1.msra.mxu1 %v34331_v62 }
 0x365   : > { %13772 = vmatprep.mubr.f32.mxu0 %v33189_v0  ;;  %13782 = vmatprep.subr.mxu0 %v34309_v53 }
 0x366   : > { %14237 = vmatprep.mubr.f32.mxu1 %v33189_v0  ;;  %14247 = vmatprep.subr.mxu1 %v34313_v56 }
 0x367   : > { %32783 = vset.pattern.permute.xlu1 %v33193_v16  ;;  %32784 = vset.pattern.permute.xlu0 %v33193_v16 }
 0x368   : > { %31063 = vperm.xlu1 %32783, %v34437_v49  }
 0x36b   : > { %13775 = vmatmul.mubr.f32.vlgmr.msra.gmra.mrb[28].mxu0 %v33448_v29  ;;  %14240 = vmatmul.mubr.f32.vlgmr.msra.gmra.mrb[28].mxu1 %v33448_v29 }
 0x36c   : > { %13784 = vmatpush1.msra.mxu0 %v34317_v57  ;;  %14249 = vmatpush1.msra.mxu1 %v34319_v58 }
 0x36d   : > { %13847 = vmatprep.mubr.f32.mxu0 %v33189_v0  ;;  %13860 = vmatprep.subr.mxu0 %v13624_v63 }
 0x36e   : > { %14312 = vmatprep.mubr.f32.mxu1 %v33189_v0  ;;  %14325 = vmatprep.subr.mxu1 %v14089_v1 }
 0x373   : > { %13851 = vmatmul.mubr.f32.vlgmr.msra.gmra.mrb[28].mxu0 %v33451_v32  ;;  %14316 = vmatmul.mubr.f32.vlgmr.msra.gmra.mrb[28].mxu1 %v33451_v32 }
 0x374   : > { %13864 = vmatpush1.msra.mxu0 %v13630_v2  ;;  %14329 = vmatpush1.msra.mxu1 %v14095_v3 }
 0x375   : > { %13927 = vmatprep.mubr.f32.mxu0 %v33189_v0  ;;  %13936 = vmatprep.subr.mxu0 %v34309_v53  ;;  %v34445_v53 = vand.u32 4294901760, %v15476_v48 }
 0x376   : > { %14392 = vmatprep.mubr.f32.mxu1 %v33189_v0  ;;  %14401 = vmatprep.subr.mxu1 %v34313_v56  ;;  %v34453_v56 = vand.u32 4294901760, %v15474_v52 }
 0x378   : > { %v34472_v60 = vsub.f32 %v15474_v52, %v34453_v56  ;;  %v15486_v52 = vsel %vm395_vm0, %v264_v46, 0 }
 0x37a   : > { %v16149_v2 = vand.u32 4294901760, %v34472_v60 }
 0x37b   : > { %13929 = vmatmul.mubr.f32.vlgmr.msra.gmra.mrb[28].mxu0 %v33445_v28  ;;  %14394 = vmatmul.mubr.f32.vlgmr.msra.gmra.mrb[28].mxu1 %v33445_v28 }
 0x37c   : > { %13938 = vmatpush1.msra.mxu0 %v34317_v57  ;;  %14403 = vmatpush1.msra.mxu1 %v34319_v58  ;;  %v34463_v58 = vsub.f32 %v15476_v48, %v34445_v53  ;;  %v16150_v7 = vsub.f32 %v34472_v60, %v16149_v2  ;;  %v15440_v48 = vcombine.high %v264_v46, %v264_v46 }
 0x37d   : > { %14001 = vmatprep.mubr.f32.mxu0 %v33189_v0  ;;  %14466 = vmatprep.mubr.f32.mxu1 %v33189_v0 }
 0x37e   : > { %14475 = vmatprep.subr.mxu0 %v34373_v18  ;;  %14940 = vmatprep.subr.mxu1 %v34377_v21  ;;  %v16143_v62 = vand.u32 4294901760, %v34463_v58  ;;  %v16151_v14 = vand.u32 4294901760, %v16150_v7 }
 0x380   : > { %v16144_v4 = vsub.f32 %v34463_v58, %v16143_v62 }
 0x382   : > { %v16145_v11 = vand.u32 4294901760, %v16144_v4 }
 0x383   : > { %14003 = vmatmul.mubr.f32.vlgmr.msra.gmra.mrb[28].mxu0 %v33445_v28  ;;  %14468 = vmatmul.mubr.f32.vlgmr.msra.gmra.mrb[28].mxu1 %v33445_v28 }
 0x384   : > { %14477 = vmatpush1.msra.mxu0 %v34381_v22  ;;  %14942 = vmatpush1.msra.mxu1 %v34383_v23 }
 0x385   : > { %14540 = vmatprep.mubr.f32.mxu0 %v33189_v0  ;;  %14557 = vmatprep.subr.mxu0 %v14556_v40 }
 0x386   : > { %15005 = vmatprep.mubr.f32.mxu1 %v33189_v0  ;;  %15022 = vmatprep.subr.mxu1 %v15021_v41 }
 0x387   : > { %14546 = vmatmul.mubr.f32.vlgmr.msra.gmra.mrb[30].mxu0 %v33455_v36  ;;  %15011 = vmatmul.mubr.f32.vlgmr.msra.gmra.mrb[30].mxu1 %v33455_v36  ;;  %v260_v36 = vld [vmem:[%s33411_s22] sm:$0xff] }
 0x388   : > { %14563 = vmatpush1.msra.mxu0 %v14562_v42  ;;  %15028 = vmatpush1.msra.mxu1 %v15027_v43  ;;  %v15436_v45 = vcombine.high %v260_v36, %v260_v36  ;;  %v15470_v51 = vsel %vm395_vm0, %v260_v36, 0 }
 0x389   : > { %14626 = vmatprep.mubr.f32.mxu0 %v33189_v0  ;;  %14636 = vmatprep.subr.mxu0 %v14553_v24  ;;  %v34451_v55 = vand.u32 4294901760, %v15470_v51 }
 0x38a   : > { %15091 = vmatprep.mubr.f32.mxu1 %v33189_v0  ;;  %15101 = vmatprep.subr.mxu1 %v15018_v25  ;;  %v15472_v47 = vsel %vm395_vm0, %v15436_v45, 0 }
 0x38b   : > { %v34441_v50 = vand.u32 4294901760, %v15472_v47  ;;  %v34469_v59 = vsub.f32 %v15470_v51, %v34451_v55 }
 0x38d   : > { %v34458_v57 = vsub.f32 %v15472_v47, %v34441_v50  ;;  %v15684_v1 = vand.u32 4294901760, %v34469_v59  ;;  %v265_v47 = vld [vmem:[%s33411_s22 + $0x28] sm:$0xff] }
 0x38f   : > { %14628 = vmatmul.mubr.f32.vlgmr.msra.gmra.mrb[30].mxu0 %v33445_v28  ;;  %15093 = vmatmul.mubr.f32.vlgmr.msra.gmra.mrb[30].mxu1 %v33445_v28  ;;  %v15678_v61 = vand.u32 4294901760, %v34458_v57  ;;  %v15685_v6 = vsub.f32 %v34469_v59, %v15684_v1 }
 0x390   : > { %14639 = vmatpush1.msra.mxu0 %v34392_v26  ;;  %15104 = vmatpush1.msra.mxu1 %v34395_v27 }
 0x391   : > { %14702 = vmatprep.mubr.f32.mxu0 %v33189_v0  ;;  %14712 = vmatprep.subr.mxu0 %v34373_v18  ;;  %v15679_v3 = vsub.f32 %v34458_v57, %v15678_v61  ;;  %v15686_v13 = vand.u32 4294901760, %v15685_v6 }
 0x392   : > { %15167 = vmatprep.mubr.f32.mxu1 %v33189_v0  ;;  %15177 = vmatprep.subr.mxu1 %v34377_v21 }
 0x393   : > { %v15680_v8 = vand.u32 4294901760, %v15679_v3 }
 0x397   : > { %14705 = vmatmul.mubr.f32.vlgmr.msra.gmra.mrb[30].mxu0 %v33448_v29  ;;  %15170 = vmatmul.mubr.f32.vlgmr.msra.gmra.mrb[30].mxu1 %v33448_v29  ;;  %v15468_v29 = vsel %vm392_vm1, %v34437_v49, 0  ;;  %v15441_v49 = vcombine.high %v265_v47, %v265_v47 }
 0x398   : > { %14714 = vmatpush1.msra.mxu0 %v34381_v22  ;;  %15179 = vmatpush1.msra.mxu1 %v34383_v23  ;;  %v34447_v54 = vand.u32 4294901760, %v15468_v29 }
 0x399   : > { %14777 = vmatprep.mubr.f32.mxu0 %v33189_v0  ;;  %14790 = vmatprep.subr.mxu0 %v14554_v30 }
 0x39a   : > { %15242 = vmatprep.mubr.f32.mxu1 %v33189_v0  ;;  %15255 = vmatprep.subr.mxu1 %v15019_v31 }
 0x39f   : > { %14781 = vmatmul.mubr.f32.vlgmr.msra.gmra.mrb[30].mxu0 %v33451_v32  ;;  %15246 = vmatmul.mubr.f32.vlgmr.msra.gmra.mrb[30].mxu1 %v33451_v32  ;;  %v34466_v32 = vsub.f32 %v15468_v29, %v34447_v54  ;;  %v15488_v29 = vsel %vm395_vm0, %v15440_v48, 0 }
 0x3a0   : > { %14794 = vmatpush1.msra.mxu0 %v14560_v33  ;;  %15259 = vmatpush1.msra.mxu1 %v15025_v34  ;;  %v34610_v51 = vand.u32 4294901760, %v15488_v29 }
 0x3a1   : > { %14857 = vmatprep.mubr.f32.mxu0 %v33189_v0  ;;  %14866 = vmatprep.subr.mxu0 %v34373_v18  ;;  %v34479_v63 = vand.u32 4294901760, %v34466_v32  ;;  %v15439_v18 = vcombine.high %v263_v15, %v263_v15 }
 0x3a2   : > { %15322 = vmatprep.mubr.f32.mxu1 %v33189_v0  ;;  %15331 = vmatprep.subr.mxu1 %v34377_v21 }
 0x3a3   : > { %v15668_v5 = vsub.f32 %v34466_v32, %v34479_v63  ;;  %v15484_v20 = vsel %vm395_vm0, %v15439_v18, 0 }
 0x3a4   : > { %v34546_v24 = vand.u32 4294901760, %v15484_v20 }
 0x3a5   : > { %v34507_v12 = vand.u32 4294901760, %v15668_v5 }
 0x3a6   : > { %v17072_v30 = vsub.f32 %v15484_v20, %v34546_v24 }
 0x3a7   : > { %14859 = vmatmul.mubr.f32.vlgmr.msra.gmra.mrb[30].mxu0 %v33445_v28  ;;  %15324 = vmatmul.mubr.f32.vlgmr.msra.gmra.mrb[30].mxu1 %v33445_v28 }
 0x3a8   : > { %14868 = vmatpush1.msra.mxu0 %v34381_v22  ;;  %15333 = vmatpush1.msra.mxu1 %v34383_v23  ;;  %v15482_v23 = vsel %vm395_vm0, %v263_v15, 0  ;;  %v17073_v35 = vand.u32 4294901760, %v17072_v30 }
 0x3a9   : > { %14931 = vmatprep.mubr.f32.mxu0 %v33189_v0  ;;  %15396 = vmatprep.mubr.f32.mxu1 %v33189_v0  ;;  %v34556_v26 = vand.u32 4294901760, %v15482_v23 }
 0x3aa   : > { %15599 = vmatprep.subr.mxu0 %v34441_v50  ;;  %16064 = vmatprep.subr.mxu1 %v34445_v53  ;;  %v17074_v40 = vsub.f32 %v17072_v30, %v17073_v35 }
 0x3ab   : > { %v34568_v33 = vsub.f32 %v15482_v23, %v34556_v26 }
 0x3ac   : > { %v17075_v36 = vand.u32 4294901760, %v17074_v40 }
 0x3ad   : > { %v17079_v38 = vand.u32 4294901760, %v34568_v33 }
 0x3af   : > { %14933 = vmatmul.mubr.f32.vlgmr.msra.gmra.mrb[30].mxu0 %v33445_v28  ;;  %15398 = vmatmul.mubr.f32.vlgmr.msra.gmra.mrb[30].mxu1 %v33445_v28  ;;  %v262_v28 = vld [vmem:[%s33411_s22 + $0x10] sm:$0xff]  ;;  %v17080_v42 = vsub.f32 %v34568_v33, %v17079_v38 }
 0x3b0   : > { %15601 = vmatpush1.msra.mxu0 %v34451_v55  ;;  %16066 = vmatpush1.msra.mxu1 %v34453_v56  ;;  %v15438_v17 = vcombine.high %v262_v28, %v262_v28  ;;  %v15478_v22 = vsel %vm395_vm0, %v262_v28, 0 }
 0x3b1   : > { %15664 = vmatprep.mubr.f32.mxu0 %v33189_v0  ;;  %15681 = vmatprep.subr.mxu0 %v15680_v8  ;;  %v34554_v25 = vand.u32 4294901760, %v15478_v22  ;;  %v17081_v45 = vand.u32 4294901760, %v17080_v42 }
 0x3b2   : > { %16129 = vmatprep.mubr.f32.mxu1 %v33189_v0  ;;  %16146 = vmatprep.subr.mxu1 %v16145_v11  ;;  %v15480_v19 = vsel %vm395_vm0, %v15438_v17, 0 }
 0x3b3   : > { %15670 = vmatmul.mubr.f32.vlgmr.msra.gmra.mrb[0].mxu0 %v34507_v12  ;;  %16135 = vmatmul.mubr.f32.vlgmr.msra.gmra.mrb[0].mxu1 %v34507_v12  ;;  %v34542_v21 = vand.u32 4294901760, %v15480_v19  ;;  %v34565_v31 = vsub.f32 %v15478_v22, %v34554_v25 }
 0x3b4   : > { %15687 = vmatpush1.msra.mxu0 %v15686_v13  ;;  %16152 = vmatpush1.msra.mxu1 %v16151_v14  ;;  %v266_v13 = vld [vmem:[%s33411_s22 + $0x30] sm:$0xff]  ;;  %v267_v14 = vld [vmem:[%s33411_s22 + $0x38] sm:$0xff] }
 0x3b5   : > { %15750 = vmatprep.mubr.f32.mxu0 %v33189_v0  ;;  %15760 = vmatprep.subr.mxu0 %v34458_v57  ;;  %v16607_v27 = vsub.f32 %v15480_v19, %v34542_v21  ;;  %v16614_v37 = vand.u32 4294901760, %v34565_v31  ;;  %v15442_v28 = vcombine.high %v266_v13, %v266_v13  ;;  %v15443_v15 = vcombine.high %v267_v14, %v267_v14 }
 0x3b6   : > { %16215 = vmatprep.mubr.f32.mxu1 %v33189_v0  ;;  %16225 = vmatprep.subr.mxu1 %v34463_v58  ;;  %v17537_v58 = vsub.f32 %v15488_v29, %v34610_v51  ;;  %v15494_v19 = vsel %vm395_vm0, %v266_v13, 0  ;;  %v15498_v20 = vsel %vm395_vm0, %v267_v14, 0 }
 0x3b7   : > { %v16608_v34 = vand.u32 4294901760, %v16607_v27  ;;  %v16615_v41 = vsub.f32 %v34565_v31, %v16614_v37  ;;  %v15496_v16 = vsel %vm395_vm0, %v15442_v28, 0  ;;  %v15500_v17 = vsel %vm395_vm0, %v15443_v15, 0 }
 0x3b8   : > { %v34674_v18 = vand.u32 4294901760, %v15496_v16  ;;  %v34682_v22 = vand.u32 4294901760, %v15494_v19  ;;  %v34684_v23 = vand.u32 4294901760, %v15498_v20 }
 0x3b9   : > { %v16609_v39 = vsub.f32 %v16607_v27, %v16608_v34  ;;  %v16616_v44 = vand.u32 4294901760, %v16615_v41 }
 0x3bb   : > { %15752 = vmatmul.mubr.f32.vlgmr.msra.gmra.mrb[0].mxu0 %v34447_v54  ;;  %16217 = vmatmul.mubr.f32.vlgmr.msra.gmra.mrb[0].mxu1 %v34447_v54  ;;  %v16610_v43 = vand.u32 4294901760, %v16609_v39 }
 0x3bc   : > { %15763 = vmatpush1.msra.mxu0 %v34469_v59  ;;  %16228 = vmatpush1.msra.mxu1 %v34472_v60 }
 0x3bd   : > { %15826 = vmatprep.mubr.f32.mxu0 %v33189_v0  ;;  %15836 = vmatprep.subr.mxu0 %v34441_v50 }
 0x3be   : > { %16291 = vmatprep.mubr.f32.mxu1 %v33189_v0  ;;  %16301 = vmatprep.subr.mxu1 %v34445_v53 }
 0x3c3   : > { %15829 = vmatmul.mubr.f32.vlgmr.msra.gmra.mrb[0].mxu0 %v34466_v32  ;;  %16294 = vmatmul.mubr.f32.vlgmr.msra.gmra.mrb[0].mxu1 %v34466_v32 }
 0x3c4   : > { %15838 = vmatpush1.msra.mxu0 %v34451_v55  ;;  %16303 = vmatpush1.msra.mxu1 %v34453_v56 }
 0x3c5   : > { %15901 = vmatprep.mubr.f32.mxu0 %v33189_v0  ;;  %15914 = vmatprep.subr.mxu0 %v15678_v61 }
 0x3c6   : > { %16366 = vmatprep.mubr.f32.mxu1 %v33189_v0  ;;  %16379 = vmatprep.subr.mxu1 %v16143_v62  ;;  %v17538_v62 = vand.u32 4294901760, %v17537_v58 }
 0x3c8   : > { %v17539_v4 = vsub.f32 %v17537_v58, %v17538_v62 }
 0x3ca   : > { %v17540_v8 = vand.u32 4294901760, %v17539_v4 }
 0x3cb   : > { %15905 = vmatmul.mubr.f32.vlgmr.msra.gmra.mrb[0].mxu0 %v34479_v63  ;;  %16370 = vmatmul.mubr.f32.vlgmr.msra.gmra.mrb[0].mxu1 %v34479_v63 }
 0x3cc   : > { %15918 = vmatpush1.msra.mxu0 %v15684_v1  ;;  %16383 = vmatpush1.msra.mxu1 %v16149_v2 }
 0x3cd   : > { %15981 = vmatprep.mubr.f32.mxu0 %v33189_v0  ;;  %15990 = vmatprep.subr.mxu0 %v34441_v50  ;;  %v15492_v50 = vsel %vm395_vm0, %v15441_v49, 0 }
 0x3ce   : > { %16446 = vmatprep.mubr.f32.mxu1 %v33189_v0  ;;  %16455 = vmatprep.subr.mxu1 %v34445_v53  ;;  %v15490_v53 = vsel %vm395_vm0, %v265_v47, 0 }
 0x3cf   : > { %v34620_v57 = vand.u32 4294901760, %v15490_v53 }
 0x3d1   : > { %v34632_v61 = vsub.f32 %v15490_v53, %v34620_v57 }
 0x3d3   : > { %15983 = vmatmul.mubr.f32.vlgmr.msra.gmra.mrb[0].mxu0 %v34447_v54  ;;  %16448 = vmatmul.mubr.f32.vlgmr.msra.gmra.mrb[0].mxu1 %v34447_v54  ;;  %v18009_v3 = vand.u32 4294901760, %v34632_v61 }
 0x3d4   : > { %15992 = vmatpush1.msra.mxu0 %v34451_v55  ;;  %16457 = vmatpush1.msra.mxu1 %v34453_v56  ;;  %v34614_v55 = vand.u32 4294901760, %v15492_v50  ;;  %v34618_v56 = vand.u32 4294901760, %v15486_v52 }
 0x3d5   : > { %16055 = vmatprep.mubr.f32.mxu0 %v33189_v0  ;;  %16520 = vmatprep.mubr.f32.mxu1 %v33189_v0  ;;  %v18010_v7 = vsub.f32 %v34632_v61, %v18009_v3 }
 0x3d6   : > { %16529 = vmatprep.subr.mxu0 %v34542_v21  ;;  %16994 = vmatprep.subr.mxu1 %v34546_v24  ;;  %v18002_v59 = vsub.f32 %v15492_v50, %v34614_v55  ;;  %v34629_v60 = vsub.f32 %v15486_v52, %v34618_v56 }
 0x3d7   : > { %v18011_v11 = vand.u32 4294901760, %v18010_v7 }
 0x3d8   : > { %v18003_v1 = vand.u32 4294901760, %v18002_v59  ;;  %v17544_v2 = vand.u32 4294901760, %v34629_v60 }
 0x3da   : > { %v18004_v5 = vsub.f32 %v18002_v59, %v18003_v1  ;;  %v17545_v6 = vsub.f32 %v34629_v60, %v17544_v2 }
 0x3db   : > { %16057 = vmatmul.mubr.f32.vlgmr.msra.gmra.mrb[0].mxu0 %v34447_v54  ;;  %16522 = vmatmul.mubr.f32.vlgmr.msra.gmra.mrb[0].mxu1 %v34447_v54 }
 0x3dc   : > { %16531 = vmatpush1.msra.mxu0 %v34554_v25  ;;  %16996 = vmatpush1.msra.mxu1 %v34556_v26  ;;  %v18005_v9 = vand.u32 4294901760, %v18004_v5  ;;  %v17546_v10 = vand.u32 4294901760, %v17545_v6 }
 0x3dd   : > { %16594 = vmatprep.mubr.f32.mxu0 %v33189_v0  ;;  %16611 = vmatprep.subr.mxu0 %v16610_v43 }
 0x3de   : > { %17059 = vmatprep.mubr.f32.mxu1 %v33189_v0  ;;  %17076 = vmatprep.subr.mxu1 %v17075_v36  ;;  %v268_v36 = vld [vmem:[%s33411_s22 + $0x40] sm:$0xff] }
 0x3df   : > { %16600 = vmatmul.mubr.f32.vlgmr.msra.gmra.mrb[2].mxu0 %v34507_v12  ;;  %17065 = vmatmul.mubr.f32.vlgmr.msra.gmra.mrb[2].mxu1 %v34507_v12  ;;  %v15502_v29 = vsel %vm395_vm0, %v268_v36, 0 }
 0x3e0   : > { %16617 = vmatpush1.msra.mxu0 %v16616_v44  ;;  %17082 = vmatpush1.msra.mxu1 %v17081_v45  ;;  %v269_v44 = vld [vmem:[%s33411_s22 + $0x48] sm:$0xff]  ;;  %v15444_v45 = vcombine.high %v268_v36, %v268_v36  ;;  %v34746_v52 = vand.u32 4294901760, %v15502_v29 }
 0x3e1   : > { %16680 = vmatprep.mubr.f32.mxu0 %v33189_v0  ;;  %16690 = vmatprep.subr.mxu0 %v16607_v27  ;;  %v34696_v27 = vsub.f32 %v15498_v20, %v34684_v23  ;;  %v15445_v46 = vcombine.high %v269_v44, %v269_v44  ;;  %v15506_v50 = vsel %vm395_vm0, %v269_v44, 0 }
 0x3e2   : > { %17145 = vmatprep.mubr.f32.mxu1 %v33189_v0  ;;  %17155 = vmatprep.subr.mxu1 %v17072_v30  ;;  %v15504_v47 = vsel %vm395_vm0, %v15444_v45, 0  ;;  %v34748_v53 = vand.u32 4294901760, %v15506_v50 }
 0x3e3   : > { %v15508_v48 = vsel %vm395_vm0, %v15445_v46, 0  ;;  %v34738_v49 = vand.u32 4294901760, %v15504_v47 }
 0x3e7   : > { %16682 = vmatmul.mubr.f32.vlgmr.msra.gmra.mrb[2].mxu0 %v34447_v54  ;;  %17147 = vmatmul.mubr.f32.vlgmr.msra.gmra.mrb[2].mxu1 %v34447_v54 }
 0x3e8   : > { %16693 = vmatpush1.msra.mxu0 %v34565_v31  ;;  %17158 = vmatpush1.msra.mxu1 %v34568_v33 }
 0x3e9   : > { %16756 = vmatprep.mubr.f32.mxu0 %v33189_v0  ;;  %16766 = vmatprep.subr.mxu0 %v34542_v21 }
 0x3ea   : > { %17221 = vmatprep.mubr.f32.mxu1 %v33189_v0  ;;  %17231 = vmatprep.subr.mxu1 %v34546_v24 }
 0x3ef   : > { %16759 = vmatmul.mubr.f32.vlgmr.msra.gmra.mrb[2].mxu0 %v34466_v32  ;;  %17224 = vmatmul.mubr.f32.vlgmr.msra.gmra.mrb[2].mxu1 %v34466_v32 }
 0x3f0   : > { %16768 = vmatpush1.msra.mxu0 %v34554_v25  ;;  %17233 = vmatpush1.msra.mxu1 %v34556_v26 }
 0x3f1   : > { %16831 = vmatprep.mubr.f32.mxu0 %v33189_v0  ;;  %16844 = vmatprep.subr.mxu0 %v16608_v34  ;;  %v18939_v34 = vand.u32 4294901760, %v34696_v27 }
 0x3f2   : > { %17296 = vmatprep.mubr.f32.mxu1 %v33189_v0  ;;  %17309 = vmatprep.subr.mxu1 %v17073_v35 }
 0x3f3   : > { %v18940_v39 = vsub.f32 %v34696_v27, %v18939_v34 }
 0x3f5   : > { %v18941_v43 = vand.u32 4294901760, %v18940_v39 }
 0x3f7   : > { %16835 = vmatmul.mubr.f32.vlgmr.msra.gmra.mrb[2].mxu0 %v34479_v63  ;;  %17300 = vmatmul.mubr.f32.vlgmr.msra.gmra.mrb[2].mxu1 %v34479_v63 }
 0x3f8   : > { %16848 = vmatpush1.msra.mxu0 %v16614_v37  ;;  %17313 = vmatpush1.msra.mxu1 %v17079_v38 }
 0x3f9   : > { %16911 = vmatprep.mubr.f32.mxu0 %v33189_v0  ;;  %16920 = vmatprep.subr.mxu0 %v34542_v21  ;;  %v34678_v21 = vand.u32 4294901760, %v15500_v17 }
 0x3fa   : > { %17376 = vmatprep.mubr.f32.mxu1 %v33189_v0  ;;  %17385 = vmatprep.subr.mxu1 %v34546_v24  ;;  %v18467_v24 = vsub.f32 %v15496_v16, %v34674_v18 }
 0x3fc   : > { %v18468_v30 = vand.u32 4294901760, %v18467_v24 }
 0x3fe   : > { %v18469_v35 = vsub.f32 %v18467_v24, %v18468_v30 }
 0x3ff   : > { %16913 = vmatmul.mubr.f32.vlgmr.msra.gmra.mrb[2].mxu0 %v34447_v54  ;;  %17378 = vmatmul.mubr.f32.vlgmr.msra.gmra.mrb[2].mxu1 %v34447_v54 }
 0x400   : > { %16922 = vmatpush1.msra.mxu0 %v34554_v25  ;;  %17387 = vmatpush1.msra.mxu1 %v34556_v26  ;;  %v18932_v25 = vsub.f32 %v15500_v17, %v34678_v21  ;;  %v34693_v26 = vsub.f32 %v15494_v19, %v34682_v22  ;;  %v18470_v40 = vand.u32 4294901760, %v18469_v35 }
 0x401   : > { %16985 = vmatprep.mubr.f32.mxu0 %v33189_v0  ;;  %17450 = vmatprep.mubr.f32.mxu1 %v33189_v0 }
 0x402   : > { %17459 = vmatprep.subr.mxu0 %v34610_v51  ;;  %17924 = vmatprep.subr.mxu1 %v34614_v55  ;;  %v18933_v31 = vand.u32 4294901760, %v18932_v25  ;;  %v18474_v33 = vand.u32 4294901760, %v34693_v26 }
 0x404   : > { %v18934_v37 = vsub.f32 %v18932_v25, %v18933_v31  ;;  %v18475_v38 = vsub.f32 %v34693_v26, %v18474_v33 }
 0x406   : > { %v18935_v41 = vand.u32 4294901760, %v18934_v37  ;;  %v18476_v42 = vand.u32 4294901760, %v18475_v38 }
 0x407   : > { %16987 = vmatmul.mubr.f32.vlgmr.msra.gmra.mrb[2].mxu0 %v34447_v54  ;;  %17452 = vmatmul.mubr.f32.vlgmr.msra.gmra.mrb[2].mxu1 %v34447_v54 }
 0x408   : > { %17461 = vmatpush1.msra.mxu0 %v34618_v56  ;;  %17926 = vmatpush1.msra.mxu1 %v34620_v57 }
 0x409   : > { %17524 = vmatprep.mubr.f32.mxu0 %v33189_v0  ;;  %17541 = vmatprep.subr.mxu0 %v17540_v8 }
 0x40a   : > { %17989 = vmatprep.mubr.f32.mxu1 %v33189_v0  ;;  %18006 = vmatprep.subr.mxu1 %v18005_v9  ;;  %v270_v9 = vld [vmem:[%s33411_s22 + $0x50] sm:$0xff] }
 0x40b   : > { %17530 = vmatmul.mubr.f32.vlgmr.msra.gmra.mrb[4].mxu0 %v34507_v12  ;;  %17995 = vmatmul.mubr.f32.vlgmr.msra.gmra.mrb[4].mxu1 %v34507_v12  ;;  %v15510_v16 = vsel %vm395_vm0, %v270_v9, 0 }
 0x40c   : > { %17547 = vmatpush1.msra.mxu0 %v17546_v10  ;;  %18012 = vmatpush1.msra.mxu1 %v18011_v11  ;;  %v271_v10 = vld [vmem:[%s33411_s22 + $0x58] sm:$0xff]  ;;  %v15446_v11 = vcombine.high %v270_v9, %v270_v9  ;;  %v34810_v19 = vand.u32 4294901760, %v15510_v16 }
 0x40d   : > { %17610 = vmatprep.mubr.f32.mxu0 %v33189_v0  ;;  %17620 = vmatprep.subr.mxu0 %v17537_v58  ;;  %v34760_v58 = vsub.f32 %v15506_v50, %v34748_v53  ;;  %v15447_v13 = vcombine.high %v271_v10, %v271_v10  ;;  %v15514_v17 = vsel %vm395_vm0, %v271_v10, 0 }
 0x40e   : > { %18075 = vmatprep.mubr.f32.mxu1 %v33189_v0  ;;  %18085 = vmatprep.subr.mxu1 %v18002_v59  ;;  %v15512_v14 = vsel %vm395_vm0, %v15446_v11, 0  ;;  %v34812_v20 = vand.u32 4294901760, %v15514_v17 }
 0x40f   : > { %v15516_v28 = vsel %vm395_vm0, %v15447_v13, 0  ;;  %v34802_v15 = vand.u32 4294901760, %v15512_v14 }
 0x413   : > { %17612 = vmatmul.mubr.f32.vlgmr.msra.gmra.mrb[4].mxu0 %v34447_v54  ;;  %18077 = vmatmul.mubr.f32.vlgmr.msra.gmra.mrb[4].mxu1 %v34447_v54 }
 0x414   : > { %17623 = vmatpush1.msra.mxu0 %v34629_v60  ;;  %18088 = vmatpush1.msra.mxu1 %v34632_v61 }
 0x415   : > { %17686 = vmatprep.mubr.f32.mxu0 %v33189_v0  ;;  %17696 = vmatprep.subr.mxu0 %v34610_v51 }
 0x416   : > { %18151 = vmatprep.mubr.f32.mxu1 %v33189_v0  ;;  %18161 = vmatprep.subr.mxu1 %v34614_v55 }
 0x41b   : > { %17689 = vmatmul.mubr.f32.vlgmr.msra.gmra.mrb[4].mxu0 %v34466_v32  ;;  %18154 = vmatmul.mubr.f32.vlgmr.msra.gmra.mrb[4].mxu1 %v34466_v32 }
 0x41c   : > { %17698 = vmatpush1.msra.mxu0 %v34618_v56  ;;  %18163 = vmatpush1.msra.mxu1 %v34620_v57 }
 0x41d   : > { %17761 = vmatprep.mubr.f32.mxu0 %v33189_v0  ;;  %17774 = vmatprep.subr.mxu0 %v17538_v62  ;;  %v19869_v62 = vand.u32 4294901760, %v34760_v58 }
 0x41e   : > { %18226 = vmatprep.mubr.f32.mxu1 %v33189_v0  ;;  %18239 = vmatprep.subr.mxu1 %v18003_v1 }
 0x41f   : > { %v19870_v4 = vsub.f32 %v34760_v58, %v19869_v62 }
 0x421   : > { %v19871_v8 = vand.u32 4294901760, %v19870_v4 }
 0x423   : > { %17765 = vmatmul.mubr.f32.vlgmr.msra.gmra.mrb[4].mxu0 %v34479_v63  ;;  %18230 = vmatmul.mubr.f32.vlgmr.msra.gmra.mrb[4].mxu1 %v34479_v63 }
 0x424   : > { %17778 = vmatpush1.msra.mxu0 %v17544_v2  ;;  %18243 = vmatpush1.msra.mxu1 %v18009_v3 }
 0x425   : > { %17841 = vmatprep.mubr.f32.mxu0 %v33189_v0  ;;  %17850 = vmatprep.subr.mxu0 %v34610_v51  ;;  %v34742_v51 = vand.u32 4294901760, %v15508_v48 }
 0x426   : > { %18306 = vmatprep.mubr.f32.mxu1 %v33189_v0  ;;  %18315 = vmatprep.subr.mxu1 %v34614_v55  ;;  %v19397_v55 = vsub.f32 %v15504_v47, %v34738_v49 }
 0x428   : > { %v19398_v59 = vand.u32 4294901760, %v19397_v55 }
 0x42a   : > { %v19399_v1 = vsub.f32 %v19397_v55, %v19398_v59 }
 0x42b   : > { %17843 = vmatmul.mubr.f32.vlgmr.msra.gmra.mrb[4].mxu0 %v34447_v54  ;;  %18308 = vmatmul.mubr.f32.vlgmr.msra.gmra.mrb[4].mxu1 %v34447_v54 }
 0x42c   : > { %17852 = vmatpush1.msra.mxu0 %v34618_v56  ;;  %18317 = vmatpush1.msra.mxu1 %v34620_v57  ;;  %v19862_v56 = vsub.f32 %v15508_v48, %v34742_v51  ;;  %v34757_v57 = vsub.f32 %v15502_v29, %v34746_v52  ;;  %v19400_v5 = vand.u32 4294901760, %v19399_v1 }
 0x42d   : > { %17915 = vmatprep.mubr.f32.mxu0 %v33189_v0  ;;  %18380 = vmatprep.mubr.f32.mxu1 %v33189_v0 }
 0x42e   : > { %18389 = vmatprep.subr.mxu0 %v34674_v18  ;;  %18854 = vmatprep.subr.mxu1 %v34678_v21  ;;  %v19863_v60 = vand.u32 4294901760, %v19862_v56  ;;  %v19404_v61 = vand.u32 4294901760, %v34757_v57 }
 0x430   : > { %v19864_v2 = vsub.f32 %v19862_v56, %v19863_v60  ;;  %v19405_v3 = vsub.f32 %v34757_v57, %v19404_v61 }
 0x432   : > { %v19865_v6 = vand.u32 4294901760, %v19864_v2  ;;  %v19406_v7 = vand.u32 4294901760, %v19405_v3 }
 0x433   : > { %17917 = vmatmul.mubr.f32.vlgmr.msra.gmra.mrb[4].mxu0 %v34447_v54  ;;  %18382 = vmatmul.mubr.f32.vlgmr.msra.gmra.mrb[4].mxu1 %v34447_v54 }
 0x434   : > { %18391 = vmatpush1.msra.mxu0 %v34682_v22  ;;  %18856 = vmatpush1.msra.mxu1 %v34684_v23 }
 0x435   : > { %18454 = vmatprep.mubr.f32.mxu0 %v33189_v0  ;;  %18471 = vmatprep.subr.mxu0 %v18470_v40 }
 0x436   : > { %18919 = vmatprep.mubr.f32.mxu1 %v33189_v0  ;;  %18936 = vmatprep.subr.mxu1 %v18935_v41  ;;  %v272_v41 = vld [vmem:[%s33411_s22 + $0x60] sm:$0xff] }
 0x437   : > { %18460 = vmatmul.mubr.f32.vlgmr.msra.gmra.mrb[6].mxu0 %v34507_v12  ;;  %18925 = vmatmul.mubr.f32.vlgmr.msra.gmra.mrb[6].mxu1 %v34507_v12  ;;  %v15518_v47 = vsel %vm395_vm0, %v272_v41, 0 }
 0x438   : > { %18477 = vmatpush1.msra.mxu0 %v18476_v42  ;;  %18942 = vmatpush1.msra.mxu1 %v18941_v43  ;;  %v273_v42 = vld [vmem:[%s33411_s22 + $0x68] sm:$0xff]  ;;  %v15448_v43 = vcombine.high %v272_v41, %v272_v41  ;;  %v34874_v29 = vand.u32 4294901760, %v15518_v47 }
 0x439   : > { %18540 = vmatprep.mubr.f32.mxu0 %v33189_v0  ;;  %18550 = vmatprep.subr.mxu0 %v18467_v24  ;;  %v34824_v24 = vsub.f32 %v15514_v17, %v34812_v20  ;;  %v15449_v36 = vcombine.high %v273_v42, %v273_v42  ;;  %v15522_v48 = vsel %vm395_vm0, %v273_v42, 0 }
 0x43a   : > { %19005 = vmatprep.mubr.f32.mxu1 %v33189_v0  ;;  %19015 = vmatprep.subr.mxu1 %v18932_v25  ;;  %v15520_v44 = vsel %vm395_vm0, %v15448_v43, 0  ;;  %v34876_v50 = vand.u32 4294901760, %v15522_v48 }
 0x43b   : > { %v15524_v45 = vsel %vm395_vm0, %v15449_v36, 0  ;;  %v34866_v46 = vand.u32 4294901760, %v15520_v44 }
 0x43f   : > { %18542 = vmatmul.mubr.f32.vlgmr.msra.gmra.mrb[6].mxu0 %v34447_v54  ;;  %19007 = vmatmul.mubr.f32.vlgmr.msra.gmra.mrb[6].mxu1 %v34447_v54 }
 0x440   : > { %18553 = vmatpush1.msra.mxu0 %v34693_v26  ;;  %19018 = vmatpush1.msra.mxu1 %v34696_v27 }
 0x441   : > { %18616 = vmatprep.mubr.f32.mxu0 %v33189_v0  ;;  %18626 = vmatprep.subr.mxu0 %v34674_v18 }
 0x442   : > { %19081 = vmatprep.mubr.f32.mxu1 %v33189_v0  ;;  %19091 = vmatprep.subr.mxu1 %v34678_v21 }
 0x447   : > { %18619 = vmatmul.mubr.f32.vlgmr.msra.gmra.mrb[6].mxu0 %v34466_v32  ;;  %19084 = vmatmul.mubr.f32.vlgmr.msra.gmra.mrb[6].mxu1 %v34466_v32 }
 0x448   : > { %18628 = vmatpush1.msra.mxu0 %v34682_v22  ;;  %19093 = vmatpush1.msra.mxu1 %v34684_v23 }
 0x449   : > { %18691 = vmatprep.mubr.f32.mxu0 %v33189_v0  ;;  %18704 = vmatprep.subr.mxu0 %v18468_v30  ;;  %v20799_v30 = vand.u32 4294901760, %v34824_v24 }
 0x44a   : > { %19156 = vmatprep.mubr.f32.mxu1 %v33189_v0  ;;  %19169 = vmatprep.subr.mxu1 %v18933_v31 }
 0x44b   : > { %v20800_v35 = vsub.f32 %v34824_v24, %v20799_v30 }
 0x44d   : > { %v20801_v40 = vand.u32 4294901760, %v20800_v35 }
 0x44f   : > { %18695 = vmatmul.mubr.f32.vlgmr.msra.gmra.mrb[6].mxu0 %v34479_v63  ;;  %19160 = vmatmul.mubr.f32.vlgmr.msra.gmra.mrb[6].mxu1 %v34479_v63 }
 0x450   : > { %18708 = vmatpush1.msra.mxu0 %v18474_v33  ;;  %19173 = vmatpush1.msra.mxu1 %v18939_v34 }
 0x451   : > { %18771 = vmatprep.mubr.f32.mxu0 %v33189_v0  ;;  %18780 = vmatprep.subr.mxu0 %v34674_v18  ;;  %v34806_v18 = vand.u32 4294901760, %v15516_v28 }
 0x452   : > { %19236 = vmatprep.mubr.f32.mxu1 %v33189_v0  ;;  %19245 = vmatprep.subr.mxu1 %v34678_v21  ;;  %v20327_v21 = vsub.f32 %v15512_v14, %v34802_v15 }
 0x454   : > { %v20328_v25 = vand.u32 4294901760, %v20327_v21 }
 0x456   : > { %v20329_v31 = vsub.f32 %v20327_v21, %v20328_v25 }
 0x457   : > { %18773 = vmatmul.mubr.f32.vlgmr.msra.gmra.mrb[6].mxu0 %v34447_v54  ;;  %19238 = vmatmul.mubr.f32.vlgmr.msra.gmra.mrb[6].mxu1 %v34447_v54 }
 0x458   : > { %18782 = vmatpush1.msra.mxu0 %v34682_v22  ;;  %19247 = vmatpush1.msra.mxu1 %v34684_v23  ;;  %v20792_v22 = vsub.f32 %v15516_v28, %v34806_v18  ;;  %v34821_v23 = vsub.f32 %v15510_v16, %v34810_v19  ;;  %v20330_v37 = vand.u32 4294901760, %v20329_v31 }
 0x459   : > { %18845 = vmatprep.mubr.f32.mxu0 %v33189_v0  ;;  %19310 = vmatprep.mubr.f32.mxu1 %v33189_v0 }
 0x45a   : > { %19319 = vmatprep.subr.mxu0 %v34738_v49  ;;  %19784 = vmatprep.subr.mxu1 %v34742_v51  ;;  %v20793_v26 = vand.u32 4294901760, %v20792_v22  ;;  %v20334_v27 = vand.u32 4294901760, %v34821_v23 }
 0x45c   : > { %v20794_v33 = vsub.f32 %v20792_v22, %v20793_v26  ;;  %v20335_v34 = vsub.f32 %v34821_v23, %v20334_v27 }
 0x45e   : > { %v20795_v38 = vand.u32 4294901760, %v20794_v33  ;;  %v20336_v39 = vand.u32 4294901760, %v20335_v34 }
 0x45f   : > { %18847 = vmatmul.mubr.f32.vlgmr.msra.gmra.mrb[6].mxu0 %v34447_v54  ;;  %19312 = vmatmul.mubr.f32.vlgmr.msra.gmra.mrb[6].mxu1 %v34447_v54 }
 0x460   : > { %19321 = vmatpush1.msra.mxu0 %v34746_v52  ;;  %19786 = vmatpush1.msra.mxu1 %v34748_v53 }
 0x461   : > { %19384 = vmatprep.mubr.f32.mxu0 %v33189_v0  ;;  %19401 = vmatprep.subr.mxu0 %v19400_v5  ;;  %v34906_v5 = vpop.permute.xlu1 %30611 }
 0x462   : > { %19849 = vmatprep.mubr.f32.mxu1 %v33189_v0  ;;  %19866 = vmatprep.subr.mxu1 %v19865_v6 }
 0x463   : > { %19390 = vmatmul.mubr.f32.vlgmr.msra.gmra.mrb[8].mxu0 %v34507_v12  ;;  %19855 = vmatmul.mubr.f32.vlgmr.msra.gmra.mrb[8].mxu1 %v34507_v12 }
 0x464   : > { %19407 = vmatpush1.msra.mxu0 %v19406_v7  ;;  %19872 = vmatpush1.msra.mxu1 %v19871_v8 }
 0x465   : > { %19470 = vmatprep.mubr.f32.mxu0 %v33189_v0  ;;  %19480 = vmatprep.subr.mxu0 %v19397_v55  ;;  %v34891_v55 = vsub.f32 %v15518_v47, %v34874_v29 }
 0x466   : > { %19935 = vmatprep.mubr.f32.mxu1 %v33189_v0  ;;  %19945 = vmatprep.subr.mxu1 %v19862_v56  ;;  %v34894_v56 = vsub.f32 %v15522_v48, %v34876_v50 }
 0x467   : > { %v21264_v6 = vand.u32 4294901760, %v34891_v55 }
 0x468   : > { %v21729_v7 = vand.u32 4294901760, %v34894_v56 }
 0x469   : > { %v21265_v16 = vsub.f32 %v34891_v55, %v21264_v6 }
 0x46a   : > { %v21730_v17 = vsub.f32 %v34894_v56, %v21729_v7 }
 0x46b   : > { %19472 = vmatmul.mubr.f32.vlgmr.msra.gmra.mrb[8].mxu0 %v34447_v54  ;;  %19937 = vmatmul.mubr.f32.vlgmr.msra.gmra.mrb[8].mxu1 %v34447_v54 }
 0x46c   : > { %19483 = vmatpush1.msra.mxu0 %v34757_v57  ;;  %19948 = vmatpush1.msra.mxu1 %v34760_v58  ;;  %v21731_v31 = vand.u32 4294901760, %v21730_v17 }
 0x46d   : > { %19546 = vmatprep.mubr.f32.mxu0 %v33189_v0  ;;  %19556 = vmatprep.subr.mxu0 %v34738_v49 }
 0x46e   : > { %20011 = vmatprep.mubr.f32.mxu1 %v33189_v0  ;;  %20021 = vmatprep.subr.mxu1 %v34742_v51 }
 0x473   : > { %19549 = vmatmul.mubr.f32.vlgmr.msra.gmra.mrb[8].mxu0 %v34466_v32  ;;  %20014 = vmatmul.mubr.f32.vlgmr.msra.gmra.mrb[8].mxu1 %v34466_v32 }
 0x474   : > { %19558 = vmatpush1.msra.mxu0 %v34746_v52  ;;  %20023 = vmatpush1.msra.mxu1 %v34748_v53 }
 0x475   : > { %19621 = vmatprep.mubr.f32.mxu0 %v33189_v0  ;;  %19634 = vmatprep.subr.mxu0 %v19398_v59 }
 0x476   : > { %20086 = vmatprep.mubr.f32.mxu1 %v33189_v0  ;;  %20099 = vmatprep.subr.mxu1 %v19863_v60 }
 0x47b   : > { %19625 = vmatmul.mubr.f32.vlgmr.msra.gmra.mrb[8].mxu0 %v34479_v63  ;;  %20090 = vmatmul.mubr.f32.vlgmr.msra.gmra.mrb[8].mxu1 %v34479_v63 }
 0x47c   : > { %19638 = vmatpush1.msra.mxu0 %v19404_v61  ;;  %20103 = vmatpush1.msra.mxu1 %v19869_v62 }
 0x47d   : > { %19701 = vmatprep.mubr.f32.mxu0 %v33189_v0  ;;  %19710 = vmatprep.subr.mxu0 %v34738_v49  ;;  %v34870_v49 = vand.u32 4294901760, %v15524_v45 }
 0x47e   : > { %20166 = vmatprep.mubr.f32.mxu1 %v33189_v0  ;;  %20175 = vmatprep.subr.mxu1 %v34742_v51  ;;  %v34881_v51 = vsub.f32 %v15520_v44, %v34866_v46 }
 0x480   : > { %v21258_v57 = vand.u32 4294901760, %v34881_v51 }
 0x482   : > { %v21259_v10 = vsub.f32 %v34881_v51, %v21258_v57 }
 0x483   : > { %19703 = vmatmul.mubr.f32.vlgmr.msra.gmra.mrb[8].mxu0 %v34447_v54  ;;  %20168 = vmatmul.mubr.f32.vlgmr.msra.gmra.mrb[8].mxu1 %v34447_v54 }
 0x484   : > { %19712 = vmatpush1.msra.mxu0 %v34746_v52  ;;  %20177 = vmatpush1.msra.mxu1 %v34748_v53  ;;  %v34886_v52 = vsub.f32 %v15524_v45, %v34870_v49  ;;  %v34888_v53 = vpop.permute.xlu0 %30479  ;;  %v34942_v45 = vpop.permute.xlu1 %31063 }
 0x485   : > { %19775 = vmatprep.mubr.f32.mxu0 %v33189_v0  ;;  %20240 = vmatprep.mubr.f32.mxu1 %v33189_v0 }
 0x486   : > { %20249 = vmatprep.subr.mxu0 %v34802_v15  ;;  %20714 = vmatprep.subr.mxu1 %v34806_v18  ;;  %v21723_v60 = vand.u32 4294901760, %v34886_v52 }
 0x488   : > { %v21724_v14 = vsub.f32 %v34886_v52, %v21723_v60 }
 0x48b   : > { %19777 = vmatmul.mubr.f32.vlgmr.msra.gmra.mrb[8].mxu0 %v34447_v54  ;;  %20242 = vmatmul.mubr.f32.vlgmr.msra.gmra.mrb[8].mxu1 %v34447_v54 }
 0x48c   : > { %20251 = vmatpush1.msra.mxu0 %v34810_v19  ;;  %20716 = vmatpush1.msra.mxu1 %v34812_v20 }
 0x48d   : > { %20314 = vmatprep.mubr.f32.mxu0 %v33189_v0  ;;  %20331 = vmatprep.subr.mxu0 %v20330_v37 }
 0x48e   : > { %20779 = vmatprep.mubr.f32.mxu1 %v33189_v0  ;;  %20796 = vmatprep.subr.mxu1 %v20795_v38 }
 0x48f   : > { %20320 = vmatmul.mubr.f32.vlgmr.msra.gmra.mrb[10].mxu0 %v34507_v12  ;;  %20785 = vmatmul.mubr.f32.vlgmr.msra.gmra.mrb[10].mxu1 %v34507_v12 }
 0x490   : > { %20337 = vmatpush1.msra.mxu0 %v20336_v39  ;;  %20802 = vmatpush1.msra.mxu1 %v20801_v40 }
 0x491   : > { %20400 = vmatprep.mubr.f32.mxu0 %v33189_v0  ;;  %20410 = vmatprep.subr.mxu0 %v20327_v21 }
 0x492   : > { %20865 = vmatprep.mubr.f32.mxu1 %v33189_v0  ;;  %20875 = vmatprep.subr.mxu1 %v20792_v22 }
 0x497   : > { %20402 = vmatmul.mubr.f32.vlgmr.msra.gmra.mrb[10].mxu0 %v34447_v54  ;;  %20867 = vmatmul.mubr.f32.vlgmr.msra.gmra.mrb[10].mxu1 %v34447_v54 }
 0x498   : > { %20413 = vmatpush1.msra.mxu0 %v34821_v23  ;;  %20878 = vmatpush1.msra.mxu1 %v34824_v24  ;;  %v21725_v23 = vand.u32 4294901760, %v21724_v14  ;;  %v275_v14 = vld [vmem:[%s33411_s22 + $0x78] sm:$0xff] }
 0x499   : > { %20476 = vmatprep.mubr.f32.mxu0 %v33189_v0  ;;  %20486 = vmatprep.subr.mxu0 %v34802_v15 }
 0x49a   : > { %20941 = vmatprep.mubr.f32.mxu1 %v33189_v0  ;;  %20951 = vmatprep.subr.mxu1 %v34806_v18 }
 0x49f   : > { %20479 = vmatmul.mubr.f32.vlgmr.msra.gmra.mrb[10].mxu0 %v34466_v32  ;;  %20944 = vmatmul.mubr.f32.vlgmr.msra.gmra.mrb[10].mxu1 %v34466_v32 }
 0x4a0   : > { %20488 = vmatpush1.msra.mxu0 %v34810_v19  ;;  %20953 = vmatpush1.msra.mxu1 %v34812_v20 }
 0x4a1   : > { %20551 = vmatprep.mubr.f32.mxu0 %v33189_v0  ;;  %20564 = vmatprep.subr.mxu0 %v20328_v25 }
 0x4a2   : > { %21016 = vmatprep.mubr.f32.mxu1 %v33189_v0  ;;  %21029 = vmatprep.subr.mxu1 %v20793_v26 }
 0x4a7   : > { %20555 = vmatmul.mubr.f32.vlgmr.msra.gmra.mrb[10].mxu0 %v34479_v63  ;;  %21020 = vmatmul.mubr.f32.vlgmr.msra.gmra.mrb[10].mxu1 %v34479_v63 }
 0x4a8   : > { %20568 = vmatpush1.msra.mxu0 %v20334_v27  ;;  %21033 = vmatpush1.msra.mxu1 %v20799_v30  ;;  %v21266_v30 = vand.u32 4294901760, %v21265_v16  ;;  %v15451_v16 = vcombine.high %v275_v14, %v275_v14 }
 0x4a9   : > { %20631 = vmatprep.mubr.f32.mxu0 %v33189_v0  ;;  %20640 = vmatprep.subr.mxu0 %v34802_v15 }
 0x4aa   : > { %21096 = vmatprep.mubr.f32.mxu1 %v33189_v0  ;;  %21105 = vmatprep.subr.mxu1 %v34806_v18 }
 0x4ae   : > { %v16058_v58 = vpop.f32.mrb[0].mxu0  ;;  %v16523_v59 = vpop.f32.mrb[0].mxu1 }
 0x4af   : > { %v30482_v61 = vadd.f32 %v34888_v53, %v16058_v58  ;;  %v30484_v62 = vadd.f32 %v34888_v53, %v16523_v59  ;;  %v16060_v1 = vpop.f32.mrb[1].mxu0  ;;  %v16525_v2 = vpop.f32.mrb[1].mxu1  ;;  %20633 = vmatmul.mubr.f32.vlgmr.msra.gmra.mrb[10].mxu0 %v34447_v54  ;;  %21098 = vmatmul.mubr.f32.vlgmr.msra.gmra.mrb[10].mxu1 %v34447_v54 }
 0x4b0   : > { %v30483_v3 = vadd.f32 %v34888_v53, %v16060_v1  ;;  %v30485_v4 = vadd.f32 %v34888_v53, %v16525_v2  ;;  %20642 = vmatpush1.msra.mxu0 %v34810_v19  ;;  %21107 = vmatpush1.msra.mxu1 %v34812_v20  ;;  %v21260_v20 = vand.u32 4294901760, %v21259_v10 }
 0x4b1   : > { %v30546_v8 = vmax.f32 %v30482_v61, 0.0  ;;  %v30548_v9 = vmax.f32 %v30484_v62, 0.0  ;;  %20705 = vmatprep.mubr.f32.mxu0 %v33189_v0  ;;  %21170 = vmatprep.mubr.f32.mxu1 %v33189_v0 }
 0x4b2   : > { %v30547_v11 = vmax.f32 %v30483_v3, 0.0  ;;  %v30549_v13 = vmax.f32 %v30485_v4, 0.0  ;;  %21179 = vmatprep.subr.mxu0 %v34866_v46  ;;  %21644 = vmatprep.subr.mxu1 %v34870_v49 }
 0x4b3   : > { %v30614_v28 = vmul.f32 %v34906_v5, %v30546_v8  ;;  %v30616_v15 = vmul.f32 %v34906_v5, %v30548_v9 }
 0x4b4   : > { %v30615_v18 = vmul.f32 %v34906_v5, %v30547_v11  ;;  %v30617_v19 = vmul.f32 %v34906_v5, %v30549_v13  ;;  %v274_v13 = vld [vmem:[%s33411_s22 + $0x70] sm:$0xff] }
 0x4b5   : > { %v30678_v21 = vrot.slane %v30614_v28, 4  ;;  %v30690_v22 = vrot.slane %v30616_v15, 4 }
 0x4b6   : > { %v30684_v24 = vrot.slane %v30615_v18, 4  ;;  %v30696_v25 = vrot.slane %v30617_v19, 4 }
 0x4b7   : > { %20707 = vmatmul.mubr.f32.vlgmr.msra.gmra.mrb[10].mxu0 %v34447_v54  ;;  %21172 = vmatmul.mubr.f32.vlgmr.msra.gmra.mrb[10].mxu1 %v34447_v54  ;;  %v30679_v26 = vadd.f32 %v30678_v21, %v30614_v28  ;;  %v30691_v27 = vadd.f32 %v30690_v22, %v30616_v15  ;;  %v31386_v28 = vlaneseq  ;;  %v15450_v15 = vcombine.high %v274_v13, %v274_v13 }
 0x4b8   : > { %21181 = vmatpush1.msra.mxu0 %v34874_v29  ;;  %21646 = vmatpush1.msra.mxu1 %v34876_v50  ;;  %v30685_v33 = vadd.f32 %v30684_v24, %v30615_v18  ;;  %v30697_v34 = vadd.f32 %v30696_v25, %v30617_v19  ;;  %v15532_v19 = vsel %vm395_vm0, %v15451_v16, 0  ;;  %v15526_v21 = vsel %vm395_vm0, %v274_v13, 0 }
 0x4b9   : > { %21244 = vmatprep.mubr.f32.mxu0 %v33189_v0  ;;  %21261 = vmatprep.subr.mxu0 %v21260_v20  ;;  %v30680_v35 = vrot.slane %v30679_v26, 2  ;;  %v30692_v37 = vrot.slane %v30691_v27, 2  ;;  %v31387_v17 = vshrl.u32 %v31386_v28, 7  ;;  %v15528_v18 = vsel %vm395_vm0, %v15450_v15, 0 }
 0x4ba   : > { %21709 = vmatprep.mubr.f32.mxu1 %v33189_v0  ;;  %21726 = vmatprep.subr.mxu1 %v21725_v23  ;;  %v30686_v38 = vrot.slane %v30685_v33, 2  ;;  %v30698_v39 = vrot.slane %v30697_v34, 2  ;;  %v34973_v24 = vand.u32 4294901760, %v15528_v18 }
 0x4bb   : > { %21250 = vmatmul.mubr.f32.vlgmr.msra.gmra.mrb[12].mxu0 %v34507_v12  ;;  %21715 = vmatmul.mubr.f32.vlgmr.msra.gmra.mrb[12].mxu1 %v34507_v12  ;;  %v30681_v40 = vadd.f32 %v30680_v35, %v30679_v26  ;;  %v30693_v41 = vadd.f32 %v30692_v37, %v30691_v27  ;;  %v34971_v23 = vsub.s32 0, %v31387_v17  ;;  %v34976_v26 = vand.u32 4294901760, %v15532_v19 }
 0x4bc   : > { %21267 = vmatpush1.msra.mxu0 %v21266_v30  ;;  %21732 = vmatpush1.msra.mxu1 %v21731_v31  ;;  %v30687_v42 = vadd.f32 %v30686_v38, %v30685_v33  ;;  %v30699_v43 = vadd.f32 %v30698_v39, %v30697_v34  ;;  %v34980_v27 = vand.u32 4294901760, %v15526_v21  ;;  %v34991_v37 = vsub.f32 %v15528_v18, %v34973_v24 }
 0x4bd   : > { %21330 = vmatprep.mubr.f32.mxu0 %v33189_v0  ;;  %21340 = vmatprep.subr.mxu0 %v34881_v51  ;;  %v30682_v36 = vrot.slane %v30681_v40, 1  ;;  %v30694_v47 = vrot.slane %v30693_v41, 1  ;;  %v15530_v51 = vsel %vm395_vm0, %v275_v14, 0 }
 0x4be   : > { %21795 = vmatprep.mubr.f32.mxu1 %v33189_v0  ;;  %21805 = vmatprep.subr.mxu1 %v34886_v52  ;;  %v30688_v44 = vrot.slane %v30687_v42, 1  ;;  %v30700_v48 = vrot.slane %v30699_v43, 1  ;;  %v34986_v33 = vand.u32 4294901760, %v15530_v51 }
 0x4bf   : > { %v30683_v58 = vadd.f32 %v30682_v36, %v30681_v40  ;;  %v30695_v61 = vadd.f32 %v30694_v47, %v30693_v41 }
 0x4c0   : > { %v30689_v59 = vadd.f32 %v30688_v44, %v30687_v42  ;;  %v30701_v62 = vadd.f32 %v30700_v48, %v30699_v43  ;;  %v35005_v40 = vsub.f32 %v15530_v51, %v34986_v33  ;;  %v22188_v43 = vand.u32 4294901760, %v34991_v37  ;;  %v32978_v48 = vld [vmem:[%s33420_s26] sm:$0xff] }
 0x4c1   : > { %v31066_v1 = vadd.f32 %v34942_v45, %v30683_v58  ;;  %v31068_v3 = vadd.f32 %v34942_v45, %v30695_v61 }
 0x4c2   : > { %v31067_v2 = vadd.f32 %v34942_v45, %v30689_v59  ;;  %v31069_v4 = vadd.f32 %v34942_v45, %v30701_v62 }
 0x4c3   : > { %21332 = vmatmul.mubr.f32.vlgmr.msra.gmra.mrb[12].mxu0 %v34447_v54  ;;  %21797 = vmatmul.mubr.f32.vlgmr.msra.gmra.mrb[12].mxu1 %v34447_v54  ;;  %v31130_v8 = vmul.f32 0.5, %v31066_v1  ;;  %v31132_v10 = vmul.f32 0.5, %v31068_v3 }
 0x4c4   : > { %21343 = vmatpush1.msra.mxu0 %v34891_v55  ;;  %21808 = vmatpush1.msra.mxu1 %v34894_v56  ;;  %v31131_v9 = vmul.f32 0.5, %v31067_v2  ;;  %v31133_v11 = vmul.f32 0.5, %v31069_v4  ;;  %v34997_v55 = vsub.f32 %v15532_v19, %v34976_v26 }
 0x4c5   : > { %21406 = vmatprep.mubr.f32.mxu0 %v33189_v0  ;;  %21416 = vmatprep.subr.mxu0 %v34866_v46  ;;  %32849 = vtanh.f32 %v31130_v8  ;;  %v22659_v8 = vand.u32 4294901760, %v35005_v40 }
 0x4c6   : > { %21871 = vmatprep.mubr.f32.mxu1 %v33189_v0  ;;  %21881 = vmatprep.subr.mxu1 %v34870_v49  ;;  %32851 = vtanh.f32 %v31131_v9  ;;  %v22653_v44 = vand.u32 4294901760, %v34997_v55  ;;  %v32979_v9 = vld [vmem:[%s33420_s26 + $0x8] sm:$0xff] }
 0x4c7   : > { %32853 = vtanh.f32 %v31132_v10 }
 0x4c8   : > { %32855 = vtanh.f32 %v31133_v11  ;;  %v22654_v28 = vsub.f32 %v34997_v55, %v22653_v44 }
 0x4cb   : > { %21409 = vmatmul.mubr.f32.vlgmr.msra.gmra.mrb[12].mxu0 %v34466_v32  ;;  %21874 = vmatmul.mubr.f32.vlgmr.msra.gmra.mrb[12].mxu1 %v34466_v32 }
 0x4cc   : > { %21418 = vmatpush1.msra.mxu0 %v34874_v29  ;;  %21883 = vmatpush1.msra.mxu1 %v34876_v50 }
 0x4cd   : > { %21481 = vmatprep.mubr.f32.mxu0 %v33189_v0  ;;  %21494 = vmatprep.subr.mxu0 %v21258_v57 }
 0x4ce   : > { %21946 = vmatprep.mubr.f32.mxu1 %v33189_v0  ;;  %21959 = vmatprep.subr.mxu1 %v21723_v60 }
 0x4cf   : > { %v32850_v20 = vpop.eup %32849 }
 0x4d0   : > { %v32852_v22 = vpop.eup %32851  ;;  %v31258_v57 = vmul.f32 0.5, %v32850_v20  ;;  %v22660_v20 = vsub.f32 %v35005_v40, %v22659_v8 }
 0x4d1   : > { %v32854_v25 = vpop.eup %32853  ;;  %v31259_v52 = vmul.f32 0.5, %v32852_v22 }
 0x4d2   : > { %v32856_v60 = vpop.eup %32855  ;;  %v31260_v30 = vmul.f32 0.5, %v32854_v25  ;;  %v31322_v31 = vadd.f32 0.5, %v31258_v57 }
 0x4d3   : > { %21485 = vmatmul.mubr.f32.vlgmr.msra.gmra.mrb[12].mxu0 %v34479_v63  ;;  %21950 = vmatmul.mubr.f32.vlgmr.msra.gmra.mrb[12].mxu1 %v34479_v63  ;;  %v31261_v34 = vmul.f32 0.5, %v32856_v60  ;;  %v31323_v35 = vadd.f32 0.5, %v31259_v52  ;;  %v22655_v52 = vand.u32 4294901760, %v22654_v28  ;;  %v276_v28 = vld [vmem:[%s33411_s22 + $0x80] sm:$0xff] }
 0x4d4   : > { %21498 = vmatpush1.msra.mxu0 %v21264_v6  ;;  %21963 = vmatpush1.msra.mxu1 %v21729_v7  ;;  %v31324_v38 = vadd.f32 0.5, %v31260_v30  ;;  %v31389_v39 = vrot.slane %v31322_v31, %v34971_v23  ;;  %v35001_v7 = vsub.f32 %v15526_v21, %v34980_v27 }
 0x4d5   : > { %21561 = vmatprep.mubr.f32.mxu0 %v33189_v0  ;;  %21570 = vmatprep.subr.mxu0 %v34866_v46  ;;  %v31325_v56 = vadd.f32 0.5, %v31261_v34  ;;  %v31393_v6 = vrot.slane %v31323_v35, %v34971_v23 }
 0x4d6   : > { %22026 = vmatprep.mubr.f32.mxu1 %v33189_v0  ;;  %22035 = vmatprep.subr.mxu1 %v34870_v49  ;;  %v31397_v46 = vrot.slane %v31324_v38, %v34971_v23  ;;  %v22194_v2 = vand.u32 4294901760, %v35001_v7  ;;  %v22661_v38 = vand.u32 4294901760, %v22660_v20 }
 0x4d7   : > { %v31401_v41 = vrot.slane %v31325_v56, %v34971_v23  ;;  %v31706_v42 = vcombine.low %v31389_v39, %v31393_v6 }
 0x4d8   : > { %v22195_v19 = vsub.f32 %v35001_v7, %v22194_v2 }
 0x4d9   : > { %v31707_v47 = vcombine.low %v31397_v46, %v31401_v41  ;;  %v31770_v58 = vmul.f32 %v32978_v48, %v31706_v42 }
 0x4da   : > { %v16988_v49 = vpop.f32.mrb[2].mxu0  ;;  %v17453_v36 = vpop.f32.mrb[2].mxu1  ;;  %v22196_v35 = vand.u32 4294901760, %v22195_v19 }
 0x4db   : > { %v30486_v59 = vadd.f32 %v34888_v53, %v16988_v49  ;;  %v30488_v61 = vadd.f32 %v34888_v53, %v17453_v36  ;;  %v16990_v62 = vpop.f32.mrb[3].mxu0  ;;  %v17455_v1 = vpop.f32.mrb[3].mxu1  ;;  %21563 = vmatmul.mubr.f32.vlgmr.msra.gmra.mrb[12].mxu0 %v34447_v54  ;;  %22028 = vmatmul.mubr.f32.vlgmr.msra.gmra.mrb[12].mxu1 %v34447_v54  ;;  %v31771_v10 = vmul.f32 %v32979_v9, %v31707_v47 }
 0x4dc   : > { %v30487_v3 = vadd.f32 %v34888_v53, %v16990_v62  ;;  %v30489_v4 = vadd.f32 %v34888_v53, %v17455_v1  ;;  %21572 = vmatpush1.msra.mxu0 %v34874_v29  ;;  %22037 = vmatpush1.msra.mxu1 %v34876_v50  ;;  %31802 = vst [vmem:[%s35023_s30] sm:$0xff] %v31770_v58 }
 0x4dd   : > { %v30550_v11 = vmax.f32 %v30486_v59, 0.0  ;;  %v30552_v13 = vmax.f32 %v30488_v61, 0.0  ;;  %21635 = vmatprep.mubr.f32.mxu0 %v33189_v0  ;;  %22100 = vmatprep.mubr.f32.mxu1 %v33189_v0  ;;  %v22189_v29 = vsub.f32 %v34991_v37, %v22188_v43  ;;  %31803 = vst [vmem:[%s35023_s30 + $0x8] sm:$0xff] %v31771_v10 }
 0x4de   : > { %v30551_v50 = vmax.f32 %v30487_v3, 0.0  ;;  %v30553_v14 = vmax.f32 %v30489_v4, 0.0  ;;  %22109 = vmatprep.subr.mxu0 %v34973_v24  ;;  %22574 = vmatprep.subr.mxu1 %v34976_v26 }
 0x4df   : > { %v30618_v15 = vmul.f32 %v34906_v5, %v30550_v11  ;;  %v30620_v16 = vmul.f32 %v34906_v5, %v30552_v13  ;;  %v22190_v51 = vand.u32 4294901760, %v22189_v29 }
 0x4e0   : > { %v30619_v17 = vmul.f32 %v34906_v5, %v30551_v50  ;;  %v30621_v18 = vmul.f32 %v34906_v5, %v30553_v14 }
 0x4e1   : > { %v30702_v21 = vrot.slane %v30618_v15, 4  ;;  %v30714_v22 = vrot.slane %v30620_v16, 4 }
 0x4e2   : > { %v30708_v57 = vrot.slane %v30619_v17, 4  ;;  %v30720_v25 = vrot.slane %v30621_v18, 4 }
 0x4e3   : > { %v30703_v60 = vadd.f32 %v30702_v21, %v30618_v15  ;;  %v30715_v30 = vadd.f32 %v30714_v22, %v30620_v16  ;;  %21637 = vmatmul.mubr.f32.vlgmr.msra.gmra.mrb[12].mxu0 %v34447_v54  ;;  %22102 = vmatmul.mubr.f32.vlgmr.msra.gmra.mrb[12].mxu1 %v34447_v54  ;;  %v277_v15 = vld [vmem:[%s33411_s22 + $0x88] sm:$0xff]  ;;  %v15452_v16 = vcombine.high %v276_v28, %v276_v28 }
 0x4e4   : > { %v30709_v31 = vadd.f32 %v30708_v57, %v30619_v17  ;;  %v30721_v34 = vadd.f32 %v30720_v25, %v30621_v18  ;;  %22111 = vmatpush1.msra.mxu0 %v34980_v27  ;;  %22576 = vmatpush1.msra.mxu1 %v34986_v33  ;;  %v15453_v17 = vcombine.high %v277_v15, %v277_v15 }
 0x4e5   : > { %v30704_v39 = vrot.slane %v30703_v60, 2  ;;  %v30716_v56 = vrot.slane %v30715_v30, 2  ;;  %22174 = vmatprep.mubr.f32.mxu0 %v33189_v0  ;;  %22191 = vmatprep.subr.mxu0 %v22190_v51  ;;  %v15536_v18 = vsel %vm395_vm0, %v15452_v16, 0 }
 0x4e6   : > { %v30710_v6 = vrot.slane %v30709_v31, 2  ;;  %v30722_v46 = vrot.slane %v30721_v34, 2  ;;  %22639 = vmatprep.mubr.f32.mxu1 %v33189_v0  ;;  %22656 = vmatprep.subr.mxu1 %v22655_v52  ;;  %v15540_v20 = vsel %vm395_vm0, %v15453_v17, 0  ;;  %v35085_v25 = vand.u32 4294901760, %v15536_v18 }
 0x4e7   : > { %v30705_v41 = vadd.f32 %v30704_v39, %v30703_v60  ;;  %v30717_v42 = vadd.f32 %v30716_v56, %v30715_v30  ;;  %22180 = vmatmul.mubr.f32.vlgmr.msra.gmra.mrb[14].mxu0 %v34507_v12  ;;  %22645 = vmatmul.mubr.f32.vlgmr.msra.gmra.mrb[14].mxu1 %v34507_v12  ;;  %v15534_v52 = vsel %vm395_vm0, %v276_v28, 0 }
 0x4e8   : > { %v30711_v49 = vadd.f32 %v30710_v6, %v30709_v31  ;;  %v30723_v36 = vadd.f32 %v30722_v46, %v30721_v34  ;;  %22197 = vmatpush1.msra.mxu0 %v22196_v35  ;;  %22662 = vmatpush1.msra.mxu1 %v22661_v38  ;;  %v35098_v38 = vand.u32 4294901760, %v15534_v52  ;;  %v35106_v46 = vsub.f32 %v15536_v18, %v35085_v25 }
 0x4e9   : > { %v30706_v47 = vrot.slane %v30705_v41, 1  ;;  %v30718_v48 = vrot.slane %v30717_v42, 1  ;;  %22260 = vmatprep.mubr.f32.mxu0 %v33189_v0  ;;  %22270 = vmatprep.subr.mxu0 %v34991_v37  ;;  %v15538_v37 = vsel %vm395_vm0, %v277_v15, 0 }
 0x4ea   : > { %v30712_v58 = vrot.slane %v30711_v49, 1  ;;  %v30724_v59 = vrot.slane %v30723_v36, 1  ;;  %22725 = vmatprep.mubr.f32.mxu1 %v33189_v0  ;;  %22735 = vmatprep.subr.mxu1 %v34997_v55  ;;  %v35089_v55 = vand.u32 4294901760, %v15540_v20  ;;  %v35100_v39 = vand.u32 4294901760, %v15538_v37 }
 0x4eb   : > { %v30707_v61 = vadd.f32 %v30706_v47, %v30705_v41  ;;  %v30719_v62 = vadd.f32 %v30718_v48, %v30717_v42  ;;  %v35116_v41 = vsub.f32 %v15534_v52, %v35098_v38 }
 0x4ec   : > { %v30713_v1 = vadd.f32 %v30712_v58, %v30711_v49  ;;  %v30725_v3 = vadd.f32 %v30724_v59, %v30723_v36  ;;  %v23118_v49 = vand.u32 4294901760, %v35106_v46  ;;  %v32980_v36 = vld [vmem:[%s33420_s26 + $0x10] sm:$0xff]  ;;  %v32981_v59 = vld [vmem:[%s33420_s26 + $0x18] sm:$0xff] }
 0x4ed   : > { %v31070_v4 = vadd.f32 %v34942_v45, %v30707_v61  ;;  %v31072_v9 = vadd.f32 %v34942_v45, %v30719_v62 }
 0x4ee   : > { %v31071_v10 = vadd.f32 %v34942_v45, %v30713_v1  ;;  %v31073_v11 = vadd.f32 %v34942_v45, %v30725_v3 }
 0x4ef   : > { %v31134_v13 = vmul.f32 0.5, %v31070_v4  ;;  %v31136_v29 = vmul.f32 0.5, %v31072_v9  ;;  %22262 = vmatmul.mubr.f32.vlgmr.msra.gmra.mrb[14].mxu0 %v34447_v54  ;;  %22727 = vmatmul.mubr.f32.vlgmr.msra.gmra.mrb[14].mxu1 %v34447_v54 }
 0x4f0   : > { %v31135_v50 = vmul.f32 0.5, %v31071_v10  ;;  %v31137_v14 = vmul.f32 0.5, %v31073_v11  ;;  %22273 = vmatpush1.msra.mxu0 %v35001_v7  ;;  %22738 = vmatpush1.msra.mxu1 %v35005_v40  ;;  %v35112_v40 = vsub.f32 %v15540_v20, %v35089_v55  ;;  %v23124_v11 = vand.u32 4294901760, %v35116_v41 }
 0x4f1   : > { %32857 = vtanh.f32 %v31134_v13  ;;  %22336 = vmatprep.mubr.f32.mxu0 %v33189_v0  ;;  %22346 = vmatprep.subr.mxu0 %v34973_v24 }
 0x4f2   : > { %32859 = vtanh.f32 %v31136_v29  ;;  %22801 = vmatprep.mubr.f32.mxu1 %v33189_v0  ;;  %22811 = vmatprep.subr.mxu1 %v34976_v26  ;;  %v23583_v58 = vand.u32 4294901760, %v35112_v40 }
 0x4f3   : > { %32861 = vtanh.f32 %v31135_v50 }
 0x4f4   : > { %32863 = vtanh.f32 %v31137_v14  ;;  %v23119_v14 = vsub.f32 %v35106_v46, %v23118_v49 }
 0x4f7   : > { %22339 = vmatmul.mubr.f32.vlgmr.msra.gmra.mrb[14].mxu0 %v34466_v32  ;;  %22804 = vmatmul.mubr.f32.vlgmr.msra.gmra.mrb[14].mxu1 %v34466_v32 }
 0x4f8   : > { %22348 = vmatpush1.msra.mxu0 %v34980_v27  ;;  %22813 = vmatpush1.msra.mxu1 %v34986_v33 }
 0x4f9   : > { %22411 = vmatprep.mubr.f32.mxu0 %v33189_v0  ;;  %22424 = vmatprep.subr.mxu0 %v22188_v43 }
 0x4fa   : > { %22876 = vmatprep.mubr.f32.mxu1 %v33189_v0  ;;  %22889 = vmatprep.subr.mxu1 %v22653_v44 }
 0x4fb   : > { %v32858_v19 = vpop.eup %32857 }
 0x4fc   : > { %v32860_v21 = vpop.eup %32859  ;;  %v31262_v22 = vmul.f32 0.5, %v32858_v19  ;;  %v23125_v19 = vsub.f32 %v35116_v41, %v23124_v11 }
 0x4fd   : > { %v32862_v51 = vpop.eup %32861  ;;  %v31264_v57 = vmul.f32 0.5, %v32860_v21 }
 0x4fe   : > { %v32864_v43 = vpop.eup %32863  ;;  %v31326_v60 = vadd.f32 0.5, %v31262_v22  ;;  %v31263_v30 = vmul.f32 0.5, %v32862_v51  ;;  %v23120_v51 = vand.u32 4294901760, %v23119_v14 }
 0x4ff   : > { %v31328_v44 = vadd.f32 0.5, %v31264_v57  ;;  %v31265_v31 = vmul.f32 0.5, %v32864_v43  ;;  %22415 = vmatmul.mubr.f32.vlgmr.msra.gmra.mrb[14].mxu0 %v34479_v63  ;;  %22880 = vmatmul.mubr.f32.vlgmr.msra.gmra.mrb[14].mxu1 %v34479_v63 }
 0x500   : > { %v31405_v34 = vrot.slane %v31326_v60, %v34971_v23  ;;  %v31327_v35 = vadd.f32 0.5, %v31263_v30  ;;  %22428 = vmatpush1.msra.mxu0 %v22194_v2  ;;  %22893 = vmatpush1.msra.mxu1 %v22659_v8 }
 0x501   : > { %v31413_v56 = vrot.slane %v31328_v44, %v34971_v23  ;;  %v31329_v6 = vadd.f32 0.5, %v31265_v31  ;;  %22491 = vmatprep.mubr.f32.mxu0 %v33189_v0  ;;  %22500 = vmatprep.subr.mxu0 %v34973_v24  ;;  %v35119_v24 = vsub.f32 %v15538_v37, %v35100_v39  ;;  %v23126_v31 = vand.u32 4294901760, %v23125_v19 }
 0x502   : > { %v31409_v7 = vrot.slane %v31327_v35, %v34971_v23  ;;  %22956 = vmatprep.mubr.f32.mxu1 %v33189_v0  ;;  %22965 = vmatprep.subr.mxu1 %v34976_v26 }
 0x503   : > { %v31417_v2 = vrot.slane %v31329_v6, %v34971_v23  ;;  %v23589_v13 = vand.u32 4294901760, %v35119_v24 }
 0x504   : > { %v31708_v8 = vcombine.low %v31405_v34, %v31409_v7 }
 0x505   : > { %v31709_v42 = vcombine.low %v31413_v56, %v31417_v2  ;;  %v23590_v20 = vsub.f32 %v35119_v24, %v23589_v13 }
 0x506   : > { %v31772_v47 = vmul.f32 %v32980_v36, %v31708_v8  ;;  %v17918_v48 = vpop.f32.mrb[4].mxu0  ;;  %v18383_v26 = vpop.f32.mrb[4].mxu1 }
 0x507   : > { %v31773_v61 = vmul.f32 %v32981_v59, %v31709_v42  ;;  %v30490_v62 = vadd.f32 %v34888_v53, %v17918_v48  ;;  %v30492_v1 = vadd.f32 %v34888_v53, %v18383_v26  ;;  %v17920_v3 = vpop.f32.mrb[5].mxu0  ;;  %v18385_v4 = vpop.f32.mrb[5].mxu1  ;;  %22493 = vmatmul.mubr.f32.vlgmr.msra.gmra.mrb[14].mxu0 %v34447_v54  ;;  %22958 = vmatmul.mubr.f32.vlgmr.msra.gmra.mrb[14].mxu1 %v34447_v54  ;;  %v23591_v34 = vand.u32 4294901760, %v23590_v20 }
 0x508   : > { %31804 = vst [vmem:[%s35023_s30 + $0x10] sm:$0xff] %v31772_v47  ;;  %v30491_v9 = vadd.f32 %v34888_v53, %v17920_v3  ;;  %v30493_v10 = vadd.f32 %v34888_v53, %v18385_v4  ;;  %22502 = vmatpush1.msra.mxu0 %v34980_v27  ;;  %22967 = vmatpush1.msra.mxu1 %v34986_v33 }
 0x509   : > { %31805 = vst [vmem:[%s35023_s30 + $0x18] sm:$0xff] %v31773_v61  ;;  %v30554_v29 = vmax.f32 %v30490_v62, 0.0  ;;  %v30556_v50 = vmax.f32 %v30492_v1, 0.0  ;;  %22565 = vmatprep.mubr.f32.mxu0 %v33189_v0  ;;  %23030 = vmatprep.mubr.f32.mxu1 %v33189_v0  ;;  %v23584_v27 = vsub.f32 %v35112_v40, %v23583_v58 }
 0x50a   : > { %v30555_v28 = vmax.f32 %v30491_v9, 0.0  ;;  %v30557_v15 = vmax.f32 %v30493_v10, 0.0  ;;  %23039 = vmatprep.subr.mxu0 %v35085_v25  ;;  %23504 = vmatprep.subr.mxu1 %v35089_v55 }
 0x50b   : > { %v30622_v33 = vmul.f32 %v34906_v5, %v30554_v29  ;;  %v30624_v16 = vmul.f32 %v34906_v5, %v30556_v50  ;;  %v23585_v37 = vand.u32 4294901760, %v23584_v27  ;;  %v278_v27 = vld [vmem:[%s33411_s22 + $0x90] sm:$0xff] }
 0x50c   : > { %v30623_v17 = vmul.f32 %v34906_v5, %v30555_v28  ;;  %v30625_v18 = vmul.f32 %v34906_v5, %v30557_v15 }
 0x50d   : > { %v30726_v21 = vrot.slane %v30622_v33, 4  ;;  %v30738_v22 = vrot.slane %v30624_v16, 4 }
 0x50e   : > { %v30732_v57 = vrot.slane %v30623_v17, 4  ;;  %v30744_v52 = vrot.slane %v30625_v18, 4 }
 0x50f   : > { %v30727_v43 = vadd.f32 %v30726_v21, %v30622_v33  ;;  %v30739_v60 = vadd.f32 %v30738_v22, %v30624_v16  ;;  %22567 = vmatmul.mubr.f32.vlgmr.msra.gmra.mrb[14].mxu0 %v34447_v54  ;;  %23032 = vmatmul.mubr.f32.vlgmr.msra.gmra.mrb[14].mxu1 %v34447_v54  ;;  %v279_v33 = vld [vmem:[%s33411_s22 + $0x98] sm:$0xff]  ;;  %v15454_v16 = vcombine.high %v278_v27, %v278_v27 }
 0x510   : > { %v30733_v30 = vadd.f32 %v30732_v57, %v30623_v17  ;;  %v30745_v44 = vadd.f32 %v30744_v52, %v30625_v18  ;;  %23041 = vmatpush1.msra.mxu0 %v35098_v38  ;;  %23506 = vmatpush1.msra.mxu1 %v35100_v39  ;;  %v15455_v17 = vcombine.high %v279_v33, %v279_v33 }
 0x511   : > { %v30728_v35 = vrot.slane %v30727_v43, 2  ;;  %v30740_v56 = vrot.slane %v30739_v60, 2  ;;  %23104 = vmatprep.mubr.f32.mxu0 %v33189_v0  ;;  %23121 = vmatprep.subr.mxu0 %v23120_v51  ;;  %v15544_v18 = vsel %vm395_vm0, %v15454_v16, 0 }
 0x512   : > { %v30734_v6 = vrot.slane %v30733_v30, 2  ;;  %v30746_v7 = vrot.slane %v30745_v44, 2  ;;  %23569 = vmatprep.mubr.f32.mxu1 %v33189_v0  ;;  %23586 = vmatprep.subr.mxu1 %v23585_v37  ;;  %v15548_v20 = vsel %vm395_vm0, %v15455_v17, 0  ;;  %v35195_v52 = vand.u32 4294901760, %v15544_v18 }
 0x513   : > { %v30729_v2 = vadd.f32 %v30728_v35, %v30727_v43  ;;  %v30741_v8 = vadd.f32 %v30740_v56, %v30739_v60  ;;  %23110 = vmatmul.mubr.f32.vlgmr.msra.gmra.mrb[16].mxu0 %v34507_v12  ;;  %23575 = vmatmul.mubr.f32.vlgmr.msra.gmra.mrb[16].mxu1 %v34507_v12  ;;  %v15542_v37 = vsel %vm395_vm0, %v278_v27, 0 }
 0x514   : > { %v30735_v42 = vadd.f32 %v30734_v6, %v30733_v30  ;;  %v30747_v36 = vadd.f32 %v30746_v7, %v30745_v44  ;;  %23127 = vmatpush1.msra.mxu0 %v23126_v31  ;;  %23592 = vmatpush1.msra.mxu1 %v23591_v34  ;;  %v35208_v34 = vand.u32 4294901760, %v15542_v37  ;;  %v35216_v7 = vsub.f32 %v15544_v18, %v35195_v52 }
 0x515   : > { %v30730_v47 = vrot.slane %v30729_v2, 1  ;;  %v30742_v48 = vrot.slane %v30741_v8, 1  ;;  %23190 = vmatprep.mubr.f32.mxu0 %v33189_v0  ;;  %23200 = vmatprep.subr.mxu0 %v35106_v46  ;;  %v15546_v46 = vsel %vm395_vm0, %v279_v33, 0 }
 0x516   : > { %v30736_v26 = vrot.slane %v30735_v42, 1  ;;  %v30748_v59 = vrot.slane %v30747_v36, 1  ;;  %23655 = vmatprep.mubr.f32.mxu1 %v33189_v0  ;;  %23665 = vmatprep.subr.mxu1 %v35112_v40  ;;  %v35199_v40 = vand.u32 4294901760, %v15548_v20  ;;  %v35210_v35 = vand.u32 4294901760, %v15546_v46 }
 0x517   : > { %v30731_v61 = vadd.f32 %v30730_v47, %v30729_v2  ;;  %v30743_v62 = vadd.f32 %v30742_v48, %v30741_v8  ;;  %v35226_v2 = vsub.f32 %v15542_v37, %v35208_v34 }
 0x518   : > { %v30737_v1 = vadd.f32 %v30736_v26, %v30735_v42  ;;  %v30749_v3 = vadd.f32 %v30748_v59, %v30747_v36  ;;  %v24048_v42 = vand.u32 4294901760, %v35216_v7  ;;  %v32982_v36 = vld [vmem:[%s33420_s26 + $0x20] sm:$0xff]  ;;  %v32983_v59 = vld [vmem:[%s33420_s26 + $0x28] sm:$0xff] }
 0x519   : > { %v31074_v4 = vadd.f32 %v34942_v45, %v30731_v61  ;;  %v31076_v9 = vadd.f32 %v34942_v45, %v30743_v62 }
 0x51a   : > { %v31075_v10 = vadd.f32 %v34942_v45, %v30737_v1  ;;  %v31077_v29 = vadd.f32 %v34942_v45, %v30749_v3 }
 0x51b   : > { %v31138_v50 = vmul.f32 0.5, %v31074_v4  ;;  %v31140_v14 = vmul.f32 0.5, %v31076_v9  ;;  %23192 = vmatmul.mubr.f32.vlgmr.msra.gmra.mrb[16].mxu0 %v34447_v54  ;;  %23657 = vmatmul.mubr.f32.vlgmr.msra.gmra.mrb[16].mxu1 %v34447_v54 }
 0x51c   : > { %v31139_v28 = vmul.f32 0.5, %v31075_v10  ;;  %v31141_v15 = vmul.f32 0.5, %v31077_v29  ;;  %23203 = vmatpush1.msra.mxu0 %v35116_v41  ;;  %23668 = vmatpush1.msra.mxu1 %v35119_v24  ;;  %v35222_v24 = vsub.f32 %v15548_v20, %v35199_v40  ;;  %v24054_v29 = vand.u32 4294901760, %v35226_v2 }
 0x51d   : > { %32865 = vtanh.f32 %v31138_v50  ;;  %23266 = vmatprep.mubr.f32.mxu0 %v33189_v0  ;;  %23276 = vmatprep.subr.mxu0 %v35085_v25 }
 0x51e   : > { %32867 = vtanh.f32 %v31140_v14  ;;  %23731 = vmatprep.mubr.f32.mxu1 %v33189_v0  ;;  %23741 = vmatprep.subr.mxu1 %v35089_v55  ;;  %v24513_v26 = vand.u32 4294901760, %v35222_v24 }
 0x51f   : > { %32869 = vtanh.f32 %v31139_v28 }
 0x520   : > { %32871 = vtanh.f32 %v31141_v15  ;;  %v24049_v15 = vsub.f32 %v35216_v7, %v24048_v42 }
 0x523   : > { %23269 = vmatmul.mubr.f32.vlgmr.msra.gmra.mrb[16].mxu0 %v34466_v32  ;;  %23734 = vmatmul.mubr.f32.vlgmr.msra.gmra.mrb[16].mxu1 %v34466_v32 }
 0x524   : > { %23278 = vmatpush1.msra.mxu0 %v35098_v38  ;;  %23743 = vmatpush1.msra.mxu1 %v35100_v39 }
 0x525   : > { %23341 = vmatprep.mubr.f32.mxu0 %v33189_v0  ;;  %23354 = vmatprep.subr.mxu0 %v23118_v49 }
 0x526   : > { %23806 = vmatprep.mubr.f32.mxu1 %v33189_v0  ;;  %23819 = vmatprep.subr.mxu1 %v23583_v58 }
 0x527   : > { %v32866_v19 = vpop.eup %32865 }
 0x528   : > { %v32868_v21 = vpop.eup %32867  ;;  %v31266_v22 = vmul.f32 0.5, %v32866_v19  ;;  %v24055_v19 = vsub.f32 %v35226_v2, %v24054_v29 }
 0x529   : > { %v32870_v51 = vpop.eup %32869  ;;  %v31268_v57 = vmul.f32 0.5, %v32868_v21 }
 0x52a   : > { %v32872_v49 = vpop.eup %32871  ;;  %v31330_v43 = vadd.f32 0.5, %v31266_v22  ;;  %v31267_v60 = vmul.f32 0.5, %v32870_v51  ;;  %v24050_v51 = vand.u32 4294901760, %v24049_v15 }
 0x52b   : > { %v31332_v58 = vadd.f32 0.5, %v31268_v57  ;;  %v31269_v30 = vmul.f32 0.5, %v32872_v49  ;;  %23345 = vmatmul.mubr.f32.vlgmr.msra.gmra.mrb[16].mxu0 %v34479_v63  ;;  %23810 = vmatmul.mubr.f32.vlgmr.msra.gmra.mrb[16].mxu1 %v34479_v63 }
 0x52c   : > { %v31421_v44 = vrot.slane %v31330_v43, %v34971_v23  ;;  %v31331_v31 = vadd.f32 0.5, %v31267_v60  ;;  %23358 = vmatpush1.msra.mxu0 %v23124_v11  ;;  %23823 = vmatpush1.msra.mxu1 %v23589_v13 }
 0x52d   : > { %v31429_v56 = vrot.slane %v31332_v58, %v34971_v23  ;;  %v31333_v6 = vadd.f32 0.5, %v31269_v30  ;;  %23421 = vmatprep.mubr.f32.mxu0 %v33189_v0  ;;  %23430 = vmatprep.subr.mxu0 %v35085_v25  ;;  %v35229_v25 = vsub.f32 %v15546_v46, %v35210_v35  ;;  %v24056_v30 = vand.u32 4294901760, %v24055_v19 }
 0x52e   : > { %v31425_v41 = vrot.slane %v31331_v31, %v34971_v23  ;;  %23886 = vmatprep.mubr.f32.mxu1 %v33189_v0  ;;  %23895 = vmatprep.subr.mxu1 %v35089_v55 }
 0x52f   : > { %v31433_v11 = vrot.slane %v31333_v6, %v34971_v23  ;;  %v24519_v50 = vand.u32 4294901760, %v35229_v25 }
 0x530   : > { %v31710_v13 = vcombine.low %v31421_v44, %v31425_v41 }
 0x531   : > { %v31711_v8 = vcombine.low %v31429_v56, %v31433_v11  ;;  %v24520_v20 = vsub.f32 %v35229_v25, %v24519_v50 }
 0x532   : > { %v31774_v47 = vmul.f32 %v32982_v36, %v31710_v13  ;;  %v18848_v48 = vpop.f32.mrb[6].mxu0  ;;  %v19313_v55 = vpop.f32.mrb[6].mxu1 }
 0x533   : > { %v31775_v61 = vmul.f32 %v32983_v59, %v31711_v8  ;;  %v30494_v62 = vadd.f32 %v34888_v53, %v18848_v48  ;;  %v30496_v1 = vadd.f32 %v34888_v53, %v19313_v55  ;;  %v18850_v3 = vpop.f32.mrb[7].mxu0  ;;  %v19315_v4 = vpop.f32.mrb[7].mxu1  ;;  %23423 = vmatmul.mubr.f32.vlgmr.msra.gmra.mrb[16].mxu0 %v34447_v54  ;;  %23888 = vmatmul.mubr.f32.vlgmr.msra.gmra.mrb[16].mxu1 %v34447_v54  ;;  %v24521_v44 = vand.u32 4294901760, %v24520_v20 }
 0x534   : > { %31806 = vst [vmem:[%s35023_s30 + $0x20] sm:$0xff] %v31774_v47  ;;  %v30495_v9 = vadd.f32 %v34888_v53, %v18850_v3  ;;  %v30497_v10 = vadd.f32 %v34888_v53, %v19315_v4  ;;  %23432 = vmatpush1.msra.mxu0 %v35098_v38  ;;  %23897 = vmatpush1.msra.mxu1 %v35100_v39 }
 0x535   : > { %31807 = vst [vmem:[%s35023_s30 + $0x28] sm:$0xff] %v31775_v61  ;;  %v30558_v14 = vmax.f32 %v30494_v62, 0.0  ;;  %v30560_v28 = vmax.f32 %v30496_v1, 0.0  ;;  %23495 = vmatprep.mubr.f32.mxu0 %v33189_v0  ;;  %23960 = vmatprep.mubr.f32.mxu1 %v33189_v0  ;;  %v24514_v38 = vsub.f32 %v35222_v24, %v24513_v26 }
 0x536   : > { %v30559_v27 = vmax.f32 %v30495_v9, 0.0  ;;  %v30561_v33 = vmax.f32 %v30497_v10, 0.0  ;;  %23969 = vmatprep.subr.mxu0 %v35195_v52  ;;  %24434 = vmatprep.subr.mxu1 %v35199_v40 }
 0x537   : > { %v30626_v39 = vmul.f32 %v34906_v5, %v30558_v14  ;;  %v30628_v16 = vmul.f32 %v34906_v5, %v30560_v28  ;;  %v24515_v46 = vand.u32 4294901760, %v24514_v38  ;;  %v280_v38 = vld [vmem:[%s33411_s22 + $0xa0] sm:$0xff] }
 0x538   : > { %v30627_v17 = vmul.f32 %v34906_v5, %v30559_v27  ;;  %v30629_v18 = vmul.f32 %v34906_v5, %v30561_v33 }
 0x539   : > { %v30750_v21 = vrot.slane %v30626_v39, 4  ;;  %v30762_v22 = vrot.slane %v30628_v16, 4 }
 0x53a   : > { %v30756_v57 = vrot.slane %v30627_v17, 4  ;;  %v30768_v37 = vrot.slane %v30629_v18, 4 }
 0x53b   : > { %v30751_v49 = vadd.f32 %v30750_v21, %v30626_v39  ;;  %v30763_v43 = vadd.f32 %v30762_v22, %v30628_v16  ;;  %23497 = vmatmul.mubr.f32.vlgmr.msra.gmra.mrb[16].mxu0 %v34447_v54  ;;  %23962 = vmatmul.mubr.f32.vlgmr.msra.gmra.mrb[16].mxu1 %v34447_v54  ;;  %v281_v39 = vld [vmem:[%s33411_s22 + $0xa8] sm:$0xff]  ;;  %v15456_v16 = vcombine.high %v280_v38, %v280_v38 }
 0x53c   : > { %v30757_v60 = vadd.f32 %v30756_v57, %v30627_v17  ;;  %v30769_v58 = vadd.f32 %v30768_v37, %v30629_v18  ;;  %23971 = vmatpush1.msra.mxu0 %v35208_v34  ;;  %24436 = vmatpush1.msra.mxu1 %v35210_v35  ;;  %v15457_v17 = vcombine.high %v281_v39, %v281_v39 }
 0x53d   : > { %v30752_v31 = vrot.slane %v30751_v49, 2  ;;  %v30764_v56 = vrot.slane %v30763_v43, 2  ;;  %24034 = vmatprep.mubr.f32.mxu0 %v33189_v0  ;;  %24051 = vmatprep.subr.mxu0 %v24050_v51  ;;  %v15552_v18 = vsel %vm395_vm0, %v15456_v16, 0 }
 0x53e   : > { %v30758_v6 = vrot.slane %v30757_v60, 2  ;;  %v30770_v41 = vrot.slane %v30769_v58, 2  ;;  %24499 = vmatprep.mubr.f32.mxu1 %v33189_v0  ;;  %24516 = vmatprep.subr.mxu1 %v24515_v46  ;;  %v15556_v20 = vsel %vm395_vm0, %v15457_v17, 0  ;;  %v35305_v37 = vand.u32 4294901760, %v15552_v18 }
 0x53f   : > { %v30753_v11 = vadd.f32 %v30752_v31, %v30751_v49  ;;  %v30765_v13 = vadd.f32 %v30764_v56, %v30763_v43  ;;  %24040 = vmatmul.mubr.f32.vlgmr.msra.gmra.mrb[18].mxu0 %v34507_v12  ;;  %24505 = vmatmul.mubr.f32.vlgmr.msra.gmra.mrb[18].mxu1 %v34507_v12  ;;  %v15550_v46 = vsel %vm395_vm0, %v280_v38, 0 }
 0x540   : > { %v30759_v8 = vadd.f32 %v30758_v6, %v30757_v60  ;;  %v30771_v36 = vadd.f32 %v30770_v41, %v30769_v58  ;;  %24057 = vmatpush1.msra.mxu0 %v24056_v30  ;;  %24522 = vmatpush1.msra.mxu1 %v24521_v44  ;;  %v35318_v44 = vand.u32 4294901760, %v15550_v46  ;;  %v35326_v41 = vsub.f32 %v15552_v18, %v35305_v37 }
 0x541   : > { %v30754_v47 = vrot.slane %v30753_v11, 1  ;;  %v30766_v48 = vrot.slane %v30765_v13, 1  ;;  %24120 = vmatprep.mubr.f32.mxu0 %v33189_v0  ;;  %24130 = vmatprep.subr.mxu0 %v35216_v7  ;;  %v15554_v7 = vsel %vm395_vm0, %v281_v39, 0 }
 0x542   : > { %v30760_v55 = vrot.slane %v30759_v8, 1  ;;  %v30772_v59 = vrot.slane %v30771_v36, 1  ;;  %24585 = vmatprep.mubr.f32.mxu1 %v33189_v0  ;;  %24595 = vmatprep.subr.mxu1 %v35222_v24  ;;  %v35309_v24 = vand.u32 4294901760, %v15556_v20  ;;  %v35320_v31 = vand.u32 4294901760, %v15554_v7 }
 0x543   : > { %v30755_v61 = vadd.f32 %v30754_v47, %v30753_v11  ;;  %v30767_v62 = vadd.f32 %v30766_v48, %v30765_v13  ;;  %v35336_v11 = vsub.f32 %v15550_v46, %v35318_v44 }
 0x544   : > { %v30761_v1 = vadd.f32 %v30760_v55, %v30759_v8  ;;  %v30773_v3 = vadd.f32 %v30772_v59, %v30771_v36  ;;  %v24978_v8 = vand.u32 4294901760, %v35326_v41  ;;  %v32984_v36 = vld [vmem:[%s33420_s26 + $0x30] sm:$0xff]  ;;  %v32985_v59 = vld [vmem:[%s33420_s26 + $0x38] sm:$0xff] }
 0x545   : > { %v31078_v4 = vadd.f32 %v34942_v45, %v30755_v61  ;;  %v31080_v9 = vadd.f32 %v34942_v45, %v30767_v62 }
 0x546   : > { %v31079_v10 = vadd.f32 %v34942_v45, %v30761_v1  ;;  %v31081_v14 = vadd.f32 %v34942_v45, %v30773_v3 }
 0x547   : > { %v31142_v28 = vmul.f32 0.5, %v31078_v4  ;;  %v31144_v15 = vmul.f32 0.5, %v31080_v9  ;;  %24122 = vmatmul.mubr.f32.vlgmr.msra.gmra.mrb[18].mxu0 %v34447_v54  ;;  %24587 = vmatmul.mubr.f32.vlgmr.msra.gmra.mrb[18].mxu1 %v34447_v54 }
 0x548   : > { %v31143_v27 = vmul.f32 0.5, %v31079_v10  ;;  %v31145_v33 = vmul.f32 0.5, %v31081_v14  ;;  %24133 = vmatpush1.msra.mxu0 %v35226_v2  ;;  %24598 = vmatpush1.msra.mxu1 %v35229_v25  ;;  %v35332_v25 = vsub.f32 %v15556_v20, %v35309_v24  ;;  %v24984_v14 = vand.u32 4294901760, %v35336_v11 }
 0x549   : > { %32873 = vtanh.f32 %v31142_v28  ;;  %24196 = vmatprep.mubr.f32.mxu0 %v33189_v0  ;;  %24206 = vmatprep.subr.mxu0 %v35195_v52 }
 0x54a   : > { %32875 = vtanh.f32 %v31144_v15  ;;  %24661 = vmatprep.mubr.f32.mxu1 %v33189_v0  ;;  %24671 = vmatprep.subr.mxu1 %v35199_v40  ;;  %v25443_v55 = vand.u32 4294901760, %v35332_v25 }
 0x54b   : > { %32877 = vtanh.f32 %v31143_v27 }
 0x54c   : > { %32879 = vtanh.f32 %v31145_v33  ;;  %v24979_v33 = vsub.f32 %v35326_v41, %v24978_v8 }
 0x54f   : > { %24199 = vmatmul.mubr.f32.vlgmr.msra.gmra.mrb[18].mxu0 %v34466_v32  ;;  %24664 = vmatmul.mubr.f32.vlgmr.msra.gmra.mrb[18].mxu1 %v34466_v32 }
 0x550   : > { %24208 = vmatpush1.msra.mxu0 %v35208_v34  ;;  %24673 = vmatpush1.msra.mxu1 %v35210_v35 }
 0x551   : > { %24271 = vmatprep.mubr.f32.mxu0 %v33189_v0  ;;  %24284 = vmatprep.subr.mxu0 %v24048_v42 }
 0x552   : > { %24736 = vmatprep.mubr.f32.mxu1 %v33189_v0  ;;  %24749 = vmatprep.subr.mxu1 %v24513_v26 }
 0x553   : > { %v32874_v19 = vpop.eup %32873 }
 0x554   : > { %v32876_v21 = vpop.eup %32875  ;;  %v31270_v22 = vmul.f32 0.5, %v32874_v19  ;;  %v24985_v19 = vsub.f32 %v35336_v11, %v24984_v14 }
 0x555   : > { %v32878_v51 = vpop.eup %32877  ;;  %v31272_v57 = vmul.f32 0.5, %v32876_v21 }
 0x556   : > { %v32880_v42 = vpop.eup %32879  ;;  %v31334_v49 = vadd.f32 0.5, %v31270_v22  ;;  %v31271_v43 = vmul.f32 0.5, %v32878_v51  ;;  %v24980_v51 = vand.u32 4294901760, %v24979_v33 }
 0x557   : > { %v31336_v26 = vadd.f32 0.5, %v31272_v57  ;;  %v31273_v60 = vmul.f32 0.5, %v32880_v42  ;;  %24275 = vmatmul.mubr.f32.vlgmr.msra.gmra.mrb[18].mxu0 %v34479_v63  ;;  %24740 = vmatmul.mubr.f32.vlgmr.msra.gmra.mrb[18].mxu1 %v34479_v63 }
 0x558   : > { %v31437_v58 = vrot.slane %v31334_v49, %v34971_v23  ;;  %v31335_v30 = vadd.f32 0.5, %v31271_v43  ;;  %24288 = vmatpush1.msra.mxu0 %v24054_v29  ;;  %24753 = vmatpush1.msra.mxu1 %v24519_v50 }
 0x559   : > { %v31445_v56 = vrot.slane %v31336_v26, %v34971_v23  ;;  %v31337_v6 = vadd.f32 0.5, %v31273_v60  ;;  %24351 = vmatprep.mubr.f32.mxu0 %v33189_v0  ;;  %24360 = vmatprep.subr.mxu0 %v35195_v52  ;;  %v35339_v52 = vsub.f32 %v15554_v7, %v35320_v31  ;;  %v24986_v60 = vand.u32 4294901760, %v24985_v19 }
 0x55a   : > { %v31441_v2 = vrot.slane %v31335_v30, %v34971_v23  ;;  %24816 = vmatprep.mubr.f32.mxu1 %v33189_v0  ;;  %24825 = vmatprep.subr.mxu1 %v35199_v40 }
 0x55b   : > { %v31449_v29 = vrot.slane %v31337_v6, %v34971_v23  ;;  %v25449_v28 = vand.u32 4294901760, %v35339_v52 }
 0x55c   : > { %v31712_v50 = vcombine.low %v31437_v58, %v31441_v2 }
 0x55d   : > { %v31713_v13 = vcombine.low %v31445_v56, %v31449_v29  ;;  %v25450_v20 = vsub.f32 %v35339_v52, %v25449_v28 }
 0x55e   : > { %v31776_v47 = vmul.f32 %v32984_v36, %v31712_v50  ;;  %v19778_v48 = vpop.f32.mrb[8].mxu0  ;;  %v20243_v40 = vpop.f32.mrb[8].mxu1 }
 0x55f   : > { %v31777_v61 = vmul.f32 %v32985_v59, %v31713_v13  ;;  %v30498_v62 = vadd.f32 %v34888_v53, %v19778_v48  ;;  %v30500_v1 = vadd.f32 %v34888_v53, %v20243_v40  ;;  %v19780_v3 = vpop.f32.mrb[9].mxu0  ;;  %v20245_v4 = vpop.f32.mrb[9].mxu1  ;;  %24353 = vmatmul.mubr.f32.vlgmr.msra.gmra.mrb[18].mxu0 %v34447_v54  ;;  %24818 = vmatmul.mubr.f32.vlgmr.msra.gmra.mrb[18].mxu1 %v34447_v54  ;;  %v25451_v58 = vand.u32 4294901760, %v25450_v20 }
 0x560   : > { %31808 = vst [vmem:[%s35023_s30 + $0x30] sm:$0xff] %v31776_v47  ;;  %v30499_v9 = vadd.f32 %v34888_v53, %v19780_v3  ;;  %v30501_v10 = vadd.f32 %v34888_v53, %v20245_v4  ;;  %24362 = vmatpush1.msra.mxu0 %v35208_v34  ;;  %24827 = vmatpush1.msra.mxu1 %v35210_v35 }
 0x561   : > { %31809 = vst [vmem:[%s35023_s30 + $0x38] sm:$0xff] %v31777_v61  ;;  %v30562_v15 = vmax.f32 %v30498_v62, 0.0  ;;  %v30564_v27 = vmax.f32 %v30500_v1, 0.0  ;;  %24425 = vmatprep.mubr.f32.mxu0 %v33189_v0  ;;  %24890 = vmatprep.mubr.f32.mxu1 %v33189_v0  ;;  %v25444_v34 = vsub.f32 %v35332_v25, %v25443_v55 }
 0x562   : > { %v30563_v38 = vmax.f32 %v30499_v9, 0.0  ;;  %v30565_v39 = vmax.f32 %v30501_v10, 0.0  ;;  %24899 = vmatprep.subr.mxu0 %v35305_v37  ;;  %25364 = vmatprep.subr.mxu1 %v35309_v24 }
 0x563   : > { %v30630_v35 = vmul.f32 %v34906_v5, %v30562_v15  ;;  %v30632_v16 = vmul.f32 %v34906_v5, %v30564_v27  ;;  %v25445_v7 = vand.u32 4294901760, %v25444_v34  ;;  %v282_v34 = vld [vmem:[%s33411_s22 + $0xb0] sm:$0xff] }
 0x564   : > { %v30631_v17 = vmul.f32 %v34906_v5, %v30563_v38  ;;  %v30633_v18 = vmul.f32 %v34906_v5, %v30565_v39 }
 0x565   : > { %v30774_v21 = vrot.slane %v30630_v35, 4  ;;  %v30786_v22 = vrot.slane %v30632_v16, 4 }
 0x566   : > { %v30780_v57 = vrot.slane %v30631_v17, 4  ;;  %v30792_v46 = vrot.slane %v30633_v18, 4 }
 0x567   : > { %v30775_v42 = vadd.f32 %v30774_v21, %v30630_v35  ;;  %v30787_v49 = vadd.f32 %v30786_v22, %v30632_v16  ;;  %24427 = vmatmul.mubr.f32.vlgmr.msra.gmra.mrb[18].mxu0 %v34447_v54  ;;  %24892 = vmatmul.mubr.f32.vlgmr.msra.gmra.mrb[18].mxu1 %v34447_v54  ;;  %v283_v35 = vld [vmem:[%s33411_s22 + $0xb8] sm:$0xff]  ;;  %v15458_v16 = vcombine.high %v282_v34, %v282_v34 }
 0x568   : > { %v30781_v43 = vadd.f32 %v30780_v57, %v30631_v17  ;;  %v30793_v26 = vadd.f32 %v30792_v46, %v30633_v18  ;;  %24901 = vmatpush1.msra.mxu0 %v35318_v44  ;;  %25366 = vmatpush1.msra.mxu1 %v35320_v31  ;;  %v15459_v17 = vcombine.high %v283_v35, %v283_v35 }
 0x569   : > { %v30776_v30 = vrot.slane %v30775_v42, 2  ;;  %v30788_v56 = vrot.slane %v30787_v49, 2  ;;  %24964 = vmatprep.mubr.f32.mxu0 %v33189_v0  ;;  %24981 = vmatprep.subr.mxu0 %v24980_v51  ;;  %v15560_v18 = vsel %vm395_vm0, %v15458_v16, 0 }
 0x56a   : > { %v30782_v6 = vrot.slane %v30781_v43, 2  ;;  %v30794_v2 = vrot.slane %v30793_v26, 2  ;;  %25429 = vmatprep.mubr.f32.mxu1 %v33189_v0  ;;  %25446 = vmatprep.subr.mxu1 %v25445_v7  ;;  %v15564_v20 = vsel %vm395_vm0, %v15459_v17, 0  ;;  %v35415_v46 = vand.u32 4294901760, %v15560_v18 }
 0x56b   : > { %v30777_v29 = vadd.f32 %v30776_v30, %v30775_v42  ;;  %v30789_v50 = vadd.f32 %v30788_v56, %v30787_v49  ;;  %24970 = vmatmul.mubr.f32.vlgmr.msra.gmra.mrb[20].mxu0 %v34507_v12  ;;  %25435 = vmatmul.mubr.f32.vlgmr.msra.gmra.mrb[20].mxu1 %v34507_v12  ;;  %v15558_v7 = vsel %vm395_vm0, %v282_v34, 0 }
 0x56c   : > { %v30783_v13 = vadd.f32 %v30782_v6, %v30781_v43  ;;  %v30795_v36 = vadd.f32 %v30794_v2, %v30793_v26  ;;  %24987 = vmatpush1.msra.mxu0 %v24986_v60  ;;  %25452 = vmatpush1.msra.mxu1 %v25451_v58  ;;  %v35428_v58 = vand.u32 4294901760, %v15558_v7  ;;  %v35436_v2 = vsub.f32 %v15560_v18, %v35415_v46 }
 0x56d   : > { %v30778_v47 = vrot.slane %v30777_v29, 1  ;;  %v30790_v48 = vrot.slane %v30789_v50, 1  ;;  %25050 = vmatprep.mubr.f32.mxu0 %v33189_v0  ;;  %25060 = vmatprep.subr.mxu0 %v35326_v41  ;;  %v15562_v41 = vsel %vm395_vm0, %v283_v35, 0 }
 0x56e   : > { %v30784_v40 = vrot.slane %v30783_v13, 1  ;;  %v30796_v59 = vrot.slane %v30795_v36, 1  ;;  %25515 = vmatprep.mubr.f32.mxu1 %v33189_v0  ;;  %25525 = vmatprep.subr.mxu1 %v35332_v25  ;;  %v35419_v25 = vand.u32 4294901760, %v15564_v20  ;;  %v35430_v30 = vand.u32 4294901760, %v15562_v41 }
 0x56f   : > { %v30779_v61 = vadd.f32 %v30778_v47, %v30777_v29  ;;  %v30791_v62 = vadd.f32 %v30790_v48, %v30789_v50  ;;  %v35446_v29 = vsub.f32 %v15558_v7, %v35428_v58 }
 0x570   : > { %v30785_v1 = vadd.f32 %v30784_v40, %v30783_v13  ;;  %v30797_v3 = vadd.f32 %v30796_v59, %v30795_v36  ;;  %v25908_v13 = vand.u32 4294901760, %v35436_v2  ;;  %v32986_v36 = vld [vmem:[%s33420_s26 + $0x40] sm:$0xff]  ;;  %v32987_v59 = vld [vmem:[%s33420_s26 + $0x48] sm:$0xff] }
 0x571   : > { %v31082_v4 = vadd.f32 %v34942_v45, %v30779_v61  ;;  %v31084_v9 = vadd.f32 %v34942_v45, %v30791_v62 }
 0x572   : > { %v31083_v10 = vadd.f32 %v34942_v45, %v30785_v1  ;;  %v31085_v15 = vadd.f32 %v34942_v45, %v30797_v3 }
 0x573   : > { %v31146_v27 = vmul.f32 0.5, %v31082_v4  ;;  %v31148_v33 = vmul.f32 0.5, %v31084_v9  ;;  %25052 = vmatmul.mubr.f32.vlgmr.msra.gmra.mrb[20].mxu0 %v34447_v54  ;;  %25517 = vmatmul.mubr.f32.vlgmr.msra.gmra.mrb[20].mxu1 %v34447_v54 }
 0x574   : > { %v31147_v38 = vmul.f32 0.5, %v31083_v10  ;;  %v31149_v39 = vmul.f32 0.5, %v31085_v15  ;;  %25063 = vmatpush1.msra.mxu0 %v35336_v11  ;;  %25528 = vmatpush1.msra.mxu1 %v35339_v52  ;;  %v35442_v52 = vsub.f32 %v15564_v20, %v35419_v25  ;;  %v25914_v15 = vand.u32 4294901760, %v35446_v29 }
 0x575   : > { %32881 = vtanh.f32 %v31146_v27  ;;  %25126 = vmatprep.mubr.f32.mxu0 %v33189_v0  ;;  %25136 = vmatprep.subr.mxu0 %v35305_v37 }
 0x576   : > { %32883 = vtanh.f32 %v31148_v33  ;;  %25591 = vmatprep.mubr.f32.mxu1 %v33189_v0  ;;  %25601 = vmatprep.subr.mxu1 %v35309_v24  ;;  %v26373_v40 = vand.u32 4294901760, %v35442_v52 }
 0x577   : > { %32885 = vtanh.f32 %v31147_v38 }
 0x578   : > { %32887 = vtanh.f32 %v31149_v39  ;;  %v25909_v39 = vsub.f32 %v35436_v2, %v25908_v13 }
 0x57b   : > { %25129 = vmatmul.mubr.f32.vlgmr.msra.gmra.mrb[20].mxu0 %v34466_v32  ;;  %25594 = vmatmul.mubr.f32.vlgmr.msra.gmra.mrb[20].mxu1 %v34466_v32 }
 0x57c   : > { %25138 = vmatpush1.msra.mxu0 %v35318_v44  ;;  %25603 = vmatpush1.msra.mxu1 %v35320_v31 }
 0x57d   : > { %25201 = vmatprep.mubr.f32.mxu0 %v33189_v0  ;;  %25214 = vmatprep.subr.mxu0 %v24978_v8 }
 0x57e   : > { %25666 = vmatprep.mubr.f32.mxu1 %v33189_v0  ;;  %25679 = vmatprep.subr.mxu1 %v25443_v55 }
 0x57f   : > { %v32882_v19 = vpop.eup %32881 }
 0x580   : > { %v32884_v21 = vpop.eup %32883  ;;  %v31274_v22 = vmul.f32 0.5, %v32882_v19  ;;  %v25915_v19 = vsub.f32 %v35446_v29, %v25914_v15 }
 0x581   : > { %v32886_v51 = vpop.eup %32885  ;;  %v31276_v57 = vmul.f32 0.5, %v32884_v21 }
 0x582   : > { %v32888_v8 = vpop.eup %32887  ;;  %v31338_v42 = vadd.f32 0.5, %v31274_v22  ;;  %v31275_v49 = vmul.f32 0.5, %v32886_v51  ;;  %v25910_v51 = vand.u32 4294901760, %v25909_v39 }
 0x583   : > { %v31340_v55 = vadd.f32 0.5, %v31276_v57  ;;  %v31277_v43 = vmul.f32 0.5, %v32888_v8  ;;  %25205 = vmatmul.mubr.f32.vlgmr.msra.gmra.mrb[20].mxu0 %v34479_v63  ;;  %25670 = vmatmul.mubr.f32.vlgmr.msra.gmra.mrb[20].mxu1 %v34479_v63 }
 0x584   : > { %v31453_v26 = vrot.slane %v31338_v42, %v34971_v23  ;;  %v31339_v60 = vadd.f32 0.5, %v31275_v49  ;;  %25218 = vmatpush1.msra.mxu0 %v24984_v14  ;;  %25683 = vmatpush1.msra.mxu1 %v25449_v28 }
 0x585   : > { %v31461_v56 = vrot.slane %v31340_v55, %v34971_v23  ;;  %v31341_v6 = vadd.f32 0.5, %v31277_v43  ;;  %25281 = vmatprep.mubr.f32.mxu0 %v33189_v0  ;;  %25290 = vmatprep.subr.mxu0 %v35305_v37  ;;  %v35449_v37 = vsub.f32 %v15562_v41, %v35430_v30  ;;  %v25916_v43 = vand.u32 4294901760, %v25915_v19 }
 0x586   : > { %v31457_v11 = vrot.slane %v31339_v60, %v34971_v23  ;;  %25746 = vmatprep.mubr.f32.mxu1 %v33189_v0  ;;  %25755 = vmatprep.subr.mxu1 %v35309_v24 }
 0x587   : > { %v31465_v14 = vrot.slane %v31341_v6, %v34971_v23  ;;  %v26379_v27 = vand.u32 4294901760, %v35449_v37 }
 0x588   : > { %v31714_v28 = vcombine.low %v31453_v26, %v31457_v11 }
 0x589   : > { %v31715_v50 = vcombine.low %v31461_v56, %v31465_v14  ;;  %v26380_v20 = vsub.f32 %v35449_v37, %v26379_v27 }
 0x58a   : > { %v31778_v47 = vmul.f32 %v32986_v36, %v31714_v28  ;;  %v20708_v48 = vpop.f32.mrb[10].mxu0  ;;  %v21173_v24 = vpop.f32.mrb[10].mxu1 }
 0x58b   : > { %v31779_v61 = vmul.f32 %v32987_v59, %v31715_v50  ;;  %v30502_v62 = vadd.f32 %v34888_v53, %v20708_v48  ;;  %v30504_v1 = vadd.f32 %v34888_v53, %v21173_v24  ;;  %v20710_v3 = vpop.f32.mrb[11].mxu0  ;;  %v21175_v4 = vpop.f32.mrb[11].mxu1  ;;  %25283 = vmatmul.mubr.f32.vlgmr.msra.gmra.mrb[20].mxu0 %v34447_v54  ;;  %25748 = vmatmul.mubr.f32.vlgmr.msra.gmra.mrb[20].mxu1 %v34447_v54  ;;  %v26381_v26 = vand.u32 4294901760, %v26380_v20 }
 0x58c   : > { %31810 = vst [vmem:[%s35023_s30 + $0x40] sm:$0xff] %v31778_v47  ;;  %v30503_v9 = vadd.f32 %v34888_v53, %v20710_v3  ;;  %v30505_v10 = vadd.f32 %v34888_v53, %v21175_v4  ;;  %25292 = vmatpush1.msra.mxu0 %v35318_v44  ;;  %25757 = vmatpush1.msra.mxu1 %v35320_v31 }
 0x58d   : > { %31811 = vst [vmem:[%s35023_s30 + $0x48] sm:$0xff] %v31779_v61  ;;  %v30566_v33 = vmax.f32 %v30502_v62, 0.0  ;;  %v30568_v38 = vmax.f32 %v30504_v1, 0.0  ;;  %25355 = vmatprep.mubr.f32.mxu0 %v33189_v0  ;;  %25820 = vmatprep.mubr.f32.mxu1 %v33189_v0  ;;  %v26374_v44 = vsub.f32 %v35442_v52, %v26373_v40 }
 0x58e   : > { %v30567_v34 = vmax.f32 %v30503_v9, 0.0  ;;  %v30569_v35 = vmax.f32 %v30505_v10, 0.0  ;;  %25829 = vmatprep.subr.mxu0 %v35415_v46  ;;  %26294 = vmatprep.subr.mxu1 %v35419_v25 }
 0x58f   : > { %v30634_v31 = vmul.f32 %v34906_v5, %v30566_v33  ;;  %v30636_v16 = vmul.f32 %v34906_v5, %v30568_v38  ;;  %v26375_v41 = vand.u32 4294901760, %v26374_v44  ;;  %v284_v44 = vld [vmem:[%s33411_s22 + $0xc0] sm:$0xff] }
 0x590   : > { %v30635_v17 = vmul.f32 %v34906_v5, %v30567_v34  ;;  %v30637_v18 = vmul.f32 %v34906_v5, %v30569_v35 }
 0x591   : > { %v30798_v21 = vrot.slane %v30634_v31, 4  ;;  %v30810_v22 = vrot.slane %v30636_v16, 4 }
 0x592   : > { %v30804_v57 = vrot.slane %v30635_v17, 4  ;;  %v30816_v7 = vrot.slane %v30637_v18, 4 }
 0x593   : > { %v30799_v8 = vadd.f32 %v30798_v21, %v30634_v31  ;;  %v30811_v42 = vadd.f32 %v30810_v22, %v30636_v16  ;;  %25357 = vmatmul.mubr.f32.vlgmr.msra.gmra.mrb[20].mxu0 %v34447_v54  ;;  %25822 = vmatmul.mubr.f32.vlgmr.msra.gmra.mrb[20].mxu1 %v34447_v54  ;;  %v285_v31 = vld [vmem:[%s33411_s22 + $0xc8] sm:$0xff]  ;;  %v15460_v16 = vcombine.high %v284_v44, %v284_v44 }
 0x594   : > { %v30805_v49 = vadd.f32 %v30804_v57, %v30635_v17  ;;  %v30817_v55 = vadd.f32 %v30816_v7, %v30637_v18  ;;  %25831 = vmatpush1.msra.mxu0 %v35428_v58  ;;  %26296 = vmatpush1.msra.mxu1 %v35430_v30  ;;  %v15461_v17 = vcombine.high %v285_v31, %v285_v31 }
 0x595   : > { %v30800_v60 = vrot.slane %v30799_v8, 2  ;;  %v30812_v56 = vrot.slane %v30811_v42, 2  ;;  %25894 = vmatprep.mubr.f32.mxu0 %v33189_v0  ;;  %25911 = vmatprep.subr.mxu0 %v25910_v51  ;;  %v15568_v18 = vsel %vm395_vm0, %v15460_v16, 0 }
 0x596   : > { %v30806_v6 = vrot.slane %v30805_v49, 2  ;;  %v30818_v11 = vrot.slane %v30817_v55, 2  ;;  %26359 = vmatprep.mubr.f32.mxu1 %v33189_v0  ;;  %26376 = vmatprep.subr.mxu1 %v26375_v41  ;;  %v15572_v20 = vsel %vm395_vm0, %v15461_v17, 0  ;;  %v35525_v7 = vand.u32 4294901760, %v15568_v18 }
 0x597   : > { %v30801_v14 = vadd.f32 %v30800_v60, %v30799_v8  ;;  %v30813_v28 = vadd.f32 %v30812_v56, %v30811_v42  ;;  %25900 = vmatmul.mubr.f32.vlgmr.msra.gmra.mrb[22].mxu0 %v34507_v12  ;;  %26365 = vmatmul.mubr.f32.vlgmr.msra.gmra.mrb[22].mxu1 %v34507_v12  ;;  %v15566_v41 = vsel %vm395_vm0, %v284_v44, 0 }
 0x598   : > { %v30807_v50 = vadd.f32 %v30806_v6, %v30805_v49  ;;  %v30819_v36 = vadd.f32 %v30818_v11, %v30817_v55  ;;  %25917 = vmatpush1.msra.mxu0 %v25916_v43  ;;  %26382 = vmatpush1.msra.mxu1 %v26381_v26  ;;  %v35538_v26 = vand.u32 4294901760, %v15566_v41  ;;  %v35546_v11 = vsub.f32 %v15568_v18, %v35525_v7 }
 0x599   : > { %v30802_v47 = vrot.slane %v30801_v14, 1  ;;  %v30814_v48 = vrot.slane %v30813_v28, 1  ;;  %25980 = vmatprep.mubr.f32.mxu0 %v33189_v0  ;;  %25990 = vmatprep.subr.mxu0 %v35436_v2  ;;  %v15570_v2 = vsel %vm395_vm0, %v285_v31, 0 }
 0x59a   : > { %v30808_v24 = vrot.slane %v30807_v50, 1  ;;  %v30820_v59 = vrot.slane %v30819_v36, 1  ;;  %26445 = vmatprep.mubr.f32.mxu1 %v33189_v0  ;;  %26455 = vmatprep.subr.mxu1 %v35442_v52  ;;  %v35529_v52 = vand.u32 4294901760, %v15572_v20  ;;  %v35540_v60 = vand.u32 4294901760, %v15570_v2 }
 0x59b   : > { %v30803_v61 = vadd.f32 %v30802_v47, %v30801_v14  ;;  %v30815_v62 = vadd.f32 %v30814_v48, %v30813_v28  ;;  %v35556_v14 = vsub.f32 %v15566_v41, %v35538_v26 }
 0x59c   : > { %v30809_v1 = vadd.f32 %v30808_v24, %v30807_v50  ;;  %v30821_v3 = vadd.f32 %v30820_v59, %v30819_v36  ;;  %v26838_v50 = vand.u32 4294901760, %v35546_v11  ;;  %v32988_v36 = vld [vmem:[%s33420_s26 + $0x50] sm:$0xff]  ;;  %v32989_v59 = vld [vmem:[%s33420_s26 + $0x58] sm:$0xff] }
 0x59d   : > { %v31086_v4 = vadd.f32 %v34942_v45, %v30803_v61  ;;  %v31088_v9 = vadd.f32 %v34942_v45, %v30815_v62 }
 0x59e   : > { %v31087_v10 = vadd.f32 %v34942_v45, %v30809_v1  ;;  %v31089_v33 = vadd.f32 %v34942_v45, %v30821_v3 }
 0x59f   : > { %v31150_v38 = vmul.f32 0.5, %v31086_v4  ;;  %v31152_v39 = vmul.f32 0.5, %v31088_v9  ;;  %25982 = vmatmul.mubr.f32.vlgmr.msra.gmra.mrb[22].mxu0 %v34447_v54  ;;  %26447 = vmatmul.mubr.f32.vlgmr.msra.gmra.mrb[22].mxu1 %v34447_v54 }
 0x5a0   : > { %v31151_v34 = vmul.f32 0.5, %v31087_v10  ;;  %v31153_v35 = vmul.f32 0.5, %v31089_v33  ;;  %25993 = vmatpush1.msra.mxu0 %v35446_v29  ;;  %26458 = vmatpush1.msra.mxu1 %v35449_v37  ;;  %v35552_v37 = vsub.f32 %v15572_v20, %v35529_v52  ;;  %v26844_v33 = vand.u32 4294901760, %v35556_v14 }
 0x5a1   : > { %32889 = vtanh.f32 %v31150_v38  ;;  %26056 = vmatprep.mubr.f32.mxu0 %v33189_v0  ;;  %26066 = vmatprep.subr.mxu0 %v35415_v46 }
 0x5a2   : > { %32891 = vtanh.f32 %v31152_v39  ;;  %26521 = vmatprep.mubr.f32.mxu1 %v33189_v0  ;;  %26531 = vmatprep.subr.mxu1 %v35419_v25  ;;  %v27303_v24 = vand.u32 4294901760, %v35552_v37 }
 0x5a3   : > { %32893 = vtanh.f32 %v31151_v34 }
 0x5a4   : > { %32895 = vtanh.f32 %v31153_v35  ;;  %v26839_v35 = vsub.f32 %v35546_v11, %v26838_v50 }
 0x5a7   : > { %26059 = vmatmul.mubr.f32.vlgmr.msra.gmra.mrb[22].mxu0 %v34466_v32  ;;  %26524 = vmatmul.mubr.f32.vlgmr.msra.gmra.mrb[22].mxu1 %v34466_v32 }
 0x5a8   : > { %26068 = vmatpush1.msra.mxu0 %v35428_v58  ;;  %26533 = vmatpush1.msra.mxu1 %v35430_v30 }
 0x5a9   : > { %26131 = vmatprep.mubr.f32.mxu0 %v33189_v0  ;;  %26144 = vmatprep.subr.mxu0 %v25908_v13 }
 0x5aa   : > { %26596 = vmatprep.mubr.f32.mxu1 %v33189_v0  ;;  %26609 = vmatprep.subr.mxu1 %v26373_v40 }
 0x5ab   : > { %v32890_v19 = vpop.eup %32889 }
 0x5ac   : > { %v32892_v21 = vpop.eup %32891  ;;  %v31278_v22 = vmul.f32 0.5, %v32890_v19  ;;  %v26845_v19 = vsub.f32 %v35556_v14, %v26844_v33 }
 0x5ad   : > { %v32894_v51 = vpop.eup %32893  ;;  %v31280_v57 = vmul.f32 0.5, %v32892_v21 }
 0x5ae   : > { %v32896_v13 = vpop.eup %32895  ;;  %v31342_v8 = vadd.f32 0.5, %v31278_v22  ;;  %v31279_v42 = vmul.f32 0.5, %v32894_v51  ;;  %v26840_v51 = vand.u32 4294901760, %v26839_v35 }
 0x5af   : > { %v31344_v40 = vadd.f32 0.5, %v31280_v57  ;;  %v31281_v49 = vmul.f32 0.5, %v32896_v13  ;;  %26135 = vmatmul.mubr.f32.vlgmr.msra.gmra.mrb[22].mxu0 %v34479_v63  ;;  %26600 = vmatmul.mubr.f32.vlgmr.msra.gmra.mrb[22].mxu1 %v34479_v63 }
 0x5b0   : > { %v31469_v55 = vrot.slane %v31342_v8, %v34971_v23  ;;  %v31343_v43 = vadd.f32 0.5, %v31279_v42  ;;  %26148 = vmatpush1.msra.mxu0 %v25914_v15  ;;  %26613 = vmatpush1.msra.mxu1 %v26379_v27 }
 0x5b1   : > { %v31477_v56 = vrot.slane %v31344_v40, %v34971_v23  ;;  %v31345_v6 = vadd.f32 0.5, %v31281_v49  ;;  %26211 = vmatprep.mubr.f32.mxu0 %v33189_v0  ;;  %26220 = vmatprep.subr.mxu0 %v35415_v46  ;;  %v35559_v46 = vsub.f32 %v15570_v2, %v35540_v60  ;;  %v26846_v49 = vand.u32 4294901760, %v26845_v19 }
 0x5b2   : > { %v31473_v29 = vrot.slane %v31343_v43, %v34971_v23  ;;  %26676 = vmatprep.mubr.f32.mxu1 %v33189_v0  ;;  %26685 = vmatprep.subr.mxu1 %v35419_v25 }
 0x5b3   : > { %v31481_v15 = vrot.slane %v31345_v6, %v34971_v23  ;;  %v27309_v38 = vand.u32 4294901760, %v35559_v46 }
 0x5b4   : > { %v31716_v27 = vcombine.low %v31469_v55, %v31473_v29 }
 0x5b5   : > { %v31717_v28 = vcombine.low %v31477_v56, %v31481_v15  ;;  %v27310_v20 = vsub.f32 %v35559_v46, %v27309_v38 }
 0x5b6   : > { %v31780_v47 = vmul.f32 %v32988_v36, %v31716_v27  ;;  %v21638_v48 = vpop.f32.mrb[12].mxu0  ;;  %v22103_v25 = vpop.f32.mrb[12].mxu1 }
 0x5b7   : > { %v31781_v61 = vmul.f32 %v32989_v59, %v31717_v28  ;;  %v30506_v62 = vadd.f32 %v34888_v53, %v21638_v48  ;;  %v30508_v1 = vadd.f32 %v34888_v53, %v22103_v25  ;;  %v21640_v3 = vpop.f32.mrb[13].mxu0  ;;  %v22105_v4 = vpop.f32.mrb[13].mxu1  ;;  %26213 = vmatmul.mubr.f32.vlgmr.msra.gmra.mrb[22].mxu0 %v34447_v54  ;;  %26678 = vmatmul.mubr.f32.vlgmr.msra.gmra.mrb[22].mxu1 %v34447_v54  ;;  %v27311_v55 = vand.u32 4294901760, %v27310_v20 }
 0x5b8   : > { %31812 = vst [vmem:[%s35023_s30 + $0x50] sm:$0xff] %v31780_v47  ;;  %v30507_v9 = vadd.f32 %v34888_v53, %v21640_v3  ;;  %v30509_v10 = vadd.f32 %v34888_v53, %v22105_v4  ;;  %26222 = vmatpush1.msra.mxu0 %v35428_v58  ;;  %26687 = vmatpush1.msra.mxu1 %v35430_v30 }
 0x5b9   : > { %31813 = vst [vmem:[%s35023_s30 + $0x58] sm:$0xff] %v31781_v61  ;;  %v30570_v39 = vmax.f32 %v30506_v62, 0.0  ;;  %v30572_v34 = vmax.f32 %v30508_v1, 0.0  ;;  %26285 = vmatprep.mubr.f32.mxu0 %v33189_v0  ;;  %26750 = vmatprep.mubr.f32.mxu1 %v33189_v0  ;;  %v27304_v58 = vsub.f32 %v35552_v37, %v27303_v24 }
 0x5ba   : > { %v30571_v44 = vmax.f32 %v30507_v9, 0.0  ;;  %v30573_v31 = vmax.f32 %v30509_v10, 0.0  ;;  %26759 = vmatprep.subr.mxu0 %v35525_v7  ;;  %27224 = vmatprep.subr.mxu1 %v35529_v52 }
 0x5bb   : > { %v30638_v30 = vmul.f32 %v34906_v5, %v30570_v39  ;;  %v30640_v16 = vmul.f32 %v34906_v5, %v30572_v34  ;;  %v27305_v2 = vand.u32 4294901760, %v27304_v58  ;;  %v286_v58 = vld [vmem:[%s33411_s22 + $0xd0] sm:$0xff] }
 0x5bc   : > { %v30639_v17 = vmul.f32 %v34906_v5, %v30571_v44  ;;  %v30641_v18 = vmul.f32 %v34906_v5, %v30573_v31 }
 0x5bd   : > { %v30822_v21 = vrot.slane %v30638_v30, 4  ;;  %v30834_v22 = vrot.slane %v30640_v16, 4 }
 0x5be   : > { %v30828_v57 = vrot.slane %v30639_v17, 4  ;;  %v30840_v41 = vrot.slane %v30641_v18, 4 }
 0x5bf   : > { %v30823_v13 = vadd.f32 %v30822_v21, %v30638_v30  ;;  %v30835_v8 = vadd.f32 %v30834_v22, %v30640_v16  ;;  %26287 = vmatmul.mubr.f32.vlgmr.msra.gmra.mrb[22].mxu0 %v34447_v54  ;;  %26752 = vmatmul.mubr.f32.vlgmr.msra.gmra.mrb[22].mxu1 %v34447_v54  ;;  %v287_v30 = vld [vmem:[%s33411_s22 + $0xd8] sm:$0xff]  ;;  %v15462_v16 = vcombine.high %v286_v58, %v286_v58 }
 0x5c0   : > { %v30829_v42 = vadd.f32 %v30828_v57, %v30639_v17  ;;  %v30841_v40 = vadd.f32 %v30840_v41, %v30641_v18  ;;  %26761 = vmatpush1.msra.mxu0 %v35538_v26  ;;  %27226 = vmatpush1.msra.mxu1 %v35540_v60  ;;  %v15463_v17 = vcombine.high %v287_v30, %v287_v30 }
 0x5c1   : > { %v30824_v43 = vrot.slane %v30823_v13, 2  ;;  %v30836_v56 = vrot.slane %v30835_v8, 2  ;;  %26824 = vmatprep.mubr.f32.mxu0 %v33189_v0  ;;  %26841 = vmatprep.subr.mxu0 %v26840_v51  ;;  %v15576_v18 = vsel %vm395_vm0, %v15462_v16, 0 }
 0x5c2   : > { %v30830_v6 = vrot.slane %v30829_v42, 2  ;;  %v30842_v29 = vrot.slane %v30841_v40, 2  ;;  %27289 = vmatprep.mubr.f32.mxu1 %v33189_v0  ;;  %27306 = vmatprep.subr.mxu1 %v27305_v2  ;;  %v15580_v20 = vsel %vm395_vm0, %v15463_v17, 0  ;;  %v35635_v41 = vand.u32 4294901760, %v15576_v18 }
 0x5c3   : > { %v30825_v15 = vadd.f32 %v30824_v43, %v30823_v13  ;;  %v30837_v27 = vadd.f32 %v30836_v56, %v30835_v8  ;;  %26830 = vmatmul.mubr.f32.vlgmr.msra.gmra.mrb[24].mxu0 %v34507_v12  ;;  %27295 = vmatmul.mubr.f32.vlgmr.msra.gmra.mrb[24].mxu1 %v34507_v12  ;;  %v15574_v2 = vsel %vm395_vm0, %v286_v58, 0 }
 0x5c4   : > { %v30831_v28 = vadd.f32 %v30830_v6, %v30829_v42  ;;  %v30843_v36 = vadd.f32 %v30842_v29, %v30841_v40  ;;  %26847 = vmatpush1.msra.mxu0 %v26846_v49  ;;  %27312 = vmatpush1.msra.mxu1 %v27311_v55  ;;  %v35648_v55 = vand.u32 4294901760, %v15574_v2  ;;  %v35656_v29 = vsub.f32 %v15576_v18, %v35635_v41 }
 0x5c5   : > { %v30826_v47 = vrot.slane %v30825_v15, 1  ;;  %v30838_v48 = vrot.slane %v30837_v27, 1  ;;  %26910 = vmatprep.mubr.f32.mxu0 %v33189_v0  ;;  %26920 = vmatprep.subr.mxu0 %v35546_v11  ;;  %v15578_v11 = vsel %vm395_vm0, %v287_v30, 0 }
 0x5c6   : > { %v30832_v25 = vrot.slane %v30831_v28, 1  ;;  %v30844_v59 = vrot.slane %v30843_v36, 1  ;;  %27375 = vmatprep.mubr.f32.mxu1 %v33189_v0  ;;  %27385 = vmatprep.subr.mxu1 %v35552_v37  ;;  %v35639_v37 = vand.u32 4294901760, %v15580_v20  ;;  %v35650_v43 = vand.u32 4294901760, %v15578_v11 }
 0x5c7   : > { %v30827_v61 = vadd.f32 %v30826_v47, %v30825_v15  ;;  %v30839_v62 = vadd.f32 %v30838_v48, %v30837_v27  ;;  %v35666_v15 = vsub.f32 %v15574_v2, %v35648_v55 }
 0x5c8   : > { %v30833_v1 = vadd.f32 %v30832_v25, %v30831_v28  ;;  %v30845_v3 = vadd.f32 %v30844_v59, %v30843_v36  ;;  %v27768_v28 = vand.u32 4294901760, %v35656_v29  ;;  %v32990_v36 = vld [vmem:[%s33420_s26 + $0x60] sm:$0xff]  ;;  %v32991_v59 = vld [vmem:[%s33420_s26 + $0x68] sm:$0xff] }
 0x5c9   : > { %v31090_v4 = vadd.f32 %v34942_v45, %v30827_v61  ;;  %v31092_v9 = vadd.f32 %v34942_v45, %v30839_v62 }
 0x5ca   : > { %v31091_v10 = vadd.f32 %v34942_v45, %v30833_v1  ;;  %v31093_v39 = vadd.f32 %v34942_v45, %v30845_v3 }
 0x5cb   : > { %v31154_v34 = vmul.f32 0.5, %v31090_v4  ;;  %v31156_v35 = vmul.f32 0.5, %v31092_v9  ;;  %26912 = vmatmul.mubr.f32.vlgmr.msra.gmra.mrb[24].mxu0 %v34447_v54  ;;  %27377 = vmatmul.mubr.f32.vlgmr.msra.gmra.mrb[24].mxu1 %v34447_v54 }
 0x5cc   : > { %v31155_v44 = vmul.f32 0.5, %v31091_v10  ;;  %v31157_v31 = vmul.f32 0.5, %v31093_v39  ;;  %26923 = vmatpush1.msra.mxu0 %v35556_v14  ;;  %27388 = vmatpush1.msra.mxu1 %v35559_v46  ;;  %v35662_v46 = vsub.f32 %v15580_v20, %v35639_v37  ;;  %v27774_v39 = vand.u32 4294901760, %v35666_v15 }
 0x5cd   : > { %32897 = vtanh.f32 %v31154_v34  ;;  %26986 = vmatprep.mubr.f32.mxu0 %v33189_v0  ;;  %26996 = vmatprep.subr.mxu0 %v35525_v7 }
 0x5ce   : > { %32899 = vtanh.f32 %v31156_v35  ;;  %27451 = vmatprep.mubr.f32.mxu1 %v33189_v0  ;;  %27461 = vmatprep.subr.mxu1 %v35529_v52  ;;  %v28233_v25 = vand.u32 4294901760, %v35662_v46 }
 0x5cf   : > { %32901 = vtanh.f32 %v31155_v44 }
 0x5d0   : > { %32903 = vtanh.f32 %v31157_v31  ;;  %v27769_v31 = vsub.f32 %v35656_v29, %v27768_v28 }
 0x5d3   : > { %26989 = vmatmul.mubr.f32.vlgmr.msra.gmra.mrb[24].mxu0 %v34466_v32  ;;  %27454 = vmatmul.mubr.f32.vlgmr.msra.gmra.mrb[24].mxu1 %v34466_v32 }
 0x5d4   : > { %26998 = vmatpush1.msra.mxu0 %v35538_v26  ;;  %27463 = vmatpush1.msra.mxu1 %v35540_v60 }
 0x5d5   : > { %27061 = vmatprep.mubr.f32.mxu0 %v33189_v0  ;;  %27074 = vmatprep.subr.mxu0 %v26838_v50 }
 0x5d6   : > { %27526 = vmatprep.mubr.f32.mxu1 %v33189_v0  ;;  %27539 = vmatprep.subr.mxu1 %v27303_v24 }
 0x5d7   : > { %v32898_v19 = vpop.eup %32897 }
 0x5d8   : > { %v32900_v21 = vpop.eup %32899  ;;  %v31282_v22 = vmul.f32 0.5, %v32898_v19  ;;  %v27775_v19 = vsub.f32 %v35666_v15, %v27774_v39 }
 0x5d9   : > { %v32902_v51 = vpop.eup %32901  ;;  %v31284_v57 = vmul.f32 0.5, %v32900_v21 }
 0x5da   : > { %v32904_v50 = vpop.eup %32903  ;;  %v31346_v13 = vadd.f32 0.5, %v31282_v22  ;;  %v31283_v8 = vmul.f32 0.5, %v32902_v51  ;;  %v27770_v51 = vand.u32 4294901760, %v27769_v31 }
 0x5db   : > { %v31348_v24 = vadd.f32 0.5, %v31284_v57  ;;  %v31285_v42 = vmul.f32 0.5, %v32904_v50  ;;  %27065 = vmatmul.mubr.f32.vlgmr.msra.gmra.mrb[24].mxu0 %v34479_v63  ;;  %27530 = vmatmul.mubr.f32.vlgmr.msra.gmra.mrb[24].mxu1 %v34479_v63 }
 0x5dc   : > { %v31485_v40 = vrot.slane %v31346_v13, %v34971_v23  ;;  %v31347_v49 = vadd.f32 0.5, %v31283_v8  ;;  %27078 = vmatpush1.msra.mxu0 %v26844_v33  ;;  %27543 = vmatpush1.msra.mxu1 %v27309_v38 }
 0x5dd   : > { %v31493_v56 = vrot.slane %v31348_v24, %v34971_v23  ;;  %v31349_v6 = vadd.f32 0.5, %v31285_v42  ;;  %27141 = vmatprep.mubr.f32.mxu0 %v33189_v0  ;;  %27150 = vmatprep.subr.mxu0 %v35525_v7  ;;  %v35669_v7 = vsub.f32 %v15578_v11, %v35650_v43  ;;  %v27776_v42 = vand.u32 4294901760, %v27775_v19 }
 0x5de   : > { %v31489_v14 = vrot.slane %v31347_v49, %v34971_v23  ;;  %27606 = vmatprep.mubr.f32.mxu1 %v33189_v0  ;;  %27615 = vmatprep.subr.mxu1 %v35529_v52 }
 0x5df   : > { %v31497_v33 = vrot.slane %v31349_v6, %v34971_v23  ;;  %v28239_v34 = vand.u32 4294901760, %v35669_v7 }
 0x5e0   : > { %v31718_v38 = vcombine.low %v31485_v40, %v31489_v14 }
 0x5e1   : > { %v31719_v27 = vcombine.low %v31493_v56, %v31497_v33  ;;  %v28240_v20 = vsub.f32 %v35669_v7, %v28239_v34 }
 0x5e2   : > { %v31782_v47 = vmul.f32 %v32990_v36, %v31718_v38  ;;  %v22568_v48 = vpop.f32.mrb[14].mxu0  ;;  %v23033_v52 = vpop.f32.mrb[14].mxu1 }
 0x5e3   : > { %v31783_v61 = vmul.f32 %v32991_v59, %v31719_v27  ;;  %v30510_v62 = vadd.f32 %v34888_v53, %v22568_v48  ;;  %v30512_v1 = vadd.f32 %v34888_v53, %v23033_v52  ;;  %v22570_v3 = vpop.f32.mrb[15].mxu0  ;;  %v23035_v4 = vpop.f32.mrb[15].mxu1  ;;  %27143 = vmatmul.mubr.f32.vlgmr.msra.gmra.mrb[24].mxu0 %v34447_v54  ;;  %27608 = vmatmul.mubr.f32.vlgmr.msra.gmra.mrb[24].mxu1 %v34447_v54  ;;  %v28241_v40 = vand.u32 4294901760, %v28240_v20 }
 0x5e4   : > { %31814 = vst [vmem:[%s35023_s30 + $0x60] sm:$0xff] %v31782_v47  ;;  %v30511_v9 = vadd.f32 %v34888_v53, %v22570_v3  ;;  %v30513_v10 = vadd.f32 %v34888_v53, %v23035_v4  ;;  %27152 = vmatpush1.msra.mxu0 %v35538_v26  ;;  %27617 = vmatpush1.msra.mxu1 %v35540_v60 }
 0x5e5   : > { %31815 = vst [vmem:[%s35023_s30 + $0x68] sm:$0xff] %v31783_v61  ;;  %v30574_v35 = vmax.f32 %v30510_v62, 0.0  ;;  %v30576_v44 = vmax.f32 %v30512_v1, 0.0  ;;  %27215 = vmatprep.mubr.f32.mxu0 %v33189_v0  ;;  %27680 = vmatprep.mubr.f32.mxu1 %v33189_v0  ;;  %v28234_v26 = vsub.f32 %v35662_v46, %v28233_v25 }
 0x5e6   : > { %v30575_v58 = vmax.f32 %v30511_v9, 0.0  ;;  %v30577_v30 = vmax.f32 %v30513_v10, 0.0  ;;  %27689 = vmatprep.subr.mxu0 %v35635_v41  ;;  %28154 = vmatprep.subr.mxu1 %v35639_v37 }
 0x5e7   : > { %v30642_v60 = vmul.f32 %v34906_v5, %v30574_v35  ;;  %v30644_v16 = vmul.f32 %v34906_v5, %v30576_v44  ;;  %v28235_v11 = vand.u32 4294901760, %v28234_v26  ;;  %v288_v26 = vld [vmem:[%s33411_s22 + $0xe0] sm:$0xff] }
 0x5e8   : > { %v30643_v17 = vmul.f32 %v34906_v5, %v30575_v58  ;;  %v30645_v18 = vmul.f32 %v34906_v5, %v30577_v30 }
 0x5e9   : > { %v30846_v21 = vrot.slane %v30642_v60, 4  ;;  %v30858_v22 = vrot.slane %v30644_v16, 4 }
 0x5ea   : > { %v30852_v57 = vrot.slane %v30643_v17, 4  ;;  %v30864_v2 = vrot.slane %v30645_v18, 4 }
 0x5eb   : > { %v30847_v50 = vadd.f32 %v30846_v21, %v30642_v60  ;;  %v30859_v13 = vadd.f32 %v30858_v22, %v30644_v16  ;;  %27217 = vmatmul.mubr.f32.vlgmr.msra.gmra.mrb[24].mxu0 %v34447_v54  ;;  %27682 = vmatmul.mubr.f32.vlgmr.msra.gmra.mrb[24].mxu1 %v34447_v54  ;;  %v289_v60 = vld [vmem:[%s33411_s22 + $0xe8] sm:$0xff]  ;;  %v15464_v16 = vcombine.high %v288_v26, %v288_v26 }
 0x5ec   : > { %v30853_v8 = vadd.f32 %v30852_v57, %v30643_v17  ;;  %v30865_v24 = vadd.f32 %v30864_v2, %v30645_v18  ;;  %27691 = vmatpush1.msra.mxu0 %v35648_v55  ;;  %28156 = vmatpush1.msra.mxu1 %v35650_v43  ;;  %v15465_v17 = vcombine.high %v289_v60, %v289_v60 }
 0x5ed   : > { %v30848_v49 = vrot.slane %v30847_v50, 2  ;;  %v30860_v56 = vrot.slane %v30859_v13, 2  ;;  %27754 = vmatprep.mubr.f32.mxu0 %v33189_v0  ;;  %27771 = vmatprep.subr.mxu0 %v27770_v51  ;;  %v15584_v18 = vsel %vm395_vm0, %v15464_v16, 0 }
 0x5ee   : > { %v30854_v6 = vrot.slane %v30853_v8, 2  ;;  %v30866_v14 = vrot.slane %v30865_v24, 2  ;;  %28219 = vmatprep.mubr.f32.mxu1 %v33189_v0  ;;  %28236 = vmatprep.subr.mxu1 %v28235_v11  ;;  %v15588_v20 = vsel %vm395_vm0, %v15465_v17, 0  ;;  %v35745_v2 = vand.u32 4294901760, %v15584_v18 }
 0x5ef   : > { %v30849_v33 = vadd.f32 %v30848_v49, %v30847_v50  ;;  %v30861_v38 = vadd.f32 %v30860_v56, %v30859_v13  ;;  %27760 = vmatmul.mubr.f32.vlgmr.msra.gmra.mrb[26].mxu0 %v34507_v12  ;;  %28225 = vmatmul.mubr.f32.vlgmr.msra.gmra.mrb[26].mxu1 %v34507_v12  ;;  %v15582_v11 = vsel %vm395_vm0, %v288_v26, 0 }
 0x5f0   : > { %v30855_v27 = vadd.f32 %v30854_v6, %v30853_v8  ;;  %v30867_v36 = vadd.f32 %v30866_v14, %v30865_v24  ;;  %27777 = vmatpush1.msra.mxu0 %v27776_v42  ;;  %28242 = vmatpush1.msra.mxu1 %v28241_v40  ;;  %v35758_v40 = vand.u32 4294901760, %v15582_v11  ;;  %v35766_v14 = vsub.f32 %v15584_v18, %v35745_v2 }
 0x5f1   : > { %v30850_v47 = vrot.slane %v30849_v33, 1  ;;  %v30862_v48 = vrot.slane %v30861_v38, 1  ;;  %27840 = vmatprep.mubr.f32.mxu0 %v33189_v0  ;;  %27850 = vmatprep.subr.mxu0 %v35656_v29  ;;  %v15586_v29 = vsel %vm395_vm0, %v289_v60, 0 }
 0x5f2   : > { %v30856_v52 = vrot.slane %v30855_v27, 1  ;;  %v30868_v59 = vrot.slane %v30867_v36, 1  ;;  %28305 = vmatprep.mubr.f32.mxu1 %v33189_v0  ;;  %28315 = vmatprep.subr.mxu1 %v35662_v46  ;;  %v35749_v46 = vand.u32 4294901760, %v15588_v20  ;;  %v35760_v49 = vand.u32 4294901760, %v15586_v29 }
 0x5f3   : > { %v30851_v61 = vadd.f32 %v30850_v47, %v30849_v33  ;;  %v30863_v62 = vadd.f32 %v30862_v48, %v30861_v38  ;;  %v35776_v33 = vsub.f32 %v15582_v11, %v35758_v40 }
 0x5f4   : > { %v30857_v1 = vadd.f32 %v30856_v52, %v30855_v27  ;;  %v30869_v3 = vadd.f32 %v30868_v59, %v30867_v36  ;;  %v28698_v27 = vand.u32 4294901760, %v35766_v14  ;;  %v32992_v36 = vld [vmem:[%s33420_s26 + $0x70] sm:$0xff]  ;;  %v32993_v59 = vld [vmem:[%s33420_s26 + $0x78] sm:$0xff] }
 0x5f5   : > { %v31094_v4 = vadd.f32 %v34942_v45, %v30851_v61  ;;  %v31096_v9 = vadd.f32 %v34942_v45, %v30863_v62 }
 0x5f6   : > { %v31095_v10 = vadd.f32 %v34942_v45, %v30857_v1  ;;  %v31097_v35 = vadd.f32 %v34942_v45, %v30869_v3 }
 0x5f7   : > { %v31158_v44 = vmul.f32 0.5, %v31094_v4  ;;  %v31160_v31 = vmul.f32 0.5, %v31096_v9  ;;  %27842 = vmatmul.mubr.f32.vlgmr.msra.gmra.mrb[26].mxu0 %v34447_v54  ;;  %28307 = vmatmul.mubr.f32.vlgmr.msra.gmra.mrb[26].mxu1 %v34447_v54 }
 0x5f8   : > { %v31159_v58 = vmul.f32 0.5, %v31095_v10  ;;  %v31161_v30 = vmul.f32 0.5, %v31097_v35  ;;  %27853 = vmatpush1.msra.mxu0 %v35666_v15  ;;  %28318 = vmatpush1.msra.mxu1 %v35669_v7  ;;  %v35772_v7 = vsub.f32 %v15588_v20, %v35749_v46  ;;  %v28704_v35 = vand.u32 4294901760, %v35776_v33 }
 0x5f9   : > { %32905 = vtanh.f32 %v31158_v44  ;;  %27916 = vmatprep.mubr.f32.mxu0 %v33189_v0  ;;  %27926 = vmatprep.subr.mxu0 %v35635_v41 }
 0x5fa   : > { %32907 = vtanh.f32 %v31160_v31  ;;  %28381 = vmatprep.mubr.f32.mxu1 %v33189_v0  ;;  %28391 = vmatprep.subr.mxu1 %v35639_v37  ;;  %v29163_v52 = vand.u32 4294901760, %v35772_v7 }
 0x5fb   : > { %32909 = vtanh.f32 %v31159_v58 }
 0x5fc   : > { %32911 = vtanh.f32 %v31161_v30  ;;  %v28699_v30 = vsub.f32 %v35766_v14, %v28698_v27 }
 0x5ff   : > { %27919 = vmatmul.mubr.f32.vlgmr.msra.gmra.mrb[26].mxu0 %v34466_v32  ;;  %28384 = vmatmul.mubr.f32.vlgmr.msra.gmra.mrb[26].mxu1 %v34466_v32 }
 0x600   : > { %27928 = vmatpush1.msra.mxu0 %v35648_v55  ;;  %28393 = vmatpush1.msra.mxu1 %v35650_v43 }
 0x601   : > { %27991 = vmatprep.mubr.f32.mxu0 %v33189_v0  ;;  %28004 = vmatprep.subr.mxu0 %v27768_v28 }
 0x602   : > { %28456 = vmatprep.mubr.f32.mxu1 %v33189_v0  ;;  %28469 = vmatprep.subr.mxu1 %v28233_v25 }
 0x603   : > { %v32906_v19 = vpop.eup %32905 }
 0x604   : > { %v32908_v21 = vpop.eup %32907  ;;  %v31286_v22 = vmul.f32 0.5, %v32906_v19  ;;  %v28705_v19 = vsub.f32 %v35776_v33, %v28704_v35 }
 0x605   : > { %v32910_v51 = vpop.eup %32909  ;;  %v31288_v57 = vmul.f32 0.5, %v32908_v21 }
 0x606   : > { %v32912_v28 = vpop.eup %32911  ;;  %v31350_v50 = vadd.f32 0.5, %v31286_v22  ;;  %v31287_v13 = vmul.f32 0.5, %v32910_v51  ;;  %v28700_v51 = vand.u32 4294901760, %v28699_v30 }
 0x607   : > { %v31352_v25 = vadd.f32 0.5, %v31288_v57  ;;  %v31289_v8 = vmul.f32 0.5, %v32912_v28  ;;  %27995 = vmatmul.mubr.f32.vlgmr.msra.gmra.mrb[26].mxu0 %v34479_v63  ;;  %28460 = vmatmul.mubr.f32.vlgmr.msra.gmra.mrb[26].mxu1 %v34479_v63 }
 0x608   : > { %v31501_v24 = vrot.slane %v31350_v50, %v34971_v23  ;;  %v31351_v42 = vadd.f32 0.5, %v31287_v13  ;;  %28008 = vmatpush1.msra.mxu0 %v27774_v39  ;;  %28473 = vmatpush1.msra.mxu1 %v28239_v34 }
 0x609   : > { %v31509_v56 = vrot.slane %v31352_v25, %v34971_v23  ;;  %v31353_v6 = vadd.f32 0.5, %v31289_v8  ;;  %28071 = vmatprep.mubr.f32.mxu0 %v33189_v0  ;;  %28080 = vmatprep.subr.mxu0 %v35635_v41  ;;  %v35779_v41 = vsub.f32 %v15586_v29, %v35760_v49  ;;  %v28706_v8 = vand.u32 4294901760, %v28705_v19 }
 0x60a   : > { %v31505_v15 = vrot.slane %v31351_v42, %v34971_v23  ;;  %28536 = vmatprep.mubr.f32.mxu1 %v33189_v0  ;;  %28545 = vmatprep.subr.mxu1 %v35639_v37 }
 0x60b   : > { %v31513_v39 = vrot.slane %v31353_v6, %v34971_v23  ;;  %v29169_v44 = vand.u32 4294901760, %v35779_v41 }
 0x60c   : > { %v31720_v34 = vcombine.low %v31501_v24, %v31505_v15 }
 0x60d   : > { %v31721_v38 = vcombine.low %v31509_v56, %v31513_v39  ;;  %v29170_v20 = vsub.f32 %v35779_v41, %v29169_v44 }
 0x60e   : > { %v31784_v47 = vmul.f32 %v32992_v36, %v31720_v34  ;;  %v23498_v48 = vpop.f32.mrb[16].mxu0  ;;  %v23963_v37 = vpop.f32.mrb[16].mxu1 }
 0x60f   : > { %v31785_v61 = vmul.f32 %v32993_v59, %v31721_v38  ;;  %v30514_v62 = vadd.f32 %v34888_v53, %v23498_v48  ;;  %v30516_v1 = vadd.f32 %v34888_v53, %v23963_v37  ;;  %v23500_v3 = vpop.f32.mrb[17].mxu0  ;;  %v23965_v4 = vpop.f32.mrb[17].mxu1  ;;  %28073 = vmatmul.mubr.f32.vlgmr.msra.gmra.mrb[26].mxu0 %v34447_v54  ;;  %28538 = vmatmul.mubr.f32.vlgmr.msra.gmra.mrb[26].mxu1 %v34447_v54  ;;  %v29171_v24 = vand.u32 4294901760, %v29170_v20 }
 0x610   : > { %31816 = vst [vmem:[%s35023_s30 + $0x70] sm:$0xff] %v31784_v47  ;;  %v30515_v9 = vadd.f32 %v34888_v53, %v23500_v3  ;;  %v30517_v10 = vadd.f32 %v34888_v53, %v23965_v4  ;;  %28082 = vmatpush1.msra.mxu0 %v35648_v55  ;;  %28547 = vmatpush1.msra.mxu1 %v35650_v43 }
 0x611   : > { %31817 = vst [vmem:[%s35023_s30 + $0x78] sm:$0xff] %v31785_v61  ;;  %v30578_v31 = vmax.f32 %v30514_v62, 0.0  ;;  %v30580_v58 = vmax.f32 %v30516_v1, 0.0  ;;  %28145 = vmatprep.mubr.f32.mxu0 %v33189_v0  ;;  %28610 = vmatprep.mubr.f32.mxu1 %v33189_v0  ;;  %v29164_v55 = vsub.f32 %v35772_v7, %v29163_v52 }
 0x612   : > { %v30579_v26 = vmax.f32 %v30515_v9, 0.0  ;;  %v30581_v60 = vmax.f32 %v30517_v10, 0.0  ;;  %28619 = vmatprep.subr.mxu0 %v35745_v2  ;;  %29084 = vmatprep.subr.mxu1 %v35749_v46 }
 0x613   : > { %v30646_v43 = vmul.f32 %v34906_v5, %v30578_v31  ;;  %v30648_v16 = vmul.f32 %v34906_v5, %v30580_v58  ;;  %v29165_v29 = vand.u32 4294901760, %v29164_v55  ;;  %v290_v55 = vld [vmem:[%s33411_s22 + $0xf0] sm:$0xff] }
 0x614   : > { %v30647_v17 = vmul.f32 %v34906_v5, %v30579_v26  ;;  %v30649_v18 = vmul.f32 %v34906_v5, %v30581_v60 }
 0x615   : > { %v30870_v21 = vrot.slane %v30646_v43, 4  ;;  %v30882_v22 = vrot.slane %v30648_v16, 4 }
 0x616   : > { %v30876_v57 = vrot.slane %v30647_v17, 4  ;;  %v30888_v11 = vrot.slane %v30649_v18, 4 }
 0x617   : > { %v30871_v28 = vadd.f32 %v30870_v21, %v30646_v43  ;;  %v30883_v50 = vadd.f32 %v30882_v22, %v30648_v16  ;;  %28147 = vmatmul.mubr.f32.vlgmr.msra.gmra.mrb[26].mxu0 %v34447_v54  ;;  %28612 = vmatmul.mubr.f32.vlgmr.msra.gmra.mrb[26].mxu1 %v34447_v54  ;;  %v291_v43 = vld [vmem:[%s33411_s22 + $0xf8] sm:$0xff]  ;;  %v15466_v16 = vcombine.high %v290_v55, %v290_v55 }
 0x618   : > { %v30877_v13 = vadd.f32 %v30876_v57, %v30647_v17  ;;  %v30889_v25 = vadd.f32 %v30888_v11, %v30649_v18  ;;  %28621 = vmatpush1.msra.mxu0 %v35758_v40  ;;  %29086 = vmatpush1.msra.mxu1 %v35760_v49  ;;  %v15467_v17 = vcombine.high %v291_v43, %v291_v43 }
 0x619   : > { %v30872_v42 = vrot.slane %v30871_v28, 2  ;;  %v30884_v56 = vrot.slane %v30883_v50, 2  ;;  %28684 = vmatprep.mubr.f32.mxu0 %v33189_v0  ;;  %28701 = vmatprep.subr.mxu0 %v28700_v51  ;;  %v15592_v18 = vsel %vm395_vm0, %v15466_v16, 0 }
 0x61a   : > { %v30878_v6 = vrot.slane %v30877_v13, 2  ;;  %v30890_v15 = vrot.slane %v30889_v25, 2  ;;  %29149 = vmatprep.mubr.f32.mxu1 %v33189_v0  ;;  %29166 = vmatprep.subr.mxu1 %v29165_v29  ;;  %v15596_v20 = vsel %vm395_vm0, %v15467_v17, 0  ;;  %v35855_v11 = vand.u32 4294901760, %v15592_v18 }
 0x61b   : > { %v30873_v39 = vadd.f32 %v30872_v42, %v30871_v28  ;;  %v30885_v34 = vadd.f32 %v30884_v56, %v30883_v50  ;;  %28690 = vmatmul.mubr.f32.vlgmr.msra.gmra.mrb[28].mxu0 %v34507_v12  ;;  %29155 = vmatmul.mubr.f32.vlgmr.msra.gmra.mrb[28].mxu1 %v34507_v12  ;;  %v15590_v29 = vsel %vm395_vm0, %v290_v55, 0 }
 0x61c   : > { %v30879_v38 = vadd.f32 %v30878_v6, %v30877_v13  ;;  %v30891_v36 = vadd.f32 %v30890_v15, %v30889_v25  ;;  %28707 = vmatpush1.msra.mxu0 %v28706_v8  ;;  %29172 = vmatpush1.msra.mxu1 %v29171_v24  ;;  %v35868_v24 = vand.u32 4294901760, %v15590_v29  ;;  %v35876_v15 = vsub.f32 %v15592_v18, %v35855_v11 }
 0x61d   : > { %v30874_v47 = vrot.slane %v30873_v39, 1  ;;  %v30886_v48 = vrot.slane %v30885_v34, 1  ;;  %28770 = vmatprep.mubr.f32.mxu0 %v33189_v0  ;;  %28780 = vmatprep.subr.mxu0 %v35766_v14  ;;  %v15594_v14 = vsel %vm395_vm0, %v291_v43, 0 }
 0x61e   : > { %v30880_v37 = vrot.slane %v30879_v38, 1  ;;  %v30892_v59 = vrot.slane %v30891_v36, 1  ;;  %29235 = vmatprep.mubr.f32.mxu1 %v33189_v0  ;;  %29245 = vmatprep.subr.mxu1 %v35772_v7  ;;  %v35859_v7 = vand.u32 4294901760, %v15596_v20  ;;  %v35870_v42 = vand.u32 4294901760, %v15594_v14 }
 0x61f   : > { %v30875_v61 = vadd.f32 %v30874_v47, %v30873_v39  ;;  %v30887_v62 = vadd.f32 %v30886_v48, %v30885_v34  ;;  %v35886_v39 = vsub.f32 %v15590_v29, %v35868_v24 }
 0x620   : > { %v30881_v1 = vadd.f32 %v30880_v37, %v30879_v38  ;;  %v30893_v3 = vadd.f32 %v30892_v59, %v30891_v36  ;;  %v29628_v38 = vand.u32 4294901760, %v35876_v15  ;;  %v32994_v36 = vld [vmem:[%s33420_s26 + $0x80] sm:$0xff]  ;;  %v32995_v59 = vld [vmem:[%s33420_s26 + $0x88] sm:$0xff] }
 0x621   : > { %v31098_v4 = vadd.f32 %v34942_v45, %v30875_v61  ;;  %v31100_v9 = vadd.f32 %v34942_v45, %v30887_v62 }
 0x622   : > { %v31099_v10 = vadd.f32 %v34942_v45, %v30881_v1  ;;  %v31101_v31 = vadd.f32 %v34942_v45, %v30893_v3 }
 0x623   : > { %v31162_v58 = vmul.f32 0.5, %v31098_v4  ;;  %v31164_v30 = vmul.f32 0.5, %v31100_v9  ;;  %28772 = vmatmul.mubr.f32.vlgmr.msra.gmra.mrb[28].mxu0 %v34447_v54  ;;  %29237 = vmatmul.mubr.f32.vlgmr.msra.gmra.mrb[28].mxu1 %v34447_v54 }
 0x624   : > { %v31163_v26 = vmul.f32 0.5, %v31099_v10  ;;  %v31165_v60 = vmul.f32 0.5, %v31101_v31  ;;  %28783 = vmatpush1.msra.mxu0 %v35776_v33  ;;  %29248 = vmatpush1.msra.mxu1 %v35779_v41  ;;  %v35882_v41 = vsub.f32 %v15596_v20, %v35859_v7  ;;  %v29634_v31 = vand.u32 4294901760, %v35886_v39 }
 0x625   : > { %32913 = vtanh.f32 %v31162_v58  ;;  %28846 = vmatprep.mubr.f32.mxu0 %v33189_v0  ;;  %28856 = vmatprep.subr.mxu0 %v35745_v2 }
 0x626   : > { %32915 = vtanh.f32 %v31164_v30  ;;  %29311 = vmatprep.mubr.f32.mxu1 %v33189_v0  ;;  %29321 = vmatprep.subr.mxu1 %v35749_v46  ;;  %v30093_v37 = vand.u32 4294901760, %v35882_v41 }
 0x627   : > { %32917 = vtanh.f32 %v31163_v26 }
 0x628   : > { %32919 = vtanh.f32 %v31165_v60  ;;  %v29629_v60 = vsub.f32 %v35876_v15, %v29628_v38 }
 0x62b   : > { %28849 = vmatmul.mubr.f32.vlgmr.msra.gmra.mrb[28].mxu0 %v34466_v32  ;;  %29314 = vmatmul.mubr.f32.vlgmr.msra.gmra.mrb[28].mxu1 %v34466_v32 }
 0x62c   : > { %28858 = vmatpush1.msra.mxu0 %v35758_v40  ;;  %29323 = vmatpush1.msra.mxu1 %v35760_v49 }
 0x62d   : > { %28921 = vmatprep.mubr.f32.mxu0 %v33189_v0  ;;  %28934 = vmatprep.subr.mxu0 %v28698_v27 }
 0x62e   : > { %29386 = vmatprep.mubr.f32.mxu1 %v33189_v0  ;;  %29399 = vmatprep.subr.mxu1 %v29163_v52 }
 0x62f   : > { %v32914_v19 = vpop.eup %32913 }
 0x630   : > { %v32916_v21 = vpop.eup %32915  ;;  %v31290_v22 = vmul.f32 0.5, %v32914_v19  ;;  %v29635_v19 = vsub.f32 %v35886_v39, %v29634_v31 }
 0x631   : > { %v32918_v51 = vpop.eup %32917  ;;  %v31292_v57 = vmul.f32 0.5, %v32916_v21 }
 0x632   : > { %v32920_v27 = vpop.eup %32919  ;;  %v31354_v28 = vadd.f32 0.5, %v31290_v22  ;;  %v31291_v50 = vmul.f32 0.5, %v32918_v51  ;;  %v29630_v51 = vand.u32 4294901760, %v29629_v60 }
 0x633   : > { %v31356_v52 = vadd.f32 0.5, %v31292_v57  ;;  %v31293_v13 = vmul.f32 0.5, %v32920_v27  ;;  %28925 = vmatmul.mubr.f32.vlgmr.msra.gmra.mrb[28].mxu0 %v34479_v63  ;;  %29390 = vmatmul.mubr.f32.vlgmr.msra.gmra.mrb[28].mxu1 %v34479_v63 }
 0x634   : > { %v31517_v25 = vrot.slane %v31354_v28, %v34971_v23  ;;  %v31355_v8 = vadd.f32 0.5, %v31291_v50  ;;  %28938 = vmatpush1.msra.mxu0 %v28704_v35  ;;  %29403 = vmatpush1.msra.mxu1 %v29169_v44 }
 0x635   : > { %v31525_v56 = vrot.slane %v31356_v52, %v34971_v23  ;;  %v31357_v6 = vadd.f32 0.5, %v31293_v13  ;;  %29001 = vmatprep.mubr.f32.mxu0 %v33189_v0  ;;  %29010 = vmatprep.subr.mxu0 %v35745_v2  ;;  %v35889_v2 = vsub.f32 %v15594_v14, %v35870_v42  ;;  %v29636_v13 = vand.u32 4294901760, %v29635_v19 }
 0x636   : > { %v31521_v33 = vrot.slane %v31355_v8, %v34971_v23  ;;  %29466 = vmatprep.mubr.f32.mxu1 %v33189_v0  ;;  %29475 = vmatprep.subr.mxu1 %v35749_v46 }
 0x637   : > { %v31529_v35 = vrot.slane %v31357_v6, %v34971_v23  ;;  %v30099_v58 = vand.u32 4294901760, %v35889_v2 }
 0x638   : > { %v31722_v44 = vcombine.low %v31517_v25, %v31521_v33 }
 0x639   : > { %v31723_v34 = vcombine.low %v31525_v56, %v31529_v35  ;;  %v30100_v20 = vsub.f32 %v35889_v2, %v30099_v58 }
 0x63a   : > { %v31786_v47 = vmul.f32 %v32994_v36, %v31722_v44  ;;  %v24428_v48 = vpop.f32.mrb[18].mxu0  ;;  %v24893_v46 = vpop.f32.mrb[18].mxu1 }
 0x63b   : > { %v31787_v61 = vmul.f32 %v32995_v59, %v31723_v34  ;;  %v30518_v62 = vadd.f32 %v34888_v53, %v24428_v48  ;;  %v30520_v1 = vadd.f32 %v34888_v53, %v24893_v46  ;;  %v24430_v3 = vpop.f32.mrb[19].mxu0  ;;  %v24895_v4 = vpop.f32.mrb[19].mxu1  ;;  %29003 = vmatmul.mubr.f32.vlgmr.msra.gmra.mrb[28].mxu0 %v34447_v54  ;;  %29468 = vmatmul.mubr.f32.vlgmr.msra.gmra.mrb[28].mxu1 %v34447_v54  ;;  %v30101_v25 = vand.u32 4294901760, %v30100_v20 }
 0x63c   : > { %31818 = vst [vmem:[%s35023_s30 + $0x80] sm:$0xff] %v31786_v47  ;;  %v30519_v9 = vadd.f32 %v34888_v53, %v24430_v3  ;;  %v30521_v10 = vadd.f32 %v34888_v53, %v24895_v4  ;;  %29012 = vmatpush1.msra.mxu0 %v35758_v40  ;;  %29477 = vmatpush1.msra.mxu1 %v35760_v49 }
 0x63d   : > { %31819 = vst [vmem:[%s35023_s30 + $0x88] sm:$0xff] %v31787_v61  ;;  %v30582_v30 = vmax.f32 %v30518_v62, 0.0  ;;  %v30584_v26 = vmax.f32 %v30520_v1, 0.0  ;;  %29075 = vmatprep.mubr.f32.mxu0 %v33189_v0  ;;  %29540 = vmatprep.mubr.f32.mxu1 %v33189_v0  ;;  %v30094_v40 = vsub.f32 %v35882_v41, %v30093_v37 }
 0x63e   : > { %v30583_v55 = vmax.f32 %v30519_v9, 0.0  ;;  %v30585_v43 = vmax.f32 %v30521_v10, 0.0  ;;  %29549 = vmatprep.subr.mxu0 %v35855_v11  ;;  %30014 = vmatprep.subr.mxu1 %v35859_v7 }
 0x63f   : > { %v30650_v49 = vmul.f32 %v34906_v5, %v30582_v30  ;;  %v30652_v16 = vmul.f32 %v34906_v5, %v30584_v26  ;;  %v30095_v14 = vand.u32 4294901760, %v30094_v40 }
 0x640   : > { %v30651_v17 = vmul.f32 %v34906_v5, %v30583_v55  ;;  %v30653_v18 = vmul.f32 %v34906_v5, %v30585_v43 }
 0x641   : > { %v30894_v21 = vrot.slane %v30650_v49, 4  ;;  %v30906_v22 = vrot.slane %v30652_v16, 4 }
 0x642   : > { %v30900_v57 = vrot.slane %v30651_v17, 4  ;;  %v30912_v29 = vrot.slane %v30653_v18, 4 }
 0x643   : > { %v30895_v27 = vadd.f32 %v30894_v21, %v30650_v49  ;;  %v30907_v28 = vadd.f32 %v30906_v22, %v30652_v16  ;;  %29077 = vmatmul.mubr.f32.vlgmr.msra.gmra.mrb[28].mxu0 %v34447_v54  ;;  %29542 = vmatmul.mubr.f32.vlgmr.msra.gmra.mrb[28].mxu1 %v34447_v54 }
 0x644   : > { %v30901_v50 = vadd.f32 %v30900_v57, %v30651_v17  ;;  %v30913_v52 = vadd.f32 %v30912_v29, %v30653_v18  ;;  %29551 = vmatpush1.msra.mxu0 %v35868_v24  ;;  %30016 = vmatpush1.msra.mxu1 %v35870_v42  ;;  %v32997_v29 = vld [vmem:[%s33420_s26 + $0x98] sm:$0xff] }
 0x645   : > { %v30896_v8 = vrot.slane %v30895_v27, 2  ;;  %v30908_v56 = vrot.slane %v30907_v28, 2  ;;  %29614 = vmatprep.mubr.f32.mxu0 %v33189_v0  ;;  %29631 = vmatprep.subr.mxu0 %v29630_v51 }
 0x646   : > { %v30902_v6 = vrot.slane %v30901_v50, 2  ;;  %v30914_v33 = vrot.slane %v30913_v52, 2  ;;  %30079 = vmatprep.mubr.f32.mxu1 %v33189_v0  ;;  %30096 = vmatprep.subr.mxu1 %v30095_v14 }
 0x647   : > { %v30897_v35 = vadd.f32 %v30896_v8, %v30895_v27  ;;  %v30909_v44 = vadd.f32 %v30908_v56, %v30907_v28  ;;  %29620 = vmatmul.mubr.f32.vlgmr.msra.gmra.mrb[30].mxu0 %v34507_v12  ;;  %30085 = vmatmul.mubr.f32.vlgmr.msra.gmra.mrb[30].mxu1 %v34507_v12 }
 0x648   : > { %v30903_v34 = vadd.f32 %v30902_v6, %v30901_v50  ;;  %v30915_v36 = vadd.f32 %v30914_v33, %v30913_v52  ;;  %29637 = vmatpush1.msra.mxu0 %v29636_v13  ;;  %30102 = vmatpush1.msra.mxu1 %v30101_v25 }
 0x649   : > { %v30898_v47 = vrot.slane %v30897_v35, 1  ;;  %v30910_v48 = vrot.slane %v30909_v44, 1  ;;  %29700 = vmatprep.mubr.f32.mxu0 %v33189_v0  ;;  %29710 = vmatprep.subr.mxu0 %v35876_v15 }
 0x64a   : > { %v30904_v46 = vrot.slane %v30903_v34, 1  ;;  %v30916_v59 = vrot.slane %v30915_v36, 1  ;;  %30165 = vmatprep.mubr.f32.mxu1 %v33189_v0  ;;  %30175 = vmatprep.subr.mxu1 %v35882_v41 }
 0x64b   : > { %v30899_v61 = vadd.f32 %v30898_v47, %v30897_v35  ;;  %v30911_v62 = vadd.f32 %v30910_v48, %v30909_v44 }
 0x64c   : > { %v30905_v1 = vadd.f32 %v30904_v46, %v30903_v34  ;;  %v30917_v12 = vadd.f32 %v30916_v59, %v30915_v36 }
 0x64d   : > { %v31102_v3 = vadd.f32 %v34942_v45, %v30899_v61  ;;  %v31104_v4 = vadd.f32 %v34942_v45, %v30911_v62 }
 0x64e   : > { %v31103_v9 = vadd.f32 %v34942_v45, %v30905_v1  ;;  %v31105_v10 = vadd.f32 %v34942_v45, %v30917_v12 }
 0x64f   : > { %v31166_v30 = vmul.f32 0.5, %v31102_v3  ;;  %v31168_v26 = vmul.f32 0.5, %v31104_v4  ;;  %29702 = vmatmul.mubr.f32.vlgmr.msra.gmra.mrb[30].mxu0 %v34447_v54  ;;  %30167 = vmatmul.mubr.f32.vlgmr.msra.gmra.mrb[30].mxu1 %v34447_v54 }
 0x650   : > { %v31167_v60 = vmul.f32 0.5, %v31103_v9  ;;  %v31169_v55 = vmul.f32 0.5, %v31105_v10  ;;  %29713 = vmatpush1.msra.mxu0 %v35886_v39  ;;  %30178 = vmatpush1.msra.mxu1 %v35889_v2 }
 0x651   : > { %32921 = vtanh.f32 %v31166_v30  ;;  %29776 = vmatprep.mubr.f32.mxu0 %v33189_v0  ;;  %29786 = vmatprep.subr.mxu0 %v35855_v11 }
 0x652   : > { %32923 = vtanh.f32 %v31168_v26  ;;  %30241 = vmatprep.mubr.f32.mxu1 %v33189_v0  ;;  %30251 = vmatprep.subr.mxu1 %v35859_v7 }
 0x653   : > { %32925 = vtanh.f32 %v31167_v60 }
 0x654   : > { %32927 = vtanh.f32 %v31169_v55 }
 0x657   : > { %29779 = vmatmul.mubr.f32.vlgmr.msra.gmra.mrb[30].mxu0 %v34466_v32  ;;  %30244 = vmatmul.mubr.f32.vlgmr.msra.gmra.mrb[30].mxu1 %v34466_v32 }
 0x658   : > { %29788 = vmatpush1.msra.mxu0 %v35868_v24  ;;  %30253 = vmatpush1.msra.mxu1 %v35870_v42 }
 0x659   : > { %29851 = vmatprep.mubr.f32.mxu0 %v33189_v0  ;;  %29864 = vmatprep.subr.mxu0 %v29628_v38 }
 0x65a   : > { %30316 = vmatprep.mubr.f32.mxu1 %v33189_v0  ;;  %30329 = vmatprep.subr.mxu1 %v30093_v37 }
 0x65b   : > { %v32922_v43 = vpop.eup %32921 }
 0x65c   : > { %v32924_v40 = vpop.eup %32923  ;;  %v31294_v49 = vmul.f32 0.5, %v32922_v43 }
 0x65d   : > { %v32926_v16 = vpop.eup %32925  ;;  %v31296_v17 = vmul.f32 0.5, %v32924_v40 }
 0x65e   : > { %v32928_v32 = vpop.eup %32927  ;;  %v31358_v18 = vadd.f32 0.5, %v31294_v49  ;;  %v31295_v19 = vmul.f32 0.5, %v32926_v16 }
 0x65f   : > { %v31360_v20 = vadd.f32 0.5, %v31296_v17  ;;  %v31297_v21 = vmul.f32 0.5, %v32928_v32  ;;  %29855 = vmatmul.mubr.f32.vlgmr.msra.gmra.mrb[30].mxu0 %v34479_v63  ;;  %30320 = vmatmul.mubr.f32.vlgmr.msra.gmra.mrb[30].mxu1 %v34479_v63 }
 0x660   : > { %v31533_v15 = vrot.slane %v31358_v18, %v34971_v23  ;;  %v31359_v38 = vadd.f32 0.5, %v31295_v19  ;;  %29868 = vmatpush1.msra.mxu0 %v29634_v31  ;;  %30333 = vmatpush1.msra.mxu1 %v30099_v58  ;;  %v32996_v31 = vld [vmem:[%s33420_s26 + $0x90] sm:$0xff] }
 0x661   : > { %v31541_v41 = vrot.slane %v31360_v20, %v34971_v23  ;;  %v31361_v37 = vadd.f32 0.5, %v31297_v21  ;;  %29931 = vmatprep.mubr.f32.mxu0 %v33189_v0  ;;  %29940 = vmatprep.subr.mxu0 %v35855_v11 }
 0x662   : > { %v31537_v22 = vrot.slane %v31359_v38, %v34971_v23  ;;  %30396 = vmatprep.mubr.f32.mxu1 %v33189_v0  ;;  %30405 = vmatprep.subr.mxu1 %v35859_v7 }
 0x663   : > { %v31545_v63 = vrot.slane %v31361_v37, %v34971_v23 }
 0x664   : > { %v31724_v39 = vcombine.low %v31533_v15, %v31537_v22 }
 0x665   : > { %v31725_v2 = vcombine.low %v31541_v41, %v31545_v63 }
 0x666   : > { %v31788_v58 = vmul.f32 %v32996_v31, %v31724_v39  ;;  %v25358_v51 = vpop.f32.mrb[20].mxu0  ;;  %v25823_v57 = vpop.f32.mrb[20].mxu1 }
 0x667   : > { %v31789_v14 = vmul.f32 %v32997_v29, %v31725_v2  ;;  %v30522_v11 = vadd.f32 %v34888_v53, %v25358_v51  ;;  %v30524_v27 = vadd.f32 %v34888_v53, %v25823_v57  ;;  %v25360_v28 = vpop.f32.mrb[21].mxu0  ;;  %v25825_v50 = vpop.f32.mrb[21].mxu1  ;;  %29933 = vmatmul.mubr.f32.vlgmr.msra.gmra.mrb[30].mxu0 %v34447_v54  ;;  %30398 = vmatmul.mubr.f32.vlgmr.msra.gmra.mrb[30].mxu1 %v34447_v54 }
 0x668   : > { %31820 = vst [vmem:[%s35023_s30 + $0x90] sm:$0xff] %v31788_v58  ;;  %v30523_v7 = vadd.f32 %v34888_v53, %v25360_v28  ;;  %v30525_v52 = vadd.f32 %v34888_v53, %v25825_v50  ;;  %29942 = vmatpush1.msra.mxu0 %v35868_v24  ;;  %30407 = vmatpush1.msra.mxu1 %v35870_v42 }
 0x669   : > { %31821 = vst [vmem:[%s35023_s30 + $0x98] sm:$0xff] %v31789_v14  ;;  %v30586_v13 = vmax.f32 %v30522_v11, 0.0  ;;  %v30588_v25 = vmax.f32 %v30524_v27, 0.0  ;;  %30005 = vmatprep.mubr.f32.mxu0 %v33189_v0  ;;  %30470 = vmatprep.mubr.f32.mxu1 %v33189_v0 }
 0x66a   : > { %v30587_v8 = vmax.f32 %v30523_v7, 0.0  ;;  %v30589_v56 = vmax.f32 %v30525_v52, 0.0  ;;  %v32998_v7 = vld [vmem:[%s33420_s26 + $0xa0] sm:$0xff] }
 0x66b   : > { %v30654_v6 = vmul.f32 %v34906_v5, %v30586_v13  ;;  %v30656_v33 = vmul.f32 %v34906_v5, %v30588_v25 }
 0x66c   : > { %v30655_v35 = vmul.f32 %v34906_v5, %v30587_v8  ;;  %v30657_v44 = vmul.f32 %v34906_v5, %v30589_v56  ;;  %v32999_v8 = vld [vmem:[%s33420_s26 + $0xa8] sm:$0xff] }
 0x66d   : > { %v30918_v24 = vrot.slane %v30654_v6, 4  ;;  %v30930_v34 = vrot.slane %v30656_v33, 4 }
 0x66e   : > { %v30924_v42 = vrot.slane %v30655_v35, 4  ;;  %v30936_v36 = vrot.slane %v30657_v44, 4 }
 0x66f   : > { %v30919_v47 = vadd.f32 %v30918_v24, %v30654_v6  ;;  %v30931_v48 = vadd.f32 %v30930_v34, %v30656_v33  ;;  %30007 = vmatmul.mubr.f32.vlgmr.msra.gmra.mrb[30].mxu0 %v34447_v54  ;;  %30472 = vmatmul.mubr.f32.vlgmr.msra.gmra.mrb[30].mxu1 %v34447_v54 }
 0x670   : > { %v30925_v0 = vadd.f32 %v30924_v42, %v30655_v35  ;;  %v30937_v46 = vadd.f32 %v30936_v36, %v30657_v44 }
 0x671   : > { %v30920_v59 = vrot.slane %v30919_v47, 2  ;;  %v30932_v61 = vrot.slane %v30931_v48, 2 }
 0x672   : > { %v30926_v62 = vrot.slane %v30925_v0, 2  ;;  %v30938_v1 = vrot.slane %v30937_v46, 2 }
 0x673   : > { %v30921_v12 = vadd.f32 %v30920_v59, %v30919_v47  ;;  %v30933_v3 = vadd.f32 %v30932_v61, %v30931_v48 }
 0x674   : > { %v30927_v4 = vadd.f32 %v30926_v62, %v30925_v0  ;;  %v30939_v9 = vadd.f32 %v30938_v1, %v30937_v46 }
 0x675   : > { %v30922_v10 = vrot.slane %v30921_v12, 1  ;;  %v30934_v30 = vrot.slane %v30933_v3, 1 }
 0x676   : > { %v30928_v26 = vrot.slane %v30927_v4, 1  ;;  %v30940_v60 = vrot.slane %v30939_v9, 1 }
 0x677   : > { %v30923_v55 = vadd.f32 %v30922_v10, %v30921_v12  ;;  %v30935_v43 = vadd.f32 %v30934_v30, %v30933_v3 }
 0x678   : > { %v30929_v40 = vadd.f32 %v30928_v26, %v30927_v4  ;;  %v30941_v49 = vadd.f32 %v30940_v60, %v30939_v9 }
 0x679   : > { %v31106_v54 = vadd.f32 %v34942_v45, %v30923_v55  ;;  %v31108_v16 = vadd.f32 %v34942_v45, %v30935_v43 }
 0x67a   : > { %v31107_v17 = vadd.f32 %v34942_v45, %v30929_v40  ;;  %v31109_v32 = vadd.f32 %v34942_v45, %v30941_v49 }
 0x67b   : > { %v31170_v18 = vmul.f32 0.5, %v31106_v54  ;;  %v31172_v19 = vmul.f32 0.5, %v31108_v16 }
 0x67c   : > { %v31171_v20 = vmul.f32 0.5, %v31107_v17  ;;  %v31173_v21 = vmul.f32 0.5, %v31109_v32 }
 0x67d   : > { %32929 = vtanh.f32 %v31170_v18 }
 0x67e   : > { %32931 = vtanh.f32 %v31172_v19 }
 0x67f   : > { %32933 = vtanh.f32 %v31171_v20 }
 0x680   : > { %32935 = vtanh.f32 %v31173_v21 }
 0x687   : > { %v32930_v15 = vpop.eup %32929 }
 0x688   : > { %v32932_v38 = vpop.eup %32931  ;;  %v31298_v41 = vmul.f32 0.5, %v32930_v15 }
 0x689   : > { %v32934_v37 = vpop.eup %32933  ;;  %v31300_v22 = vmul.f32 0.5, %v32932_v38 }
 0x68a   : > { %v32936_v63 = vpop.eup %32935  ;;  %v31362_v39 = vadd.f32 0.5, %v31298_v41  ;;  %v31299_v2 = vmul.f32 0.5, %v32934_v37 }
 0x68b   : > { %v31364_v31 = vadd.f32 0.5, %v31300_v22  ;;  %v31301_v58 = vmul.f32 0.5, %v32936_v63 }
 0x68c   : > { %v31549_v51 = vrot.slane %v31362_v39, %v34971_v23  ;;  %v31363_v57 = vadd.f32 0.5, %v31299_v2 }
 0x68d   : > { %v31557_v29 = vrot.slane %v31364_v31, %v34971_v23  ;;  %v31365_v14 = vadd.f32 0.5, %v31301_v58 }
 0x68e   : > { %v31553_v11 = vrot.slane %v31363_v57, %v34971_v23 }
 0x68f   : > { %v31561_v27 = vrot.slane %v31365_v14, %v34971_v23 }
 0x690   : > { %v31726_v28 = vcombine.low %v31549_v51, %v31553_v11 }
 0x691   : > { %v31727_v50 = vcombine.low %v31557_v29, %v31561_v27 }
 0x692   : > { %v31790_v52 = vmul.f32 %v32998_v7, %v31726_v28  ;;  %v26288_v13 = vpop.f32.mrb[22].mxu0  ;;  %v26753_v25 = vpop.f32.mrb[22].mxu1 }
 0x693   : > { %v31791_v56 = vmul.f32 %v32999_v8, %v31727_v50  ;;  %v30526_v6 = vadd.f32 %v34888_v53, %v26288_v13  ;;  %v30528_v33 = vadd.f32 %v34888_v53, %v26753_v25  ;;  %v26290_v35 = vpop.f32.mrb[23].mxu0  ;;  %v26755_v44 = vpop.f32.mrb[23].mxu1 }
 0x694   : > { %31822 = vst [vmem:[%s35023_s30 + $0xa0] sm:$0xff] %v31790_v52  ;;  %v30527_v24 = vadd.f32 %v34888_v53, %v26290_v35  ;;  %v30529_v34 = vadd.f32 %v34888_v53, %v26755_v44 }
 0x695   : > { %31823 = vst [vmem:[%s35023_s30 + $0xa8] sm:$0xff] %v31791_v56  ;;  %v30590_v42 = vmax.f32 %v30526_v6, 0.0  ;;  %v30592_v36 = vmax.f32 %v30528_v33, 0.0 }
 0x696   : > { %v30591_v47 = vmax.f32 %v30527_v24, 0.0  ;;  %v30593_v48 = vmax.f32 %v30529_v34, 0.0  ;;  %v33000_v24 = vld [vmem:[%s33420_s26 + $0xb0] sm:$0xff] }
 0x697   : > { %v30658_v0 = vmul.f32 %v34906_v5, %v30590_v42  ;;  %v30660_v46 = vmul.f32 %v34906_v5, %v30592_v36 }
 0x698   : > { %v30659_v59 = vmul.f32 %v34906_v5, %v30591_v47  ;;  %v30661_v61 = vmul.f32 %v34906_v5, %v30593_v48  ;;  %v33001_v47 = vld [vmem:[%s33420_s26 + $0xb8] sm:$0xff] }
 0x699   : > { %v30942_v62 = vrot.slane %v30658_v0, 4  ;;  %v30954_v1 = vrot.slane %v30660_v46, 4 }
 0x69a   : > { %v30948_v12 = vrot.slane %v30659_v59, 4  ;;  %v30960_v3 = vrot.slane %v30661_v61, 4 }
 0x69b   : > { %v30943_v4 = vadd.f32 %v30942_v62, %v30658_v0  ;;  %v30955_v9 = vadd.f32 %v30954_v1, %v30660_v46 }
 0x69c   : > { %v30949_v10 = vadd.f32 %v30948_v12, %v30659_v59  ;;  %v30961_v30 = vadd.f32 %v30960_v3, %v30661_v61 }
 0x69d   : > { %v30944_v26 = vrot.slane %v30943_v4, 2  ;;  %v30956_v60 = vrot.slane %v30955_v9, 2 }
 0x69e   : > { %v30950_v55 = vrot.slane %v30949_v10, 2  ;;  %v30962_v43 = vrot.slane %v30961_v30, 2 }
 0x69f   : > { %v30945_v40 = vadd.f32 %v30944_v26, %v30943_v4  ;;  %v30957_v49 = vadd.f32 %v30956_v60, %v30955_v9 }
 0x6a0   : > { %v30951_v54 = vadd.f32 %v30950_v55, %v30949_v10  ;;  %v30963_v16 = vadd.f32 %v30962_v43, %v30961_v30 }
 0x6a1   : > { %v30946_v17 = vrot.slane %v30945_v40, 1  ;;  %v30958_v32 = vrot.slane %v30957_v49, 1 }
 0x6a2   : > { %v30952_v18 = vrot.slane %v30951_v54, 1  ;;  %v30964_v19 = vrot.slane %v30963_v16, 1 }
 0x6a3   : > { %v30947_v20 = vadd.f32 %v30946_v17, %v30945_v40  ;;  %v30959_v21 = vadd.f32 %v30958_v32, %v30957_v49 }
 0x6a4   : > { %v30953_v15 = vadd.f32 %v30952_v18, %v30951_v54  ;;  %v30965_v38 = vadd.f32 %v30964_v19, %v30963_v16 }
 0x6a5   : > { %v31110_v41 = vadd.f32 %v34942_v45, %v30947_v20  ;;  %v31112_v37 = vadd.f32 %v34942_v45, %v30959_v21 }
 0x6a6   : > { %v31111_v22 = vadd.f32 %v34942_v45, %v30953_v15  ;;  %v31113_v63 = vadd.f32 %v34942_v45, %v30965_v38 }
 0x6a7   : > { %v31174_v39 = vmul.f32 0.5, %v31110_v41  ;;  %v31176_v2 = vmul.f32 0.5, %v31112_v37 }
 0x6a8   : > { %v31175_v31 = vmul.f32 0.5, %v31111_v22  ;;  %v31177_v58 = vmul.f32 0.5, %v31113_v63 }
 0x6a9   : > { %32937 = vtanh.f32 %v31174_v39 }
 0x6aa   : > { %32939 = vtanh.f32 %v31176_v2 }
 0x6ab   : > { %32941 = vtanh.f32 %v31175_v31 }
 0x6ac   : > { %32943 = vtanh.f32 %v31177_v58 }
 0x6b3   : > { %v32938_v51 = vpop.eup %32937 }
 0x6b4   : > { %v32940_v57 = vpop.eup %32939  ;;  %v31302_v29 = vmul.f32 0.5, %v32938_v51 }
 0x6b5   : > { %v32942_v14 = vpop.eup %32941  ;;  %v31304_v11 = vmul.f32 0.5, %v32940_v57 }
 0x6b6   : > { %v32944_v27 = vpop.eup %32943  ;;  %v31366_v28 = vadd.f32 0.5, %v31302_v29  ;;  %v31303_v50 = vmul.f32 0.5, %v32942_v14 }
 0x6b7   : > { %v31368_v7 = vadd.f32 0.5, %v31304_v11  ;;  %v31305_v52 = vmul.f32 0.5, %v32944_v27 }
 0x6b8   : > { %v31565_v13 = vrot.slane %v31366_v28, %v34971_v23  ;;  %v31367_v25 = vadd.f32 0.5, %v31303_v50 }
 0x6b9   : > { %v31573_v8 = vrot.slane %v31368_v7, %v34971_v23  ;;  %v31369_v56 = vadd.f32 0.5, %v31305_v52 }
 0x6ba   : > { %v31569_v6 = vrot.slane %v31367_v25, %v34971_v23 }
 0x6bb   : > { %v31577_v33 = vrot.slane %v31369_v56, %v34971_v23 }
 0x6bc   : > { %v31728_v35 = vcombine.low %v31565_v13, %v31569_v6 }
 0x6bd   : > { %v31729_v44 = vcombine.low %v31573_v8, %v31577_v33 }
 0x6be   : > { %v31792_v34 = vmul.f32 %v33000_v24, %v31728_v35  ;;  %v27218_v42 = vpop.f32.mrb[24].mxu0  ;;  %v27683_v36 = vpop.f32.mrb[24].mxu1 }
 0x6bf   : > { %v31793_v48 = vmul.f32 %v33001_v47, %v31729_v44  ;;  %v30530_v0 = vadd.f32 %v34888_v53, %v27218_v42  ;;  %v30532_v46 = vadd.f32 %v34888_v53, %v27683_v36  ;;  %v27220_v59 = vpop.f32.mrb[25].mxu0  ;;  %v27685_v61 = vpop.f32.mrb[25].mxu1 }
 0x6c0   : > { %31824 = vst [vmem:[%s35023_s30 + $0xb0] sm:$0xff] %v31792_v34  ;;  %v30531_v62 = vadd.f32 %v34888_v53, %v27220_v59  ;;  %v30533_v1 = vadd.f32 %v34888_v53, %v27685_v61 }
 0x6c1   : > { %31825 = vst [vmem:[%s35023_s30 + $0xb8] sm:$0xff] %v31793_v48  ;;  %v30594_v12 = vmax.f32 %v30530_v0, 0.0  ;;  %v30596_v3 = vmax.f32 %v30532_v46, 0.0 }
 0x6c2   : > { %v30595_v4 = vmax.f32 %v30531_v62, 0.0  ;;  %v30597_v9 = vmax.f32 %v30533_v1, 0.0  ;;  %v33002_v62 = vld [vmem:[%s33420_s26 + $0xc0] sm:$0xff] }
 0x6c3   : > { %v30662_v10 = vmul.f32 %v34906_v5, %v30594_v12  ;;  %v30664_v30 = vmul.f32 %v34906_v5, %v30596_v3 }
 0x6c4   : > { %v30663_v26 = vmul.f32 %v34906_v5, %v30595_v4  ;;  %v30665_v60 = vmul.f32 %v34906_v5, %v30597_v9  ;;  %v33003_v4 = vld [vmem:[%s33420_s26 + $0xc8] sm:$0xff] }
 0x6c5   : > { %v30966_v55 = vrot.slane %v30662_v10, 4  ;;  %v30978_v43 = vrot.slane %v30664_v30, 4 }
 0x6c6   : > { %v30972_v40 = vrot.slane %v30663_v26, 4  ;;  %v30984_v49 = vrot.slane %v30665_v60, 4 }
 0x6c7   : > { %v30967_v54 = vadd.f32 %v30966_v55, %v30662_v10  ;;  %v30979_v16 = vadd.f32 %v30978_v43, %v30664_v30 }
 0x6c8   : > { %v30973_v17 = vadd.f32 %v30972_v40, %v30663_v26  ;;  %v30985_v32 = vadd.f32 %v30984_v49, %v30665_v60 }
 0x6c9   : > { %v30968_v18 = vrot.slane %v30967_v54, 2  ;;  %v30980_v19 = vrot.slane %v30979_v16, 2 }
 0x6ca   : > { %v30974_v20 = vrot.slane %v30973_v17, 2  ;;  %v30986_v21 = vrot.slane %v30985_v32, 2 }
 0x6cb   : > { %v30969_v15 = vadd.f32 %v30968_v18, %v30967_v54  ;;  %v30981_v38 = vadd.f32 %v30980_v19, %v30979_v16 }
 0x6cc   : > { %v30975_v41 = vadd.f32 %v30974_v20, %v30973_v17  ;;  %v30987_v37 = vadd.f32 %v30986_v21, %v30985_v32 }
 0x6cd   : > { %v30970_v22 = vrot.slane %v30969_v15, 1  ;;  %v30982_v63 = vrot.slane %v30981_v38, 1 }
 0x6ce   : > { %v30976_v39 = vrot.slane %v30975_v41, 1  ;;  %v30988_v2 = vrot.slane %v30987_v37, 1 }
 0x6cf   : > { %v30971_v31 = vadd.f32 %v30970_v22, %v30969_v15  ;;  %v30983_v58 = vadd.f32 %v30982_v63, %v30981_v38 }
 0x6d0   : > { %v30977_v51 = vadd.f32 %v30976_v39, %v30975_v41  ;;  %v30989_v57 = vadd.f32 %v30988_v2, %v30987_v37 }
 0x6d1   : > { %v31114_v29 = vadd.f32 %v34942_v45, %v30971_v31  ;;  %v31116_v14 = vadd.f32 %v34942_v45, %v30983_v58 }
 0x6d2   : > { %v31115_v11 = vadd.f32 %v34942_v45, %v30977_v51  ;;  %v31117_v27 = vadd.f32 %v34942_v45, %v30989_v57 }
 0x6d3   : > { %v31178_v28 = vmul.f32 0.5, %v31114_v29  ;;  %v31180_v50 = vmul.f32 0.5, %v31116_v14 }
 0x6d4   : > { %v31179_v7 = vmul.f32 0.5, %v31115_v11  ;;  %v31181_v52 = vmul.f32 0.5, %v31117_v27 }
 0x6d5   : > { %32945 = vtanh.f32 %v31178_v28 }
 0x6d6   : > { %32947 = vtanh.f32 %v31180_v50 }
 0x6d7   : > { %32949 = vtanh.f32 %v31179_v7 }
 0x6d8   : > { %32951 = vtanh.f32 %v31181_v52 }
 0x6df   : > { %v32946_v13 = vpop.eup %32945 }
 0x6e0   : > { %v32948_v25 = vpop.eup %32947  ;;  %v31306_v8 = vmul.f32 0.5, %v32946_v13 }
 0x6e1   : > { %v32950_v56 = vpop.eup %32949  ;;  %v31308_v6 = vmul.f32 0.5, %v32948_v25 }
 0x6e2   : > { %v32952_v33 = vpop.eup %32951  ;;  %v31370_v35 = vadd.f32 0.5, %v31306_v8  ;;  %v31307_v44 = vmul.f32 0.5, %v32950_v56 }
 0x6e3   : > { %v31372_v24 = vadd.f32 0.5, %v31308_v6  ;;  %v31309_v34 = vmul.f32 0.5, %v32952_v33 }
 0x6e4   : > { %v31581_v42 = vrot.slane %v31370_v35, %v34971_v23  ;;  %v31371_v36 = vadd.f32 0.5, %v31307_v44 }
 0x6e5   : > { %v31589_v47 = vrot.slane %v31372_v24, %v34971_v23  ;;  %v31373_v48 = vadd.f32 0.5, %v31309_v34 }
 0x6e6   : > { %v31585_v0 = vrot.slane %v31371_v36, %v34971_v23 }
 0x6e7   : > { %v31593_v46 = vrot.slane %v31373_v48, %v34971_v23 }
 0x6e8   : > { %v31730_v59 = vcombine.low %v31581_v42, %v31585_v0 }
 0x6e9   : > { %v31731_v61 = vcombine.low %v31589_v47, %v31593_v46 }
 0x6ea   : > { %v31794_v1 = vmul.f32 %v33002_v62, %v31730_v59  ;;  %v28148_v12 = vpop.f32.mrb[26].mxu0  ;;  %v28613_v3 = vpop.f32.mrb[26].mxu1 }
 0x6eb   : > { %v31795_v9 = vmul.f32 %v33003_v4, %v31731_v61  ;;  %v30534_v10 = vadd.f32 %v34888_v53, %v28148_v12  ;;  %v30536_v30 = vadd.f32 %v34888_v53, %v28613_v3  ;;  %v28150_v26 = vpop.f32.mrb[27].mxu0  ;;  %v28615_v60 = vpop.f32.mrb[27].mxu1 }
 0x6ec   : > { %31826 = vst [vmem:[%s35023_s30 + $0xc0] sm:$0xff] %v31794_v1  ;;  %v30535_v55 = vadd.f32 %v34888_v53, %v28150_v26  ;;  %v30537_v43 = vadd.f32 %v34888_v53, %v28615_v60 }
 0x6ed   : > { %31827 = vst [vmem:[%s35023_s30 + $0xc8] sm:$0xff] %v31795_v9  ;;  %v30598_v40 = vmax.f32 %v30534_v10, 0.0  ;;  %v30600_v49 = vmax.f32 %v30536_v30, 0.0 }
 0x6ee   : > { %v30599_v54 = vmax.f32 %v30535_v55, 0.0  ;;  %v30601_v16 = vmax.f32 %v30537_v43, 0.0  ;;  %v33004_v55 = vld [vmem:[%s33420_s26 + $0xd0] sm:$0xff] }
 0x6ef   : > { %v30666_v17 = vmul.f32 %v34906_v5, %v30598_v40  ;;  %v30668_v32 = vmul.f32 %v34906_v5, %v30600_v49 }
 0x6f0   : > { %v30667_v18 = vmul.f32 %v34906_v5, %v30599_v54  ;;  %v30669_v19 = vmul.f32 %v34906_v5, %v30601_v16  ;;  %v33005_v54 = vld [vmem:[%s33420_s26 + $0xd8] sm:$0xff] }
 0x6f1   : > { %v30990_v20 = vrot.slane %v30666_v17, 4  ;;  %v31002_v21 = vrot.slane %v30668_v32, 4 }
 0x6f2   : > { %v30996_v15 = vrot.slane %v30667_v18, 4  ;;  %v31008_v38 = vrot.slane %v30669_v19, 4 }
 0x6f3   : > { %v30991_v41 = vadd.f32 %v30990_v20, %v30666_v17  ;;  %v31003_v37 = vadd.f32 %v31002_v21, %v30668_v32 }
 0x6f4   : > { %v30997_v22 = vadd.f32 %v30996_v15, %v30667_v18  ;;  %v31009_v63 = vadd.f32 %v31008_v38, %v30669_v19 }
 0x6f5   : > { %v30992_v39 = vrot.slane %v30991_v41, 2  ;;  %v31004_v2 = vrot.slane %v31003_v37, 2 }
 0x6f6   : > { %v30998_v31 = vrot.slane %v30997_v22, 2  ;;  %v31010_v58 = vrot.slane %v31009_v63, 2 }
 0x6f7   : > { %v30993_v51 = vadd.f32 %v30992_v39, %v30991_v41  ;;  %v31005_v57 = vadd.f32 %v31004_v2, %v31003_v37 }
 0x6f8   : > { %v30999_v29 = vadd.f32 %v30998_v31, %v30997_v22  ;;  %v31011_v14 = vadd.f32 %v31010_v58, %v31009_v63 }
 0x6f9   : > { %v30994_v11 = vrot.slane %v30993_v51, 1  ;;  %v31006_v27 = vrot.slane %v31005_v57, 1 }
 0x6fa   : > { %v31000_v28 = vrot.slane %v30999_v29, 1  ;;  %v31012_v50 = vrot.slane %v31011_v14, 1 }
 0x6fb   : > { %v30995_v7 = vadd.f32 %v30994_v11, %v30993_v51  ;;  %v31007_v52 = vadd.f32 %v31006_v27, %v31005_v57 }
 0x6fc   : > { %v31001_v13 = vadd.f32 %v31000_v28, %v30999_v29  ;;  %v31013_v25 = vadd.f32 %v31012_v50, %v31011_v14 }
 0x6fd   : > { %v31118_v8 = vadd.f32 %v34942_v45, %v30995_v7  ;;  %v31120_v56 = vadd.f32 %v34942_v45, %v31007_v52 }
 0x6fe   : > { %v31119_v6 = vadd.f32 %v34942_v45, %v31001_v13  ;;  %v31121_v33 = vadd.f32 %v34942_v45, %v31013_v25 }
 0x6ff   : > { %v31182_v35 = vmul.f32 0.5, %v31118_v8  ;;  %v31184_v44 = vmul.f32 0.5, %v31120_v56 }
 0x700   : > { %v31183_v24 = vmul.f32 0.5, %v31119_v6  ;;  %v31185_v34 = vmul.f32 0.5, %v31121_v33 }
 0x701   : > { %32953 = vtanh.f32 %v31182_v35 }
 0x702   : > { %32955 = vtanh.f32 %v31184_v44 }
 0x703   : > { %32957 = vtanh.f32 %v31183_v24 }
 0x704   : > { %32959 = vtanh.f32 %v31185_v34 }
 0x70b   : > { %v32954_v42 = vpop.eup %32953 }
 0x70c   : > { %v32956_v36 = vpop.eup %32955  ;;  %v31310_v47 = vmul.f32 0.5, %v32954_v42 }
 0x70d   : > { %v32958_v48 = vpop.eup %32957  ;;  %v31312_v0 = vmul.f32 0.5, %v32956_v36 }
 0x70e   : > { %v32960_v46 = vpop.eup %32959  ;;  %v31374_v59 = vadd.f32 0.5, %v31310_v47  ;;  %v31311_v61 = vmul.f32 0.5, %v32958_v48 }
 0x70f   : > { %v31376_v62 = vadd.f32 0.5, %v31312_v0  ;;  %v31313_v1 = vmul.f32 0.5, %v32960_v46 }
 0x710   : > { %v31597_v12 = vrot.slane %v31374_v59, %v34971_v23  ;;  %v31375_v3 = vadd.f32 0.5, %v31311_v61 }
 0x711   : > { %v31605_v4 = vrot.slane %v31376_v62, %v34971_v23  ;;  %v31377_v9 = vadd.f32 0.5, %v31313_v1 }
 0x712   : > { %v31601_v10 = vrot.slane %v31375_v3, %v34971_v23 }
 0x713   : > { %v31609_v30 = vrot.slane %v31377_v9, %v34971_v23 }
 0x714   : > { %v31732_v26 = vcombine.low %v31597_v12, %v31601_v10 }
 0x715   : > { %v31733_v60 = vcombine.low %v31605_v4, %v31609_v30 }
 0x716   : > { %v31796_v43 = vmul.f32 %v33004_v55, %v31732_v26  ;;  %v29078_v40 = vpop.f32.mrb[28].mxu0  ;;  %v29543_v49 = vpop.f32.mrb[28].mxu1 }
 0x717   : > { %v31797_v16 = vmul.f32 %v33005_v54, %v31733_v60  ;;  %v30538_v17 = vadd.f32 %v34888_v53, %v29078_v40  ;;  %v30540_v32 = vadd.f32 %v34888_v53, %v29543_v49  ;;  %v29080_v18 = vpop.f32.mrb[29].mxu0  ;;  %v29545_v19 = vpop.f32.mrb[29].mxu1 }
 0x718   : > { %31828 = vst [vmem:[%s35023_s30 + $0xd0] sm:$0xff] %v31796_v43  ;;  %v30539_v20 = vadd.f32 %v34888_v53, %v29080_v18  ;;  %v30541_v21 = vadd.f32 %v34888_v53, %v29545_v19 }
 0x719   : > { %31829 = vst [vmem:[%s35023_s30 + $0xd8] sm:$0xff] %v31797_v16  ;;  %v30602_v15 = vmax.f32 %v30538_v17, 0.0  ;;  %v30604_v38 = vmax.f32 %v30540_v32, 0.0 }
 0x71a   : > { %v30603_v41 = vmax.f32 %v30539_v20, 0.0  ;;  %v30605_v37 = vmax.f32 %v30541_v21, 0.0  ;;  %v33006_v20 = vld [vmem:[%s33420_s26 + $0xe0] sm:$0xff] }
 0x71b   : > { %v30670_v22 = vmul.f32 %v34906_v5, %v30602_v15  ;;  %v30672_v63 = vmul.f32 %v34906_v5, %v30604_v38 }
 0x71c   : > { %v30671_v39 = vmul.f32 %v34906_v5, %v30603_v41  ;;  %v30673_v2 = vmul.f32 %v34906_v5, %v30605_v37  ;;  %v33007_v41 = vld [vmem:[%s33420_s26 + $0xe8] sm:$0xff] }
 0x71d   : > { %v31014_v31 = vrot.slane %v30670_v22, 4  ;;  %v31026_v58 = vrot.slane %v30672_v63, 4 }
 0x71e   : > { %v31020_v51 = vrot.slane %v30671_v39, 4  ;;  %v31032_v57 = vrot.slane %v30673_v2, 4 }
 0x71f   : > { %v31015_v29 = vadd.f32 %v31014_v31, %v30670_v22  ;;  %v31027_v14 = vadd.f32 %v31026_v58, %v30672_v63 }
 0x720   : > { %v31021_v11 = vadd.f32 %v31020_v51, %v30671_v39  ;;  %v31033_v27 = vadd.f32 %v31032_v57, %v30673_v2 }
 0x721   : > { %v31016_v28 = vrot.slane %v31015_v29, 2  ;;  %v31028_v50 = vrot.slane %v31027_v14, 2 }
 0x722   : > { %v31022_v7 = vrot.slane %v31021_v11, 2  ;;  %v31034_v52 = vrot.slane %v31033_v27, 2 }
 0x723   : > { %v31017_v13 = vadd.f32 %v31016_v28, %v31015_v29  ;;  %v31029_v25 = vadd.f32 %v31028_v50, %v31027_v14 }
 0x724   : > { %v31023_v8 = vadd.f32 %v31022_v7, %v31021_v11  ;;  %v31035_v56 = vadd.f32 %v31034_v52, %v31033_v27 }
 0x725   : > { %v31018_v6 = vrot.slane %v31017_v13, 1  ;;  %v31030_v33 = vrot.slane %v31029_v25, 1 }
 0x726   : > { %v31024_v35 = vrot.slane %v31023_v8, 1  ;;  %v31036_v44 = vrot.slane %v31035_v56, 1 }
 0x727   : > { %v31019_v24 = vadd.f32 %v31018_v6, %v31017_v13  ;;  %v31031_v34 = vadd.f32 %v31030_v33, %v31029_v25 }
 0x728   : > { %v31025_v42 = vadd.f32 %v31024_v35, %v31023_v8  ;;  %v31037_v36 = vadd.f32 %v31036_v44, %v31035_v56 }
 0x729   : > { %v31122_v47 = vadd.f32 %v34942_v45, %v31019_v24  ;;  %v31124_v48 = vadd.f32 %v34942_v45, %v31031_v34 }
 0x72a   : > { %v31123_v0 = vadd.f32 %v34942_v45, %v31025_v42  ;;  %v31125_v46 = vadd.f32 %v34942_v45, %v31037_v36 }
 0x72b   : > { %v31186_v59 = vmul.f32 0.5, %v31122_v47  ;;  %v31188_v61 = vmul.f32 0.5, %v31124_v48 }
 0x72c   : > { %v31187_v62 = vmul.f32 0.5, %v31123_v0  ;;  %v31189_v1 = vmul.f32 0.5, %v31125_v46 }
 0x72d   : > { %32961 = vtanh.f32 %v31186_v59 }
 0x72e   : > { %32963 = vtanh.f32 %v31188_v61 }
 0x72f   : > { %32965 = vtanh.f32 %v31187_v62 }
 0x730   : > { %32967 = vtanh.f32 %v31189_v1 }
 0x737   : > { %v32962_v12 = vpop.eup %32961 }
 0x738   : > { %v32964_v3 = vpop.eup %32963  ;;  %v31314_v4 = vmul.f32 0.5, %v32962_v12 }
 0x739   : > { %v32966_v9 = vpop.eup %32965  ;;  %v31316_v10 = vmul.f32 0.5, %v32964_v3 }
 0x73a   : > { %v32968_v30 = vpop.eup %32967  ;;  %v31378_v26 = vadd.f32 0.5, %v31314_v4  ;;  %v31315_v60 = vmul.f32 0.5, %v32966_v9 }
 0x73b   : > { %v31380_v55 = vadd.f32 0.5, %v31316_v10  ;;  %v31317_v43 = vmul.f32 0.5, %v32968_v30 }
 0x73c   : > { %v31613_v40 = vrot.slane %v31378_v26, %v34971_v23  ;;  %v31379_v49 = vadd.f32 0.5, %v31315_v60 }
 0x73d   : > { %v31621_v54 = vrot.slane %v31380_v55, %v34971_v23  ;;  %v31381_v16 = vadd.f32 0.5, %v31317_v43 }
 0x73e   : > { %v31617_v17 = vrot.slane %v31379_v49, %v34971_v23 }
 0x73f   : > { %v31625_v32 = vrot.slane %v31381_v16, %v34971_v23 }
 0x740   : > { %v31734_v18 = vcombine.low %v31613_v40, %v31617_v17 }
 0x741   : > { %v31735_v19 = vcombine.low %v31621_v54, %v31625_v32 }
 0x742   : > { %v31798_v21 = vmul.f32 %v33006_v20, %v31734_v18  ;;  %v30008_v15 = vpop.f32.mrb[30].mxu0  ;;  %v30473_v38 = vpop.f32.mrb[30].mxu1 }
 0x743   : > { %v31799_v37 = vmul.f32 %v33007_v41, %v31735_v19  ;;  %v30542_v22 = vadd.f32 %v34888_v53, %v30008_v15  ;;  %v30544_v63 = vadd.f32 %v34888_v53, %v30473_v38  ;;  %v30010_v39 = vpop.f32.mrb[31].mxu0  ;;  %v30475_v2 = vpop.f32.mrb[31].mxu1 }
 0x744   : > { %31830 = vst [vmem:[%s35023_s30 + $0xe0] sm:$0xff] %v31798_v21  ;;  %v30543_v31 = vadd.f32 %v34888_v53, %v30010_v39  ;;  %v30545_v58 = vadd.f32 %v34888_v53, %v30475_v2  ;;  %v33009_v2 = vld [vmem:[%s33420_s26 + $0xf8] sm:$0xff] }
 0x745   : > { %31831 = vst [vmem:[%s35023_s30 + $0xe8] sm:$0xff] %v31799_v37  ;;  %v30606_v51 = vmax.f32 %v30542_v22, 0.0  ;;  %v30608_v57 = vmax.f32 %v30544_v63, 0.0  ;;  %v33008_v63 = vld [vmem:[%s33420_s26 + $0xf0] sm:$0xff] }
 0x746   : > { %v30607_v29 = vmax.f32 %v30543_v31, 0.0  ;;  %v30609_v14 = vmax.f32 %v30545_v58, 0.0 }
 0x747   : > { %v30674_v11 = vmul.f32 %v34906_v5, %v30606_v51  ;;  %v30676_v27 = vmul.f32 %v34906_v5, %v30608_v57 }
 0x748   : > { %v30675_v28 = vmul.f32 %v34906_v5, %v30607_v29  ;;  %v30677_v50 = vmul.f32 %v34906_v5, %v30609_v14 }
 0x749   : > { %v31038_v7 = vrot.slane %v30674_v11, 4  ;;  %v31050_v52 = vrot.slane %v30676_v27, 4 }
 0x74a   : > { %v31044_v13 = vrot.slane %v30675_v28, 4  ;;  %v31056_v25 = vrot.slane %v30677_v50, 4 }
 0x74b   : > { %v31039_v8 = vadd.f32 %v31038_v7, %v30674_v11  ;;  %v31051_v56 = vadd.f32 %v31050_v52, %v30676_v27 }
 0x74c   : > { %v31045_v53 = vadd.f32 %v31044_v13, %v30675_v28  ;;  %v31057_v6 = vadd.f32 %v31056_v25, %v30677_v50 }
 0x74d   : > { %v31040_v33 = vrot.slane %v31039_v8, 2  ;;  %v31052_v35 = vrot.slane %v31051_v56, 2 }
 0x74e   : > { %v31046_v44 = vrot.slane %v31045_v53, 2  ;;  %v31058_v24 = vrot.slane %v31057_v6, 2 }
 0x74f   : > { %v31041_v34 = vadd.f32 %v31040_v33, %v31039_v8  ;;  %v31053_v42 = vadd.f32 %v31052_v35, %v31051_v56 }
 0x750   : > { %v31047_v36 = vadd.f32 %v31046_v44, %v31045_v53  ;;  %v31059_v47 = vadd.f32 %v31058_v24, %v31057_v6 }
 0x751   : > { %v31042_v48 = vrot.slane %v31041_v34, 1  ;;  %v31054_v0 = vrot.slane %v31053_v42, 1 }
 0x752   : > { %v31048_v46 = vrot.slane %v31047_v36, 1  ;;  %v31060_v5 = vrot.slane %v31059_v47, 1 }
 0x753   : > { %v31043_v59 = vadd.f32 %v31042_v48, %v31041_v34  ;;  %v31055_v61 = vadd.f32 %v31054_v0, %v31053_v42 }
 0x754   : > { %v31049_v62 = vadd.f32 %v31048_v46, %v31047_v36  ;;  %v31061_v1 = vadd.f32 %v31060_v5, %v31059_v47 }
 0x755   : > { %v31126_v12 = vadd.f32 %v34942_v45, %v31043_v59  ;;  %v31128_v3 = vadd.f32 %v34942_v45, %v31055_v61 }
 0x756   : > { %v31127_v4 = vadd.f32 %v34942_v45, %v31049_v62  ;;  %v31129_v9 = vadd.f32 %v34942_v45, %v31061_v1 }
 0x757   : > { %v31190_v10 = vmul.f32 0.5, %v31126_v12  ;;  %v31192_v30 = vmul.f32 0.5, %v31128_v3 }
 0x758   : > { %v31191_v26 = vmul.f32 0.5, %v31127_v4  ;;  %v31193_v60 = vmul.f32 0.5, %v31129_v9 }
 0x759   : > { %32969 = vtanh.f32 %v31190_v10 }
 0x75a   : > { %32971 = vtanh.f32 %v31192_v30 }
 0x75b   : > { %32973 = vtanh.f32 %v31191_v26 }
 0x75c   : > { %32975 = vtanh.f32 %v31193_v60 }
 0x763   : > { %v32970_v55 = vpop.eup %32969 }
 0x764   : > { %v32972_v43 = vpop.eup %32971  ;;  %v31318_v40 = vmul.f32 0.5, %v32970_v55 }
 0x765   : > { %v32974_v49 = vpop.eup %32973  ;;  %v31320_v54 = vmul.f32 0.5, %v32972_v43 }
 0x766   : > { %v32976_v16 = vpop.eup %32975  ;;  %v31382_v17 = vadd.f32 0.5, %v31318_v40  ;;  %v31319_v45 = vmul.f32 0.5, %v32974_v49 }
 0x767   : > { %v31384_v32 = vadd.f32 0.5, %v31320_v54  ;;  %v31321_v18 = vmul.f32 0.5, %v32976_v16 }
 0x768   : > { %v31629_v19 = vrot.slane %v31382_v17, %v34971_v23  ;;  %v31383_v20 = vadd.f32 0.5, %v31319_v45 }
 0x769   : > { %v31637_v21 = vrot.slane %v31384_v32, %v34971_v23  ;;  %v31385_v15 = vadd.f32 0.5, %v31321_v18 }
 0x76a   : > { %v31633_v38 = vrot.slane %v31383_v20, %v34971_v23 }
 0x76b   : > { %v31641_v41 = vrot.slane %v31385_v15, %v34971_v23 }
 0x76c   : > { %v31736_v37 = vcombine.low %v31629_v19, %v31633_v38 }
 0x76d   : > { %v31737_v22 = vcombine.low %v31637_v21, %v31641_v41 }
 0x76e   : > { %v31800_v39 = vmul.f32 %v33008_v63, %v31736_v37 }
 0x76f   : > { %v31801_v31 = vmul.f32 %v33009_v2, %v31737_v22 }
 0x770   : > { %31832 = vst [vmem:[%s35023_s30 + $0xf0] sm:$0xff] %v31800_v39 }
 0x771   : > { %31833 = vst [vmem:[%s35023_s30 + $0xf8] sm:$0xff] %v31801_v31 }
 0x772   : > { %33111 = shalt.err (!%p33108_p5)
}
 0x773   : > { %s33112_s19 = scalar_lea.hbm %s36110_s5, 4096  ;;  %s33116_s11 = scalar_lea.hbm %s36165_s3, 8192 }
 0x774   : > { %p33113_p9 = scmp.ne.s32.totalorder %s36110_s5, %s33112_s19  ;;  %p33117_p7 = scmp.lt.u32.totalorder %s36110_s5, %s36165_s3 }
 0x775   : > { %p33118_p13 = scmp.lt.u32.totalorder %s33116_s11, %s33112_s19  ;;  %p33120_p10 = scmp.lt.u32.totalorder %s33112_s19, %s36110_s5 }
 0x776   : > { %p33114_p8 = pnand %p33113_p9, %p36184_p1 }
 0x777   : > { %p33119_p11 = por %p33118_p13, %p33117_p7 }
 0x778   : > { %p33115_p6 = pneg %p33114_p8 }
 0x779   : > { %p33121_p2 = por %p33120_p10, %p33119_p11 }
 0x77b   : > { %p33122_p12 = pnand %p33121_p2, %p33115_p6 }
 0x77d   : > { %33125 = shalt.err (!%p33122_p12)
}
 0x77e   : > { %32706 = dma.vmem_to_hbm [thread:$0]  (%p36184_p1), %s36112_s6, 4096, %s36110_s5, %s31835_s15  }
 0x77f PF: > { %s31863_s9 = sand.u32 1, %s33164_s12   ;;  %p36185_p0 = scmp.ne.s32.totalorder %s36174_s4, 0 }
 0x780   : > { %p36186_p3 = scmp.ge.s32.totalorder %s33184_s17, 2  ;;  %s31864_s30 = scalar_lea.sflag [#allocation4], %s31863_s9 }
 0x782   : > { %p32720_p4 = pnand %p36186_p3, %p36185_p0 }
 0x784   : > { %33159 = dma.done.wait (!%p32720_p4), %s31864_s30, 4096  }
 0x785   : > { %33161 = vsyncadd (!%p32720_p4), %s31864_s30, 4294963200  ;;  %s20_s17 = sadd.s32 1, %s33184_s17   ;;  %s36187_s12 = smov %s33168_s13 }
 0x786   : > { %p17_p5 = scmp.ge.s32.totalorder %s20_s17, 4   ;;  %s36188_s13 = smov %s33172_s14 }
 0x787   : > { %s36189_s14 = smov %s33263_s24  ;;  %s36190_s15 = smov %s33180_s16 }
 0x788   : > { %s36191_s16 = smov %s36193_s18  ;;  %19 = sbr.rel (!%p17_p5) target bundleno = 7 (0x7), region = 93 }
 0x78f   :  { %31869 = vsyncpa [#allocation3], 1 }
 0x790   :  { %31871 = vsyncpa [#allocation3 + $0x1], 1 }
 0x791   :  { %31872 = vsyncpa [#allocation6], 1 }
 0x792   :  { %31874 = vsyncpa [#allocation6 + $0x1], 1 }
 0x793   :  { %31875 = vsyncpa [#allocation4], 1 }
 0x794   :  { %31877 = vsyncpa [#allocation4 + $0x1], 1 }

</bundles_post_ra>
